<compile_context>
chip_gen: v7x
topology: tpu7x:2x2x1
jax: 0.10.0
libtpu: 0.0.40
codegen_flags: <defaults>
</compile_context>

<pallas_src>
import math

import jax
import jax.numpy as jnp
from jax.experimental import pallas as pl
from jax.experimental.pallas import tpu as pltpu


# ----------------------------------------------------------------------------
# Fused wavefront kernel: all LSTM layers + fc head, gridless single invocation
# ----------------------------------------------------------------------------
def make_fused_kernel(num_layers, seq_len, batch_pad, hidden):
    L, S, BP, H = num_layers, seq_len, batch_pad, hidden

    def kernel(*refs):
        # ref layout:
        #   inputs : x2d (S*BP, D), h0 (L,BP,H), c0 (L,BP,H),
        #            wih0 (D,4H), whh0 (H,4H), b0 (1,4H),
        #            [wcat_l (2H,4H), b_l (1,4H)] for l = 1..L-1,
        #            fc_w (H,O), fc_b (1,O)
        #   outputs: out (BP,O), h_n (L,BP,H), c_n (L,BP,H)
        #   scratch: gx_scr (S, BP, 4H)  -- layer-0 hoisted input projection
        x_ref, h0_ref, c0_ref = refs[0], refs[1], refs[2]
        wih0_ref, whh0_ref, b0_ref = refs[3], refs[4], refs[5]
        cat_refs = refs[6:6 + 2 * (L - 1)]
        base = 6 + 2 * (L - 1)
        fc_w_ref, fc_b_ref = refs[base], refs[base + 1]
        out_ref, hN_ref, cN_ref = refs[base + 2], refs[base + 3], refs[base + 4]
        gx_scr = refs[base + 5]

        # ---- Layer-0 input projection, hoisted off the recurrent chain ----
        # One (S*BP, D) @ (D, 4H) matmul for all S steps, staged into an
        # aligned (S, BP, 4H) scratch so the per-step read is gx_scr[t].
        gx0 = jnp.dot(x_ref[...], wih0_ref[...],
                      preferred_element_type=jnp.float32) + b0_ref[...]
        gx_scr[...] = gx0.reshape(S, BP, 4 * H)

        # Hoist weight loads once (reused by every cell on the wavefront).
        whh0 = whh0_ref[...]                                   # (H, 4H)
        wcat = [cat_refs[2 * i][...] for i in range(L - 1)]     # (2H, 4H)
        bcat = [cat_refs[2 * i + 1][...] for i in range(L - 1)]  # (1, 4H)

        def cell(gates, c_prev):
            # Full-width (BP, 4H) transcendentals on the EUP, then lane-slice.
            sig = jax.nn.sigmoid(gates)
            tg = jnp.tanh(gates)
            i_g = sig[:, 0 * H:1 * H]
            f_g = sig[:, 1 * H:2 * H]
            g_g = tg[:, 2 * H:3 * H]
            o_g = sig[:, 3 * H:4 * H]
            c = f_g * c_prev + i_g * g_g
            h = o_g * jnp.tanh(c)
            return h, c

        h_st = [h0_ref[l] for l in range(L)]    # (BP, H) per layer
        c_st = [c0_ref[l] for l in range(L)]
        x_below = [None] * L                    # x_below[l] = h_{l-1, t} for layer l's next cell

        # ---- Wavefront: diagonals d = l + t; cells on one diagonal are
        #      independent -> their MXU/EUP/VPU work pipelines, shortening the
        #      dependency chain from L*S cells to S+L-1 diagonals. -----------
        for d in range(S + L - 1):              # static unroll (11 diagonals)
            produced = []
            for l in range(max(0, d - S + 1), min(L, d + 1)):
                t = d - l
                if l == 0:
                    gates = gx_scr[t] + jnp.dot(
                        h_st[0], whh0, preferred_element_type=jnp.float32)
                else:
                    # Fused cell: [x_{l-1,t} ; h_{l,t-1}] @ [W_ih ; W_hh] + b
                    cat = jnp.concatenate([x_below[l], h_st[l]], axis=1)
                    gates = jnp.dot(cat, wcat[l - 1],
                                    preferred_element_type=jnp.float32) + bcat[l - 1]
                h, c = cell(gates, c_st[l])
                c_st[l] = c
                produced.append((l, h))
            # Commit after the diagonal so same-diagonal cells stay independent.
            for l, h in produced:
                h_st[l] = h
                if l + 1 < L:
                    x_below[l + 1] = h          # consumed on the next diagonal

        for l in range(L):
            hN_ref[l] = h_st[l].astype(hN_ref.dtype)
            cN_ref[l] = c_st[l].astype(cN_ref.dtype)

        # fc head on the last layer's final hidden state (dropout = identity).
        out_ref[...] = (jnp.dot(h_st[L - 1], fc_w_ref[...],
                                preferred_element_type=jnp.float32)
                        + fc_b_ref[...]).astype(out_ref.dtype)

    return kernel


# ----------------------------------------------------------------------------
# Full MyLSTM.forward
# ----------------------------------------------------------------------------
def my_lstm_forward(X, hidden, params):
    h0_all, c0_all = hidden
    L, B, H = h0_all.shape
    S, _, D = X.shape
    O = params["fc_w_t"].shape[-1]
    dt = X.dtype

    # Pad batch to the f32 sublane tile (8): all per-step slices/stores become
    # full-tile aligned; padded rows are discarded below.
    BP = max(8, ((B + 7) // 8) * 8)
    pad = BP - B
    if pad:
        X = jnp.pad(X, ((0, 0), (0, pad), (0, 0)))
        h0_all = jnp.pad(h0_all, ((0, 0), (0, pad), (0, 0)))
        c0_all = jnp.pad(c0_all, ((0, 0), (0, pad), (0, 0)))
    x2d = X.reshape(S * BP, D)   # row t*BP + b == time step t, batch row b

    wih0, whh0, b0 = params["lstm"][0]
    weight_args = [wih0, whh0, b0]
    for l in range(1, L):
        weight_args.extend([params["wcat"][l - 1], params["lstm"][l][2]])

    n_in = 3 + len(weight_args) + 2
    vmem = lambda: pl.BlockSpec(memory_space=pltpu.MemorySpace.VMEM)

    out_pad, h_pad, c_pad = pl.pallas_call(
        make_fused_kernel(L, S, BP, H),
        out_shape=(jax.ShapeDtypeStruct((BP, O), dt),      # fc(out[-1]) (padded batch)
                   jax.ShapeDtypeStruct((L, BP, H), dt),   # h_n (padded batch)
                   jax.ShapeDtypeStruct((L, BP, H), dt)),  # c_n (padded batch)
        in_specs=[vmem() for _ in range(n_in)],
        out_specs=(vmem(), vmem(), vmem()),
        scratch_shapes=[pltpu.VMEM((S, BP, 4 * H), jnp.float32)],
    )(x2d, h0_all, c0_all, *weight_args, params["fc_w_t"], params["fc_b"])

    return out_pad[:B], (h_pad[:, :B, :], c_pad[:, :B, :])


# ----------------------------------------------------------------------------
# Deterministic parameter init (matches PyTorch LSTM / Linear shapes)
# ----------------------------------------------------------------------------
def init_params(key, input_size, hidden_size, num_layers, output_size):
    k_lstm = 1.0 / math.sqrt(hidden_size)
    params = {"lstm": [], "wcat": []}
    keys = jax.random.split(key, num_layers * 4 + 2)
    ki = 0
    for l in range(num_layers):
        d_in = input_size if l == 0 else hidden_size
        w_ih = jax.random.uniform(keys[ki], (4 * hidden_size, d_in),
                                  minval=-k_lstm, maxval=k_lstm); ki += 1
        w_hh = jax.random.uniform(keys[ki], (4 * hidden_size, hidden_size),
                                  minval=-k_lstm, maxval=k_lstm); ki += 1
        b_ih = jax.random.uniform(keys[ki], (4 * hidden_size,),
                                  minval=-k_lstm, maxval=k_lstm); ki += 1
        b_hh = jax.random.uniform(keys[ki], (4 * hidden_size,),
                                  minval=-k_lstm, maxval=k_lstm); ki += 1
        wih_t = jnp.asarray(w_ih.T, jnp.float32)                  # (D, 4H)
        whh_t = jnp.asarray(w_hh.T, jnp.float32)                  # (H, 4H)
        b_row = jnp.asarray((b_ih + b_hh)[None, :], jnp.float32)  # (1, 4H)
        params["lstm"].append((wih_t, whh_t, b_row))
        if l >= 1:
            # Prepacked concat weight for the fused cell matmul: (2H, 4H).
            params["wcat"].append(jnp.concatenate([wih_t, whh_t], axis=0))
    k_fc = 1.0 / math.sqrt(hidden_size)
    fc_w = jax.random.uniform(keys[ki], (output_size, hidden_size),
                              minval=-k_fc, maxval=k_fc); ki += 1
    fc_b = jax.random.uniform(keys[ki], (output_size,),
                              minval=-k_fc, maxval=k_fc)
    params["fc_w_t"] = jnp.asarray(fc_w.T, jnp.float32)       # (H, O)
    params["fc_b"] = jnp.asarray(fc_b[None, :], jnp.float32)  # (1, O)
    return params


# ----------------------------------------------------------------------------
# Pure-JAX reference for correctness check
# ----------------------------------------------------------------------------
def reference_forward(X, hidden, params):
    h0_all, c0_all = hidden
    layer_in = X
    hs, cs = [], []
    for l in range(h0_all.shape[0]):
        wih_t, whh_t, b_row = params["lstm"][l]
        H = whh_t.shape[0]

        def step(carry, x_t):
            h, c = carry
            gates = x_t @ wih_t + h @ whh_t + b_row[0]
            i = jax.nn.sigmoid(gates[:, 0 * H:1 * H])
            f = jax.nn.sigmoid(gates[:, 1 * H:2 * H])
            g = jnp.tanh(gates[:, 2 * H:3 * H])
            o = jax.nn.sigmoid(gates[:, 3 * H:4 * H])
            c = f * c + i * g
            h = o * jnp.tanh(c)
            return (h, c), h

        (hN, cN), out_seq = jax.lax.scan(step, (h0_all[l], c0_all[l]), layer_in)
        layer_in = out_seq
        hs.append(hN)
        cs.append(cN)
    out_last = layer_in[-1] @ params["fc_w_t"] + params["fc_b"]
    return out_last, (jnp.stack(hs), jnp.stack(cs))


if __name__ == "__main__":
    SEQ, BATCH, INPUT, HIDDEN, LAYERS, OUT = 8, 2, 16, 32, 4, 1

    key = jax.random.PRNGKey(0)
    k_params, k_x = jax.random.split(key)
    params = init_params(k_params, INPUT, HIDDEN, LAYERS, OUT)

    X = jax.random.normal(k_x, (SEQ, BATCH, INPUT), dtype=jnp.float32)
    hidden = (jnp.zeros((LAYERS, BATCH, HIDDEN), jnp.float32),
              jnp.zeros((LAYERS, BATCH, HIDDEN), jnp.float32))

    fwd = jax.jit(my_lstm_forward)
    out_last, (h_n, c_n) = fwd(X, hidden, params)
    jax.block_until_ready((out_last, h_n, c_n))

    ref_out, (ref_h, ref_c) = reference_forward(X, hidden, params)
    assert out_last.shape == (BATCH, OUT)
    assert h_n.shape == (LAYERS, BATCH, HIDDEN)
    assert c_n.shape == (LAYERS, BATCH, HIDDEN)
    assert jnp.allclose(out_last, ref_out, atol=1e-3, rtol=1e-3)
    assert jnp.allclose(h_n, ref_h, atol=1e-3, rtol=1e-3)
    assert jnp.allclose(c_n, ref_c, atol=1e-3, rtol=1e-3)

    print("KERNEL_OK")
</pallas_src>

<mosaic_0001>
module attributes {stable_mosaic.version = 11 : i64} {
  func.func @kernel(%arg0: memref<64x16xf32, #tpu.memory_space<vmem>>, %arg1: memref<4x8x32xf32, #tpu.memory_space<vmem>>, %arg2: memref<4x8x32xf32, #tpu.memory_space<vmem>>, %arg3: memref<16x128xf32, #tpu.memory_space<vmem>>, %arg4: memref<32x128xf32, #tpu.memory_space<vmem>>, %arg5: memref<1x128xf32, #tpu.memory_space<vmem>>, %arg6: memref<64x128xf32, #tpu.memory_space<vmem>>, %arg7: memref<1x128xf32, #tpu.memory_space<vmem>>, %arg8: memref<64x128xf32, #tpu.memory_space<vmem>>, %arg9: memref<1x128xf32, #tpu.memory_space<vmem>>, %arg10: memref<64x128xf32, #tpu.memory_space<vmem>>, %arg11: memref<1x128xf32, #tpu.memory_space<vmem>>, %arg12: memref<32x1xf32, #tpu.memory_space<vmem>>, %arg13: memref<1x1xf32, #tpu.memory_space<vmem>>, %arg14: memref<8x1xf32, #tpu.memory_space<vmem>>, %arg15: memref<4x8x32xf32, #tpu.memory_space<vmem>>, %arg16: memref<4x8x32xf32, #tpu.memory_space<vmem>>, %arg17: memref<8x8x128xf32, #tpu.memory_space<vmem>>) attributes {dimension_semantics = [], scalar_prefetch = 0 : i64, scratch_operands = 1 : i64, tpu.core_type = #tpu.core_type<tc>} {
    %c0 = arith.constant 0 : index
    %c0_0 = arith.constant 0 : index
    %0 = vector.load %arg0[%c0, %c0_0] : memref<64x16xf32, #tpu.memory_space<vmem>>, vector<64x16xf32>
    %c0_1 = arith.constant 0 : index
    %c0_2 = arith.constant 0 : index
    %1 = vector.load %arg3[%c0_1, %c0_2] : memref<16x128xf32, #tpu.memory_space<vmem>>, vector<16x128xf32>
    %cst = arith.constant dense<0.000000e+00> : vector<64x128xf32>
    %2 = tpu.matmul %0, %1, %cst {dimension_numbers = #tpu.dot_dimension_numbers<[1], [0], [0], [1], [0, 0, 1, 1], [], []>} : vector<64x16xf32>, vector<16x128xf32>, vector<64x128xf32> -> vector<64x128xf32>
    %c0_3 = arith.constant 0 : index
    %c0_4 = arith.constant 0 : index
    %3 = vector.load %arg5[%c0_3, %c0_4] : memref<1x128xf32, #tpu.memory_space<vmem>>, vector<1x128xf32>
    %4 = vector.broadcast %3 : vector<1x128xf32> to vector<64x128xf32>
    %5 = arith.addf %2, %4 : vector<64x128xf32>
    %6 = vector.shape_cast %5 : vector<64x128xf32> to vector<8x8x128xf32>
    %c0_5 = arith.constant 0 : index
    %c0_6 = arith.constant 0 : index
    %c0_7 = arith.constant 0 : index
    %7 = vector.load %arg17[%c0_5, %c0_6, %c0_7] : memref<8x8x128xf32, #tpu.memory_space<vmem>>, vector<8x8x128xf32>
    tpu.vector_store %arg17[%c0_5, %c0_6, %c0_7], %6 {strides = array<i32>} : memref<8x8x128xf32, #tpu.memory_space<vmem>>, vector<8x8x128xf32>,
    %c0_8 = arith.constant 0 : index
    %c0_9 = arith.constant 0 : index
    %8 = vector.load %arg4[%c0_8, %c0_9] : memref<32x128xf32, #tpu.memory_space<vmem>>, vector<32x128xf32>
    %c0_10 = arith.constant 0 : index
    %c0_11 = arith.constant 0 : index
    %9 = vector.load %arg6[%c0_10, %c0_11] : memref<64x128xf32, #tpu.memory_space<vmem>>, vector<64x128xf32>
    %c0_12 = arith.constant 0 : index
    %c0_13 = arith.constant 0 : index
    %10 = vector.load %arg8[%c0_12, %c0_13] : memref<64x128xf32, #tpu.memory_space<vmem>>, vector<64x128xf32>
    %c0_14 = arith.constant 0 : index
    %c0_15 = arith.constant 0 : index
    %11 = vector.load %arg10[%c0_14, %c0_15] : memref<64x128xf32, #tpu.memory_space<vmem>>, vector<64x128xf32>
    %c0_16 = arith.constant 0 : index
    %c0_17 = arith.constant 0 : index
    %12 = vector.load %arg7[%c0_16, %c0_17] : memref<1x128xf32, #tpu.memory_space<vmem>>, vector<1x128xf32>
    %c0_18 = arith.constant 0 : index
    %c0_19 = arith.constant 0 : index
    %13 = vector.load %arg9[%c0_18, %c0_19] : memref<1x128xf32, #tpu.memory_space<vmem>>, vector<1x128xf32>
    %c0_20 = arith.constant 0 : index
    %c0_21 = arith.constant 0 : index
    %14 = vector.load %arg11[%c0_20, %c0_21] : memref<1x128xf32, #tpu.memory_space<vmem>>, vector<1x128xf32>
    %c0_22 = arith.constant 0 : index
    %c0_23 = arith.constant 0 : index
    %c0_24 = arith.constant 0 : index
    %15 = vector.load %arg1[%c0_22, %c0_23, %c0_24] : memref<4x8x32xf32, #tpu.memory_space<vmem>>, vector<1x8x32xf32>
    %16 = vector.shape_cast %15 : vector<1x8x32xf32> to vector<8x32xf32>
    %c1 = arith.constant 1 : index
    %c0_25 = arith.constant 0 : index
    %c0_26 = arith.constant 0 : index
    %17 = vector.load %arg1[%c1, %c0_25, %c0_26] : memref<4x8x32xf32, #tpu.memory_space<vmem>>, vector<1x8x32xf32>
    %18 = vector.shape_cast %17 : vector<1x8x32xf32> to vector<8x32xf32>
    %c2 = arith.constant 2 : index
    %c0_27 = arith.constant 0 : index
    %c0_28 = arith.constant 0 : index
    %19 = vector.load %arg1[%c2, %c0_27, %c0_28] : memref<4x8x32xf32, #tpu.memory_space<vmem>>, vector<1x8x32xf32>
    %20 = vector.shape_cast %19 : vector<1x8x32xf32> to vector<8x32xf32>
    %c3 = arith.constant 3 : index
    %c0_29 = arith.constant 0 : index
    %c0_30 = arith.constant 0 : index
    %21 = vector.load %arg1[%c3, %c0_29, %c0_30] : memref<4x8x32xf32, #tpu.memory_space<vmem>>, vector<1x8x32xf32>
    %22 = vector.shape_cast %21 : vector<1x8x32xf32> to vector<8x32xf32>
    %c0_31 = arith.constant 0 : index
    %c0_32 = arith.constant 0 : index
    %c0_33 = arith.constant 0 : index
    %23 = vector.load %arg2[%c0_31, %c0_32, %c0_33] : memref<4x8x32xf32, #tpu.memory_space<vmem>>, vector<1x8x32xf32>
    %24 = vector.shape_cast %23 : vector<1x8x32xf32> to vector<8x32xf32>
    %c1_34 = arith.constant 1 : index
    %c0_35 = arith.constant 0 : index
    %c0_36 = arith.constant 0 : index
    %25 = vector.load %arg2[%c1_34, %c0_35, %c0_36] : memref<4x8x32xf32, #tpu.memory_space<vmem>>, vector<1x8x32xf32>
    %26 = vector.shape_cast %25 : vector<1x8x32xf32> to vector<8x32xf32>
    %c2_37 = arith.constant 2 : index
    %c0_38 = arith.constant 0 : index
    %c0_39 = arith.constant 0 : index
    %27 = vector.load %arg2[%c2_37, %c0_38, %c0_39] : memref<4x8x32xf32, #tpu.memory_space<vmem>>, vector<1x8x32xf32>
    %28 = vector.shape_cast %27 : vector<1x8x32xf32> to vector<8x32xf32>
    %c3_40 = arith.constant 3 : index
    %c0_41 = arith.constant 0 : index
    %c0_42 = arith.constant 0 : index
    %29 = vector.load %arg2[%c3_40, %c0_41, %c0_42] : memref<4x8x32xf32, #tpu.memory_space<vmem>>, vector<1x8x32xf32>
    %30 = vector.shape_cast %29 : vector<1x8x32xf32> to vector<8x32xf32>
    %c0_43 = arith.constant 0 : index
    %c0_44 = arith.constant 0 : index
    %c0_45 = arith.constant 0 : index
    %31 = vector.load %arg17[%c0_43, %c0_44, %c0_45] : memref<8x8x128xf32, #tpu.memory_space<vmem>>, vector<1x8x128xf32>
    %32 = vector.shape_cast %31 : vector<1x8x128xf32> to vector<8x128xf32>
    %cst_46 = arith.constant dense<0.000000e+00> : vector<8x128xf32>
    %33 = tpu.matmul %16, %8, %cst_46 {dimension_numbers = #tpu.dot_dimension_numbers<[1], [0], [0], [1], [0, 0, 1, 1], [], []>} : vector<8x32xf32>, vector<32x128xf32>, vector<8x128xf32> -> vector<8x128xf32>
    %34 = arith.addf %32, %33 : vector<8x128xf32>
    %35 = arith.negf %34 : vector<8x128xf32>
    %36 = math.exp %35 : vector<8x128xf32>
    %cst_47 = arith.constant 1.000000e+00 : f32
    %37 = vector.broadcast %cst_47 : f32 to vector<8x128xf32>
    %38 = arith.addf %37, %36 : vector<8x128xf32>
    %39 = arith.divf %37, %38 : vector<8x128xf32>
    %40 = math.tanh %34 : vector<8x128xf32>
    %41 = vector.extract_strided_slice %39 {offsets = [0, 0], sizes = [8, 32], strides = [1, 1]} : vector<8x128xf32> to vector<8x32xf32>
    %42 = vector.extract_strided_slice %39 {offsets = [0, 32], sizes = [8, 32], strides = [1, 1]} : vector<8x128xf32> to vector<8x32xf32>
    %43 = vector.extract_strided_slice %40 {offsets = [0, 64], sizes = [8, 32], strides = [1, 1]} : vector<8x128xf32> to vector<8x32xf32>
    %44 = vector.extract_strided_slice %39 {offsets = [0, 96], sizes = [8, 32], strides = [1, 1]} : vector<8x128xf32> to vector<8x32xf32>
    %45 = arith.mulf %42, %24 : vector<8x32xf32>
    %46 = arith.mulf %41, %43 : vector<8x32xf32>
    %47 = arith.addf %45, %46 : vector<8x32xf32>
    %48 = math.tanh %47 : vector<8x32xf32>
    %49 = arith.mulf %44, %48 : vector<8x32xf32>
    %c1_48 = arith.constant 1 : index
    %c0_49 = arith.constant 0 : index
    %c0_50 = arith.constant 0 : index
    %50 = vector.load %arg17[%c1_48, %c0_49, %c0_50] : memref<8x8x128xf32, #tpu.memory_space<vmem>>, vector<1x8x128xf32>
    %51 = vector.shape_cast %50 : vector<1x8x128xf32> to vector<8x128xf32>
    %cst_51 = arith.constant dense<0.000000e+00> : vector<8x128xf32>
    %52 = tpu.matmul %49, %8, %cst_51 {dimension_numbers = #tpu.dot_dimension_numbers<[1], [0], [0], [1], [0, 0, 1, 1], [], []>} : vector<8x32xf32>, vector<32x128xf32>, vector<8x128xf32> -> vector<8x128xf32>
    %53 = arith.addf %51, %52 : vector<8x128xf32>
    %54 = arith.negf %53 : vector<8x128xf32>
    %55 = math.exp %54 : vector<8x128xf32>
    %cst_52 = arith.constant 1.000000e+00 : f32
    %56 = vector.broadcast %cst_52 : f32 to vector<8x128xf32>
    %57 = arith.addf %56, %55 : vector<8x128xf32>
    %58 = arith.divf %56, %57 : vector<8x128xf32>
    %59 = math.tanh %53 : vector<8x128xf32>
    %60 = vector.extract_strided_slice %58 {offsets = [0, 0], sizes = [8, 32], strides = [1, 1]} : vector<8x128xf32> to vector<8x32xf32>
    %61 = vector.extract_strided_slice %58 {offsets = [0, 32], sizes = [8, 32], strides = [1, 1]} : vector<8x128xf32> to vector<8x32xf32>
    %62 = vector.extract_strided_slice %59 {offsets = [0, 64], sizes = [8, 32], strides = [1, 1]} : vector<8x128xf32> to vector<8x32xf32>
    %63 = vector.extract_strided_slice %58 {offsets = [0, 96], sizes = [8, 32], strides = [1, 1]} : vector<8x128xf32> to vector<8x32xf32>
    %64 = arith.mulf %61, %47 : vector<8x32xf32>
    %65 = arith.mulf %60, %62 : vector<8x32xf32>
    %66 = arith.addf %64, %65 : vector<8x32xf32>
    %67 = math.tanh %66 : vector<8x32xf32>
    %68 = arith.mulf %63, %67 : vector<8x32xf32>
    %69 = tpu.concatenate %49, %18 in 1 : vector<8x32xf32>, vector<8x32xf32> -> vector<8x64xf32>
    %cst_53 = arith.constant dense<0.000000e+00> : vector<8x128xf32>
    %70 = tpu.matmul %69, %9, %cst_53 {dimension_numbers = #tpu.dot_dimension_numbers<[1], [0], [0], [1], [0, 0, 1, 1], [], []>} : vector<8x64xf32>, vector<64x128xf32>, vector<8x128xf32> -> vector<8x128xf32>
    %71 = vector.broadcast %12 : vector<1x128xf32> to vector<8x128xf32>
    %72 = arith.addf %70, %71 : vector<8x128xf32>
    %73 = arith.negf %72 : vector<8x128xf32>
    %74 = math.exp %73 : vector<8x128xf32>
    %cst_54 = arith.constant 1.000000e+00 : f32
    %75 = vector.broadcast %cst_54 : f32 to vector<8x128xf32>
    %76 = arith.addf %75, %74 : vector<8x128xf32>
    %77 = arith.divf %75, %76 : vector<8x128xf32>
    %78 = math.tanh %72 : vector<8x128xf32>
    %79 = vector.extract_strided_slice %77 {offsets = [0, 0], sizes = [8, 32], strides = [1, 1]} : vector<8x128xf32> to vector<8x32xf32>
    %80 = vector.extract_strided_slice %77 {offsets = [0, 32], sizes = [8, 32], strides = [1, 1]} : vector<8x128xf32> to vector<8x32xf32>
    %81 = vector.extract_strided_slice %78 {offsets = [0, 64], sizes = [8, 32], strides = [1, 1]} : vector<8x128xf32> to vector<8x32xf32>
    %82 = vector.extract_strided_slice %77 {offsets = [0, 96], sizes = [8, 32], strides = [1, 1]} : vector<8x128xf32> to vector<8x32xf32>
    %83 = arith.mulf %80, %26 : vector<8x32xf32>
    %84 = arith.mulf %79, %81 : vector<8x32xf32>
    %85 = arith.addf %83, %84 : vector<8x32xf32>
    %86 = math.tanh %85 : vector<8x32xf32>
    %87 = arith.mulf %82, %86 : vector<8x32xf32>
    %c2_55 = arith.constant 2 : index
    %c0_56 = arith.constant 0 : index
    %c0_57 = arith.constant 0 : index
    %88 = vector.load %arg17[%c2_55, %c0_56, %c0_57] : memref<8x8x128xf32, #tpu.memory_space<vmem>>, vector<1x8x128xf32>
    %89 = vector.shape_cast %88 : vector<1x8x128xf32> to vector<8x128xf32>
    %cst_58 = arith.constant dense<0.000000e+00> : vector<8x128xf32>
    %90 = tpu.matmul %68, %8, %cst_58 {dimension_numbers = #tpu.dot_dimension_numbers<[1], [0], [0], [1], [0, 0, 1, 1], [], []>} : vector<8x32xf32>, vector<32x128xf32>, vector<8x128xf32> -> vector<8x128xf32>
    %91 = arith.addf %89, %90 : vector<8x128xf32>
    %92 = arith.negf %91 : vector<8x128xf32>
    %93 = math.exp %92 : vector<8x128xf32>
    %cst_59 = arith.constant 1.000000e+00 : f32
    %94 = vector.broadcast %cst_59 : f32 to vector<8x128xf32>
    %95 = arith.addf %94, %93 : vector<8x128xf32>
    %96 = arith.divf %94, %95 : vector<8x128xf32>
    %97 = math.tanh %91 : vector<8x128xf32>
    %98 = vector.extract_strided_slice %96 {offsets = [0, 0], sizes = [8, 32], strides = [1, 1]} : vector<8x128xf32> to vector<8x32xf32>
    %99 = vector.extract_strided_slice %96 {offsets = [0, 32], sizes = [8, 32], strides = [1, 1]} : vector<8x128xf32> to vector<8x32xf32>
    %100 = vector.extract_strided_slice %97 {offsets = [0, 64], sizes = [8, 32], strides = [1, 1]} : vector<8x128xf32> to vector<8x32xf32>
    %101 = vector.extract_strided_slice %96 {offsets = [0, 96], sizes = [8, 32], strides = [1, 1]} : vector<8x128xf32> to vector<8x32xf32>
    %102 = arith.mulf %99, %66 : vector<8x32xf32>
    %103 = arith.mulf %98, %100 : vector<8x32xf32>
    %104 = arith.addf %102, %103 : vector<8x32xf32>
    %105 = math.tanh %104 : vector<8x32xf32>
    %106 = arith.mulf %101, %105 : vector<8x32xf32>
    %107 = tpu.concatenate %68, %87 in 1 : vector<8x32xf32>, vector<8x32xf32> -> vector<8x64xf32>
    %cst_60 = arith.constant dense<0.000000e+00> : vector<8x128xf32>
    %108 = tpu.matmul %107, %9, %cst_60 {dimension_numbers = #tpu.dot_dimension_numbers<[1], [0], [0], [1], [0, 0, 1, 1], [], []>} : vector<8x64xf32>, vector<64x128xf32>, vector<8x128xf32> -> vector<8x128xf32>
    %109 = vector.broadcast %12 : vector<1x128xf32> to vector<8x128xf32>
    %110 = arith.addf %108, %109 : vector<8x128xf32>
    %111 = arith.negf %110 : vector<8x128xf32>
    %112 = math.exp %111 : vector<8x128xf32>
    %cst_61 = arith.constant 1.000000e+00 : f32
    %113 = vector.broadcast %cst_61 : f32 to vector<8x128xf32>
    %114 = arith.addf %113, %112 : vector<8x128xf32>
    %115 = arith.divf %113, %114 : vector<8x128xf32>
    %116 = math.tanh %110 : vector<8x128xf32>
    %117 = vector.extract_strided_slice %115 {offsets = [0, 0], sizes = [8, 32], strides = [1, 1]} : vector<8x128xf32> to vector<8x32xf32>
    %118 = vector.extract_strided_slice %115 {offsets = [0, 32], sizes = [8, 32], strides = [1, 1]} : vector<8x128xf32> to vector<8x32xf32>
    %119 = vector.extract_strided_slice %116 {offsets = [0, 64], sizes = [8, 32], strides = [1, 1]} : vector<8x128xf32> to vector<8x32xf32>
    %120 = vector.extract_strided_slice %115 {offsets = [0, 96], sizes = [8, 32], strides = [1, 1]} : vector<8x128xf32> to vector<8x32xf32>
    %121 = arith.mulf %118, %85 : vector<8x32xf32>
    %122 = arith.mulf %117, %119 : vector<8x32xf32>
    %123 = arith.addf %121, %122 : vector<8x32xf32>
    %124 = math.tanh %123 : vector<8x32xf32>
    %125 = arith.mulf %120, %124 : vector<8x32xf32>
    %126 = tpu.concatenate %87, %20 in 1 : vector<8x32xf32>, vector<8x32xf32> -> vector<8x64xf32>
    %cst_62 = arith.constant dense<0.000000e+00> : vector<8x128xf32>
    %127 = tpu.matmul %126, %10, %cst_62 {dimension_numbers = #tpu.dot_dimension_numbers<[1], [0], [0], [1], [0, 0, 1, 1], [], []>} : vector<8x64xf32>, vector<64x128xf32>, vector<8x128xf32> -> vector<8x128xf32>
    %128 = vector.broadcast %13 : vector<1x128xf32> to vector<8x128xf32>
    %129 = arith.addf %127, %128 : vector<8x128xf32>
    %130 = arith.negf %129 : vector<8x128xf32>
    %131 = math.exp %130 : vector<8x128xf32>
    %cst_63 = arith.constant 1.000000e+00 : f32
    %132 = vector.broadcast %cst_63 : f32 to vector<8x128xf32>
    %133 = arith.addf %132, %131 : vector<8x128xf32>
    %134 = arith.divf %132, %133 : vector<8x128xf32>
    %135 = math.tanh %129 : vector<8x128xf32>
    %136 = vector.extract_strided_slice %134 {offsets = [0, 0], sizes = [8, 32], strides = [1, 1]} : vector<8x128xf32> to vector<8x32xf32>
    %137 = vector.extract_strided_slice %134 {offsets = [0, 32], sizes = [8, 32], strides = [1, 1]} : vector<8x128xf32> to vector<8x32xf32>
    %138 = vector.extract_strided_slice %135 {offsets = [0, 64], sizes = [8, 32], strides = [1, 1]} : vector<8x128xf32> to vector<8x32xf32>
    %139 = vector.extract_strided_slice %134 {offsets = [0, 96], sizes = [8, 32], strides = [1, 1]} : vector<8x128xf32> to vector<8x32xf32>
    %140 = arith.mulf %137, %28 : vector<8x32xf32>
    %141 = arith.mulf %136, %138 : vector<8x32xf32>
    %142 = arith.addf %140, %141 : vector<8x32xf32>
    %143 = math.tanh %142 : vector<8x32xf32>
    %144 = arith.mulf %139, %143 : vector<8x32xf32>
    %c3_64 = arith.constant 3 : index
    %c0_65 = arith.constant 0 : index
    %c0_66 = arith.constant 0 : index
    %145 = vector.load %arg17[%c3_64, %c0_65, %c0_66] : memref<8x8x128xf32, #tpu.memory_space<vmem>>, vector<1x8x128xf32>
    %146 = vector.shape_cast %145 : vector<1x8x128xf32> to vector<8x128xf32>
    %cst_67 = arith.constant dense<0.000000e+00> : vector<8x128xf32>
    %147 = tpu.matmul %106, %8, %cst_67 {dimension_numbers = #tpu.dot_dimension_numbers<[1], [0], [0], [1], [0, 0, 1, 1], [], []>} : vector<8x32xf32>, vector<32x128xf32>, vector<8x128xf32> -> vector<8x128xf32>
    %148 = arith.addf %146, %147 : vector<8x128xf32>
    %149 = arith.negf %148 : vector<8x128xf32>
    %150 = math.exp %149 : vector<8x128xf32>
    %cst_68 = arith.constant 1.000000e+00 : f32
    %151 = vector.broadcast %cst_68 : f32 to vector<8x128xf32>
    %152 = arith.addf %151, %150 : vector<8x128xf32>
    %153 = arith.divf %151, %152 : vector<8x128xf32>
    %154 = math.tanh %148 : vector<8x128xf32>
    %155 = vector.extract_strided_slice %153 {offsets = [0, 0], sizes = [8, 32], strides = [1, 1]} : vector<8x128xf32> to vector<8x32xf32>
    %156 = vector.extract_strided_slice %153 {offsets = [0, 32], sizes = [8, 32], strides = [1, 1]} : vector<8x128xf32> to vector<8x32xf32>
    %157 = vector.extract_strided_slice %154 {offsets = [0, 64], sizes = [8, 32], strides = [1, 1]} : vector<8x128xf32> to vector<8x32xf32>
    %158 = vector.extract_strided_slice %153 {offsets = [0, 96], sizes = [8, 32], strides = [1, 1]} : vector<8x128xf32> to vector<8x32xf32>
    %159 = arith.mulf %156, %104 : vector<8x32xf32>
    %160 = arith.mulf %155, %157 : vector<8x32xf32>
    %161 = arith.addf %159, %160 : vector<8x32xf32>
    %162 = math.tanh %161 : vector<8x32xf32>
    %163 = arith.mulf %158, %162 : vector<8x32xf32>
    %164 = tpu.concatenate %106, %125 in 1 : vector<8x32xf32>, vector<8x32xf32> -> vector<8x64xf32>
    %cst_69 = arith.constant dense<0.000000e+00> : vector<8x128xf32>
    %165 = tpu.matmul %164, %9, %cst_69 {dimension_numbers = #tpu.dot_dimension_numbers<[1], [0], [0], [1], [0, 0, 1, 1], [], []>} : vector<8x64xf32>, vector<64x128xf32>, vector<8x128xf32> -> vector<8x128xf32>
    %166 = vector.broadcast %12 : vector<1x128xf32> to vector<8x128xf32>
    %167 = arith.addf %165, %166 : vector<8x128xf32>
    %168 = arith.negf %167 : vector<8x128xf32>
    %169 = math.exp %168 : vector<8x128xf32>
    %cst_70 = arith.constant 1.000000e+00 : f32
    %170 = vector.broadcast %cst_70 : f32 to vector<8x128xf32>
    %171 = arith.addf %170, %169 : vector<8x128xf32>
    %172 = arith.divf %170, %171 : vector<8x128xf32>
    %173 = math.tanh %167 : vector<8x128xf32>
    %174 = vector.extract_strided_slice %172 {offsets = [0, 0], sizes = [8, 32], strides = [1, 1]} : vector<8x128xf32> to vector<8x32xf32>
    %175 = vector.extract_strided_slice %172 {offsets = [0, 32], sizes = [8, 32], strides = [1, 1]} : vector<8x128xf32> to vector<8x32xf32>
    %176 = vector.extract_strided_slice %173 {offsets = [0, 64], sizes = [8, 32], strides = [1, 1]} : vector<8x128xf32> to vector<8x32xf32>
    %177 = vector.extract_strided_slice %172 {offsets = [0, 96], sizes = [8, 32], strides = [1, 1]} : vector<8x128xf32> to vector<8x32xf32>
    %178 = arith.mulf %175, %123 : vector<8x32xf32>
    %179 = arith.mulf %174, %176 : vector<8x32xf32>
    %180 = arith.addf %178, %179 : vector<8x32xf32>
    %181 = math.tanh %180 : vector<8x32xf32>
    %182 = arith.mulf %177, %181 : vector<8x32xf32>
    %183 = tpu.concatenate %125, %144 in 1 : vector<8x32xf32>, vector<8x32xf32> -> vector<8x64xf32>
    %cst_71 = arith.constant dense<0.000000e+00> : vector<8x128xf32>
    %184 = tpu.matmul %183, %10, %cst_71 {dimension_numbers = #tpu.dot_dimension_numbers<[1], [0], [0], [1], [0, 0, 1, 1], [], []>} : vector<8x64xf32>, vector<64x128xf32>, vector<8x128xf32> -> vector<8x128xf32>
    %185 = vector.broadcast %13 : vector<1x128xf32> to vector<8x128xf32>
    %186 = arith.addf %184, %185 : vector<8x128xf32>
    %187 = arith.negf %186 : vector<8x128xf32>
    %188 = math.exp %187 : vector<8x128xf32>
    %cst_72 = arith.constant 1.000000e+00 : f32
    %189 = vector.broadcast %cst_72 : f32 to vector<8x128xf32>
    %190 = arith.addf %189, %188 : vector<8x128xf32>
    %191 = arith.divf %189, %190 : vector<8x128xf32>
    %192 = math.tanh %186 : vector<8x128xf32>
    %193 = vector.extract_strided_slice %191 {offsets = [0, 0], sizes = [8, 32], strides = [1, 1]} : vector<8x128xf32> to vector<8x32xf32>
    %194 = vector.extract_strided_slice %191 {offsets = [0, 32], sizes = [8, 32], strides = [1, 1]} : vector<8x128xf32> to vector<8x32xf32>
    %195 = vector.extract_strided_slice %192 {offsets = [0, 64], sizes = [8, 32], strides = [1, 1]} : vector<8x128xf32> to vector<8x32xf32>
    %196 = vector.extract_strided_slice %191 {offsets = [0, 96], sizes = [8, 32], strides = [1, 1]} : vector<8x128xf32> to vector<8x32xf32>
    %197 = arith.mulf %194, %142 : vector<8x32xf32>
    %198 = arith.mulf %193, %195 : vector<8x32xf32>
    %199 = arith.addf %197, %198 : vector<8x32xf32>
    %200 = math.tanh %199 : vector<8x32xf32>
    %201 = arith.mulf %196, %200 : vector<8x32xf32>
    %202 = tpu.concatenate %144, %22 in 1 : vector<8x32xf32>, vector<8x32xf32> -> vector<8x64xf32>
    %cst_73 = arith.constant dense<0.000000e+00> : vector<8x128xf32>
    %203 = tpu.matmul %202, %11, %cst_73 {dimension_numbers = #tpu.dot_dimension_numbers<[1], [0], [0], [1], [0, 0, 1, 1], [], []>} : vector<8x64xf32>, vector<64x128xf32>, vector<8x128xf32> -> vector<8x128xf32>
    %204 = vector.broadcast %14 : vector<1x128xf32> to vector<8x128xf32>
    %205 = arith.addf %203, %204 : vector<8x128xf32>
    %206 = arith.negf %205 : vector<8x128xf32>
    %207 = math.exp %206 : vector<8x128xf32>
    %cst_74 = arith.constant 1.000000e+00 : f32
    %208 = vector.broadcast %cst_74 : f32 to vector<8x128xf32>
    %209 = arith.addf %208, %207 : vector<8x128xf32>
    %210 = arith.divf %208, %209 : vector<8x128xf32>
    %211 = math.tanh %205 : vector<8x128xf32>
    %212 = vector.extract_strided_slice %210 {offsets = [0, 0], sizes = [8, 32], strides = [1, 1]} : vector<8x128xf32> to vector<8x32xf32>
    %213 = vector.extract_strided_slice %210 {offsets = [0, 32], sizes = [8, 32], strides = [1, 1]} : vector<8x128xf32> to vector<8x32xf32>
    %214 = vector.extract_strided_slice %211 {offsets = [0, 64], sizes = [8, 32], strides = [1, 1]} : vector<8x128xf32> to vector<8x32xf32>
    %215 = vector.extract_strided_slice %210 {offsets = [0, 96], sizes = [8, 32], strides = [1, 1]} : vector<8x128xf32> to vector<8x32xf32>
    %216 = arith.mulf %213, %30 : vector<8x32xf32>
    %217 = arith.mulf %212, %214 : vector<8x32xf32>
    %218 = arith.addf %216, %217 : vector<8x32xf32>
    %219 = math.tanh %218 : vector<8x32xf32>
    %220 = arith.mulf %215, %219 : vector<8x32xf32>
    %c4 = arith.constant 4 : index
    %c0_75 = arith.constant 0 : index
    %c0_76 = arith.constant 0 : index
    %221 = vector.load %arg17[%c4, %c0_75, %c0_76] : memref<8x8x128xf32, #tpu.memory_space<vmem>>, vector<1x8x128xf32>
    %222 = vector.shape_cast %221 : vector<1x8x128xf32> to vector<8x128xf32>
    %cst_77 = arith.constant dense<0.000000e+00> : vector<8x128xf32>
    %223 = tpu.matmul %163, %8, %cst_77 {dimension_numbers = #tpu.dot_dimension_numbers<[1], [0], [0], [1], [0, 0, 1, 1], [], []>} : vector<8x32xf32>, vector<32x128xf32>, vector<8x128xf32> -> vector<8x128xf32>
    %224 = arith.addf %222, %223 : vector<8x128xf32>
    %225 = arith.negf %224 : vector<8x128xf32>
    %226 = math.exp %225 : vector<8x128xf32>
    %cst_78 = arith.constant 1.000000e+00 : f32
    %227 = vector.broadcast %cst_78 : f32 to vector<8x128xf32>
    %228 = arith.addf %227, %226 : vector<8x128xf32>
    %229 = arith.divf %227, %228 : vector<8x128xf32>
    %230 = math.tanh %224 : vector<8x128xf32>
    %231 = vector.extract_strided_slice %229 {offsets = [0, 0], sizes = [8, 32], strides = [1, 1]} : vector<8x128xf32> to vector<8x32xf32>
    %232 = vector.extract_strided_slice %229 {offsets = [0, 32], sizes = [8, 32], strides = [1, 1]} : vector<8x128xf32> to vector<8x32xf32>
    %233 = vector.extract_strided_slice %230 {offsets = [0, 64], sizes = [8, 32], strides = [1, 1]} : vector<8x128xf32> to vector<8x32xf32>
    %234 = vector.extract_strided_slice %229 {offsets = [0, 96], sizes = [8, 32], strides = [1, 1]} : vector<8x128xf32> to vector<8x32xf32>
    %235 = arith.mulf %232, %161 : vector<8x32xf32>
    %236 = arith.mulf %231, %233 : vector<8x32xf32>
    %237 = arith.addf %235, %236 : vector<8x32xf32>
    %238 = math.tanh %237 : vector<8x32xf32>
    %239 = arith.mulf %234, %238 : vector<8x32xf32>
    %240 = tpu.concatenate %163, %182 in 1 : vector<8x32xf32>, vector<8x32xf32> -> vector<8x64xf32>
    %cst_79 = arith.constant dense<0.000000e+00> : vector<8x128xf32>
    %241 = tpu.matmul %240, %9, %cst_79 {dimension_numbers = #tpu.dot_dimension_numbers<[1], [0], [0], [1], [0, 0, 1, 1], [], []>} : vector<8x64xf32>, vector<64x128xf32>, vector<8x128xf32> -> vector<8x128xf32>
    %242 = vector.broadcast %12 : vector<1x128xf32> to vector<8x128xf32>
    %243 = arith.addf %241, %242 : vector<8x128xf32>
    %244 = arith.negf %243 : vector<8x128xf32>
    %245 = math.exp %244 : vector<8x128xf32>
    %cst_80 = arith.constant 1.000000e+00 : f32
    %246 = vector.broadcast %cst_80 : f32 to vector<8x128xf32>
    %247 = arith.addf %246, %245 : vector<8x128xf32>
    %248 = arith.divf %246, %247 : vector<8x128xf32>
    %249 = math.tanh %243 : vector<8x128xf32>
    %250 = vector.extract_strided_slice %248 {offsets = [0, 0], sizes = [8, 32], strides = [1, 1]} : vector<8x128xf32> to vector<8x32xf32>
    %251 = vector.extract_strided_slice %248 {offsets = [0, 32], sizes = [8, 32], strides = [1, 1]} : vector<8x128xf32> to vector<8x32xf32>
    %252 = vector.extract_strided_slice %249 {offsets = [0, 64], sizes = [8, 32], strides = [1, 1]} : vector<8x128xf32> to vector<8x32xf32>
    %253 = vector.extract_strided_slice %248 {offsets = [0, 96], sizes = [8, 32], strides = [1, 1]} : vector<8x128xf32> to vector<8x32xf32>
    %254 = arith.mulf %251, %180 : vector<8x32xf32>
    %255 = arith.mulf %250, %252 : vector<8x32xf32>
    %256 = arith.addf %254, %255 : vector<8x32xf32>
    %257 = math.tanh %256 : vector<8x32xf32>
    %258 = arith.mulf %253, %257 : vector<8x32xf32>
    %259 = tpu.concatenate %182, %201 in 1 : vector<8x32xf32>, vector<8x32xf32> -> vector<8x64xf32>
    %cst_81 = arith.constant dense<0.000000e+00> : vector<8x128xf32>
    %260 = tpu.matmul %259, %10, %cst_81 {dimension_numbers = #tpu.dot_dimension_numbers<[1], [0], [0], [1], [0, 0, 1, 1], [], []>} : vector<8x64xf32>, vector<64x128xf32>, vector<8x128xf32> -> vector<8x128xf32>
    %261 = vector.broadcast %13 : vector<1x128xf32> to vector<8x128xf32>
    %262 = arith.addf %260, %261 : vector<8x128xf32>
    %263 = arith.negf %262 : vector<8x128xf32>
    %264 = math.exp %263 : vector<8x128xf32>
    %cst_82 = arith.constant 1.000000e+00 : f32
    %265 = vector.broadcast %cst_82 : f32 to vector<8x128xf32>
    %266 = arith.addf %265, %264 : vector<8x128xf32>
    %267 = arith.divf %265, %266 : vector<8x128xf32>
    %268 = math.tanh %262 : vector<8x128xf32>
    %269 = vector.extract_strided_slice %267 {offsets = [0, 0], sizes = [8, 32], strides = [1, 1]} : vector<8x128xf32> to vector<8x32xf32>
    %270 = vector.extract_strided_slice %267 {offsets = [0, 32], sizes = [8, 32], strides = [1, 1]} : vector<8x128xf32> to vector<8x32xf32>
    %271 = vector.extract_strided_slice %268 {offsets = [0, 64], sizes = [8, 32], strides = [1, 1]} : vector<8x128xf32> to vector<8x32xf32>
    %272 = vector.extract_strided_slice %267 {offsets = [0, 96], sizes = [8, 32], strides = [1, 1]} : vector<8x128xf32> to vector<8x32xf32>
    %273 = arith.mulf %270, %199 : vector<8x32xf32>
    %274 = arith.mulf %269, %271 : vector<8x32xf32>
    %275 = arith.addf %273, %274 : vector<8x32xf32>
    %276 = math.tanh %275 : vector<8x32xf32>
    %277 = arith.mulf %272, %276 : vector<8x32xf32>
    %278 = tpu.concatenate %201, %220 in 1 : vector<8x32xf32>, vector<8x32xf32> -> vector<8x64xf32>
    %cst_83 = arith.constant dense<0.000000e+00> : vector<8x128xf32>
    %279 = tpu.matmul %278, %11, %cst_83 {dimension_numbers = #tpu.dot_dimension_numbers<[1], [0], [0], [1], [0, 0, 1, 1], [], []>} : vector<8x64xf32>, vector<64x128xf32>, vector<8x128xf32> -> vector<8x128xf32>
    %280 = vector.broadcast %14 : vector<1x128xf32> to vector<8x128xf32>
    %281 = arith.addf %279, %280 : vector<8x128xf32>
    %282 = arith.negf %281 : vector<8x128xf32>
    %283 = math.exp %282 : vector<8x128xf32>
    %cst_84 = arith.constant 1.000000e+00 : f32
    %284 = vector.broadcast %cst_84 : f32 to vector<8x128xf32>
    %285 = arith.addf %284, %283 : vector<8x128xf32>
    %286 = arith.divf %284, %285 : vector<8x128xf32>
    %287 = math.tanh %281 : vector<8x128xf32>
    %288 = vector.extract_strided_slice %286 {offsets = [0, 0], sizes = [8, 32], strides = [1, 1]} : vector<8x128xf32> to vector<8x32xf32>
    %289 = vector.extract_strided_slice %286 {offsets = [0, 32], sizes = [8, 32], strides = [1, 1]} : vector<8x128xf32> to vector<8x32xf32>
    %290 = vector.extract_strided_slice %287 {offsets = [0, 64], sizes = [8, 32], strides = [1, 1]} : vector<8x128xf32> to vector<8x32xf32>
    %291 = vector.extract_strided_slice %286 {offsets = [0, 96], sizes = [8, 32], strides = [1, 1]} : vector<8x128xf32> to vector<8x32xf32>
    %292 = arith.mulf %289, %218 : vector<8x32xf32>
    %293 = arith.mulf %288, %290 : vector<8x32xf32>
    %294 = arith.addf %292, %293 : vector<8x32xf32>
    %295 = math.tanh %294 : vector<8x32xf32>
    %296 = arith.mulf %291, %295 : vector<8x32xf32>
    %c5 = arith.constant 5 : index
    %c0_85 = arith.constant 0 : index
    %c0_86 = arith.constant 0 : index
    %297 = vector.load %arg17[%c5, %c0_85, %c0_86] : memref<8x8x128xf32, #tpu.memory_space<vmem>>, vector<1x8x128xf32>
    %298 = vector.shape_cast %297 : vector<1x8x128xf32> to vector<8x128xf32>
    %cst_87 = arith.constant dense<0.000000e+00> : vector<8x128xf32>
    %299 = tpu.matmul %239, %8, %cst_87 {dimension_numbers = #tpu.dot_dimension_numbers<[1], [0], [0], [1], [0, 0, 1, 1], [], []>} : vector<8x32xf32>, vector<32x128xf32>, vector<8x128xf32> -> vector<8x128xf32>
    %300 = arith.addf %298, %299 : vector<8x128xf32>
    %301 = arith.negf %300 : vector<8x128xf32>
    %302 = math.exp %301 : vector<8x128xf32>
    %cst_88 = arith.constant 1.000000e+00 : f32
    %303 = vector.broadcast %cst_88 : f32 to vector<8x128xf32>
    %304 = arith.addf %303, %302 : vector<8x128xf32>
    %305 = arith.divf %303, %304 : vector<8x128xf32>
    %306 = math.tanh %300 : vector<8x128xf32>
    %307 = vector.extract_strided_slice %305 {offsets = [0, 0], sizes = [8, 32], strides = [1, 1]} : vector<8x128xf32> to vector<8x32xf32>
    %308 = vector.extract_strided_slice %305 {offsets = [0, 32], sizes = [8, 32], strides = [1, 1]} : vector<8x128xf32> to vector<8x32xf32>
    %309 = vector.extract_strided_slice %306 {offsets = [0, 64], sizes = [8, 32], strides = [1, 1]} : vector<8x128xf32> to vector<8x32xf32>
    %310 = vector.extract_strided_slice %305 {offsets = [0, 96], sizes = [8, 32], strides = [1, 1]} : vector<8x128xf32> to vector<8x32xf32>
    %311 = arith.mulf %308, %237 : vector<8x32xf32>
    %312 = arith.mulf %307, %309 : vector<8x32xf32>
    %313 = arith.addf %311, %312 : vector<8x32xf32>
    %314 = math.tanh %313 : vector<8x32xf32>
    %315 = arith.mulf %310, %314 : vector<8x32xf32>
    %316 = tpu.concatenate %239, %258 in 1 : vector<8x32xf32>, vector<8x32xf32> -> vector<8x64xf32>
    %cst_89 = arith.constant dense<0.000000e+00> : vector<8x128xf32>
    %317 = tpu.matmul %316, %9, %cst_89 {dimension_numbers = #tpu.dot_dimension_numbers<[1], [0], [0], [1], [0, 0, 1, 1], [], []>} : vector<8x64xf32>, vector<64x128xf32>, vector<8x128xf32> -> vector<8x128xf32>
    %318 = vector.broadcast %12 : vector<1x128xf32> to vector<8x128xf32>
    %319 = arith.addf %317, %318 : vector<8x128xf32>
    %320 = arith.negf %319 : vector<8x128xf32>
    %321 = math.exp %320 : vector<8x128xf32>
    %cst_90 = arith.constant 1.000000e+00 : f32
    %322 = vector.broadcast %cst_90 : f32 to vector<8x128xf32>
    %323 = arith.addf %322, %321 : vector<8x128xf32>
    %324 = arith.divf %322, %323 : vector<8x128xf32>
    %325 = math.tanh %319 : vector<8x128xf32>
    %326 = vector.extract_strided_slice %324 {offsets = [0, 0], sizes = [8, 32], strides = [1, 1]} : vector<8x128xf32> to vector<8x32xf32>
    %327 = vector.extract_strided_slice %324 {offsets = [0, 32], sizes = [8, 32], strides = [1, 1]} : vector<8x128xf32> to vector<8x32xf32>
    %328 = vector.extract_strided_slice %325 {offsets = [0, 64], sizes = [8, 32], strides = [1, 1]} : vector<8x128xf32> to vector<8x32xf32>
    %329 = vector.extract_strided_slice %324 {offsets = [0, 96], sizes = [8, 32], strides = [1, 1]} : vector<8x128xf32> to vector<8x32xf32>
    %330 = arith.mulf %327, %256 : vector<8x32xf32>
    %331 = arith.mulf %326, %328 : vector<8x32xf32>
    %332 = arith.addf %330, %331 : vector<8x32xf32>
    %333 = math.tanh %332 : vector<8x32xf32>
    %334 = arith.mulf %329, %333 : vector<8x32xf32>
    %335 = tpu.concatenate %258, %277 in 1 : vector<8x32xf32>, vector<8x32xf32> -> vector<8x64xf32>
    %cst_91 = arith.constant dense<0.000000e+00> : vector<8x128xf32>
    %336 = tpu.matmul %335, %10, %cst_91 {dimension_numbers = #tpu.dot_dimension_numbers<[1], [0], [0], [1], [0, 0, 1, 1], [], []>} : vector<8x64xf32>, vector<64x128xf32>, vector<8x128xf32> -> vector<8x128xf32>
    %337 = vector.broadcast %13 : vector<1x128xf32> to vector<8x128xf32>
    %338 = arith.addf %336, %337 : vector<8x128xf32>
    %339 = arith.negf %338 : vector<8x128xf32>
    %340 = math.exp %339 : vector<8x128xf32>
    %cst_92 = arith.constant 1.000000e+00 : f32
    %341 = vector.broadcast %cst_92 : f32 to vector<8x128xf32>
    %342 = arith.addf %341, %340 : vector<8x128xf32>
    %343 = arith.divf %341, %342 : vector<8x128xf32>
    %344 = math.tanh %338 : vector<8x128xf32>
    %345 = vector.extract_strided_slice %343 {offsets = [0, 0], sizes = [8, 32], strides = [1, 1]} : vector<8x128xf32> to vector<8x32xf32>
    %346 = vector.extract_strided_slice %343 {offsets = [0, 32], sizes = [8, 32], strides = [1, 1]} : vector<8x128xf32> to vector<8x32xf32>
    %347 = vector.extract_strided_slice %344 {offsets = [0, 64], sizes = [8, 32], strides = [1, 1]} : vector<8x128xf32> to vector<8x32xf32>
    %348 = vector.extract_strided_slice %343 {offsets = [0, 96], sizes = [8, 32], strides = [1, 1]} : vector<8x128xf32> to vector<8x32xf32>
    %349 = arith.mulf %346, %275 : vector<8x32xf32>
    %350 = arith.mulf %345, %347 : vector<8x32xf32>
    %351 = arith.addf %349, %350 : vector<8x32xf32>
    %352 = math.tanh %351 : vector<8x32xf32>
    %353 = arith.mulf %348, %352 : vector<8x32xf32>
    %354 = tpu.concatenate %277, %296 in 1 : vector<8x32xf32>, vector<8x32xf32> -> vector<8x64xf32>
    %cst_93 = arith.constant dense<0.000000e+00> : vector<8x128xf32>
    %355 = tpu.matmul %354, %11, %cst_93 {dimension_numbers = #tpu.dot_dimension_numbers<[1], [0], [0], [1], [0, 0, 1, 1], [], []>} : vector<8x64xf32>, vector<64x128xf32>, vector<8x128xf32> -> vector<8x128xf32>
    %356 = vector.broadcast %14 : vector<1x128xf32> to vector<8x128xf32>
    %357 = arith.addf %355, %356 : vector<8x128xf32>
    %358 = arith.negf %357 : vector<8x128xf32>
    %359 = math.exp %358 : vector<8x128xf32>
    %cst_94 = arith.constant 1.000000e+00 : f32
    %360 = vector.broadcast %cst_94 : f32 to vector<8x128xf32>
    %361 = arith.addf %360, %359 : vector<8x128xf32>
    %362 = arith.divf %360, %361 : vector<8x128xf32>
    %363 = math.tanh %357 : vector<8x128xf32>
    %364 = vector.extract_strided_slice %362 {offsets = [0, 0], sizes = [8, 32], strides = [1, 1]} : vector<8x128xf32> to vector<8x32xf32>
    %365 = vector.extract_strided_slice %362 {offsets = [0, 32], sizes = [8, 32], strides = [1, 1]} : vector<8x128xf32> to vector<8x32xf32>
    %366 = vector.extract_strided_slice %363 {offsets = [0, 64], sizes = [8, 32], strides = [1, 1]} : vector<8x128xf32> to vector<8x32xf32>
    %367 = vector.extract_strided_slice %362 {offsets = [0, 96], sizes = [8, 32], strides = [1, 1]} : vector<8x128xf32> to vector<8x32xf32>
    %368 = arith.mulf %365, %294 : vector<8x32xf32>
    %369 = arith.mulf %364, %366 : vector<8x32xf32>
    %370 = arith.addf %368, %369 : vector<8x32xf32>
    %371 = math.tanh %370 : vector<8x32xf32>
    %372 = arith.mulf %367, %371 : vector<8x32xf32>
    %c6 = arith.constant 6 : index
    %c0_95 = arith.constant 0 : index
    %c0_96 = arith.constant 0 : index
    %373 = vector.load %arg17[%c6, %c0_95, %c0_96] : memref<8x8x128xf32, #tpu.memory_space<vmem>>, vector<1x8x128xf32>
    %374 = vector.shape_cast %373 : vector<1x8x128xf32> to vector<8x128xf32>
    %cst_97 = arith.constant dense<0.000000e+00> : vector<8x128xf32>
    %375 = tpu.matmul %315, %8, %cst_97 {dimension_numbers = #tpu.dot_dimension_numbers<[1], [0], [0], [1], [0, 0, 1, 1], [], []>} : vector<8x32xf32>, vector<32x128xf32>, vector<8x128xf32> -> vector<8x128xf32>
    %376 = arith.addf %374, %375 : vector<8x128xf32>
    %377 = arith.negf %376 : vector<8x128xf32>
    %378 = math.exp %377 : vector<8x128xf32>
    %cst_98 = arith.constant 1.000000e+00 : f32
    %379 = vector.broadcast %cst_98 : f32 to vector<8x128xf32>
    %380 = arith.addf %379, %378 : vector<8x128xf32>
    %381 = arith.divf %379, %380 : vector<8x128xf32>
    %382 = math.tanh %376 : vector<8x128xf32>
    %383 = vector.extract_strided_slice %381 {offsets = [0, 0], sizes = [8, 32], strides = [1, 1]} : vector<8x128xf32> to vector<8x32xf32>
    %384 = vector.extract_strided_slice %381 {offsets = [0, 32], sizes = [8, 32], strides = [1, 1]} : vector<8x128xf32> to vector<8x32xf32>
    %385 = vector.extract_strided_slice %382 {offsets = [0, 64], sizes = [8, 32], strides = [1, 1]} : vector<8x128xf32> to vector<8x32xf32>
    %386 = vector.extract_strided_slice %381 {offsets = [0, 96], sizes = [8, 32], strides = [1, 1]} : vector<8x128xf32> to vector<8x32xf32>
    %387 = arith.mulf %384, %313 : vector<8x32xf32>
    %388 = arith.mulf %383, %385 : vector<8x32xf32>
    %389 = arith.addf %387, %388 : vector<8x32xf32>
    %390 = math.tanh %389 : vector<8x32xf32>
    %391 = arith.mulf %386, %390 : vector<8x32xf32>
    %392 = tpu.concatenate %315, %334 in 1 : vector<8x32xf32>, vector<8x32xf32> -> vector<8x64xf32>
    %cst_99 = arith.constant dense<0.000000e+00> : vector<8x128xf32>
    %393 = tpu.matmul %392, %9, %cst_99 {dimension_numbers = #tpu.dot_dimension_numbers<[1], [0], [0], [1], [0, 0, 1, 1], [], []>} : vector<8x64xf32>, vector<64x128xf32>, vector<8x128xf32> -> vector<8x128xf32>
    %394 = vector.broadcast %12 : vector<1x128xf32> to vector<8x128xf32>
    %395 = arith.addf %393, %394 : vector<8x128xf32>
    %396 = arith.negf %395 : vector<8x128xf32>
    %397 = math.exp %396 : vector<8x128xf32>
    %cst_100 = arith.constant 1.000000e+00 : f32
    %398 = vector.broadcast %cst_100 : f32 to vector<8x128xf32>
    %399 = arith.addf %398, %397 : vector<8x128xf32>
    %400 = arith.divf %398, %399 : vector<8x128xf32>
    %401 = math.tanh %395 : vector<8x128xf32>
    %402 = vector.extract_strided_slice %400 {offsets = [0, 0], sizes = [8, 32], strides = [1, 1]} : vector<8x128xf32> to vector<8x32xf32>
    %403 = vector.extract_strided_slice %400 {offsets = [0, 32], sizes = [8, 32], strides = [1, 1]} : vector<8x128xf32> to vector<8x32xf32>
    %404 = vector.extract_strided_slice %401 {offsets = [0, 64], sizes = [8, 32], strides = [1, 1]} : vector<8x128xf32> to vector<8x32xf32>
    %405 = vector.extract_strided_slice %400 {offsets = [0, 96], sizes = [8, 32], strides = [1, 1]} : vector<8x128xf32> to vector<8x32xf32>
    %406 = arith.mulf %403, %332 : vector<8x32xf32>
    %407 = arith.mulf %402, %404 : vector<8x32xf32>
    %408 = arith.addf %406, %407 : vector<8x32xf32>
    %409 = math.tanh %408 : vector<8x32xf32>
    %410 = arith.mulf %405, %409 : vector<8x32xf32>
    %411 = tpu.concatenate %334, %353 in 1 : vector<8x32xf32>, vector<8x32xf32> -> vector<8x64xf32>
    %cst_101 = arith.constant dense<0.000000e+00> : vector<8x128xf32>
    %412 = tpu.matmul %411, %10, %cst_101 {dimension_numbers = #tpu.dot_dimension_numbers<[1], [0], [0], [1], [0, 0, 1, 1], [], []>} : vector<8x64xf32>, vector<64x128xf32>, vector<8x128xf32> -> vector<8x128xf32>
    %413 = vector.broadcast %13 : vector<1x128xf32> to vector<8x128xf32>
    %414 = arith.addf %412, %413 : vector<8x128xf32>
    %415 = arith.negf %414 : vector<8x128xf32>
    %416 = math.exp %415 : vector<8x128xf32>
    %cst_102 = arith.constant 1.000000e+00 : f32
    %417 = vector.broadcast %cst_102 : f32 to vector<8x128xf32>
    %418 = arith.addf %417, %416 : vector<8x128xf32>
    %419 = arith.divf %417, %418 : vector<8x128xf32>
    %420 = math.tanh %414 : vector<8x128xf32>
    %421 = vector.extract_strided_slice %419 {offsets = [0, 0], sizes = [8, 32], strides = [1, 1]} : vector<8x128xf32> to vector<8x32xf32>
    %422 = vector.extract_strided_slice %419 {offsets = [0, 32], sizes = [8, 32], strides = [1, 1]} : vector<8x128xf32> to vector<8x32xf32>
    %423 = vector.extract_strided_slice %420 {offsets = [0, 64], sizes = [8, 32], strides = [1, 1]} : vector<8x128xf32> to vector<8x32xf32>
    %424 = vector.extract_strided_slice %419 {offsets = [0, 96], sizes = [8, 32], strides = [1, 1]} : vector<8x128xf32> to vector<8x32xf32>
    %425 = arith.mulf %422, %351 : vector<8x32xf32>
    %426 = arith.mulf %421, %423 : vector<8x32xf32>
    %427 = arith.addf %425, %426 : vector<8x32xf32>
    %428 = math.tanh %427 : vector<8x32xf32>
    %429 = arith.mulf %424, %428 : vector<8x32xf32>
    %430 = tpu.concatenate %353, %372 in 1 : vector<8x32xf32>, vector<8x32xf32> -> vector<8x64xf32>
    %cst_103 = arith.constant dense<0.000000e+00> : vector<8x128xf32>
    %431 = tpu.matmul %430, %11, %cst_103 {dimension_numbers = #tpu.dot_dimension_numbers<[1], [0], [0], [1], [0, 0, 1, 1], [], []>} : vector<8x64xf32>, vector<64x128xf32>, vector<8x128xf32> -> vector<8x128xf32>
    %432 = vector.broadcast %14 : vector<1x128xf32> to vector<8x128xf32>
    %433 = arith.addf %431, %432 : vector<8x128xf32>
    %434 = arith.negf %433 : vector<8x128xf32>
    %435 = math.exp %434 : vector<8x128xf32>
    %cst_104 = arith.constant 1.000000e+00 : f32
    %436 = vector.broadcast %cst_104 : f32 to vector<8x128xf32>
    %437 = arith.addf %436, %435 : vector<8x128xf32>
    %438 = arith.divf %436, %437 : vector<8x128xf32>
    %439 = math.tanh %433 : vector<8x128xf32>
    %440 = vector.extract_strided_slice %438 {offsets = [0, 0], sizes = [8, 32], strides = [1, 1]} : vector<8x128xf32> to vector<8x32xf32>
    %441 = vector.extract_strided_slice %438 {offsets = [0, 32], sizes = [8, 32], strides = [1, 1]} : vector<8x128xf32> to vector<8x32xf32>
    %442 = vector.extract_strided_slice %439 {offsets = [0, 64], sizes = [8, 32], strides = [1, 1]} : vector<8x128xf32> to vector<8x32xf32>
    %443 = vector.extract_strided_slice %438 {offsets = [0, 96], sizes = [8, 32], strides = [1, 1]} : vector<8x128xf32> to vector<8x32xf32>
    %444 = arith.mulf %441, %370 : vector<8x32xf32>
    %445 = arith.mulf %440, %442 : vector<8x32xf32>
    %446 = arith.addf %444, %445 : vector<8x32xf32>
    %447 = math.tanh %446 : vector<8x32xf32>
    %448 = arith.mulf %443, %447 : vector<8x32xf32>
    %c7 = arith.constant 7 : index
    %c0_105 = arith.constant 0 : index
    %c0_106 = arith.constant 0 : index
    %449 = vector.load %arg17[%c7, %c0_105, %c0_106] : memref<8x8x128xf32, #tpu.memory_space<vmem>>, vector<1x8x128xf32>
    %450 = vector.shape_cast %449 : vector<1x8x128xf32> to vector<8x128xf32>
    %cst_107 = arith.constant dense<0.000000e+00> : vector<8x128xf32>
    %451 = tpu.matmul %391, %8, %cst_107 {dimension_numbers = #tpu.dot_dimension_numbers<[1], [0], [0], [1], [0, 0, 1, 1], [], []>} : vector<8x32xf32>, vector<32x128xf32>, vector<8x128xf32> -> vector<8x128xf32>
    %452 = arith.addf %450, %451 : vector<8x128xf32>
    %453 = arith.negf %452 : vector<8x128xf32>
    %454 = math.exp %453 : vector<8x128xf32>
    %cst_108 = arith.constant 1.000000e+00 : f32
    %455 = vector.broadcast %cst_108 : f32 to vector<8x128xf32>
    %456 = arith.addf %455, %454 : vector<8x128xf32>
    %457 = arith.divf %455, %456 : vector<8x128xf32>
    %458 = math.tanh %452 : vector<8x128xf32>
    %459 = vector.extract_strided_slice %457 {offsets = [0, 0], sizes = [8, 32], strides = [1, 1]} : vector<8x128xf32> to vector<8x32xf32>
    %460 = vector.extract_strided_slice %457 {offsets = [0, 32], sizes = [8, 32], strides = [1, 1]} : vector<8x128xf32> to vector<8x32xf32>
    %461 = vector.extract_strided_slice %458 {offsets = [0, 64], sizes = [8, 32], strides = [1, 1]} : vector<8x128xf32> to vector<8x32xf32>
    %462 = vector.extract_strided_slice %457 {offsets = [0, 96], sizes = [8, 32], strides = [1, 1]} : vector<8x128xf32> to vector<8x32xf32>
    %463 = arith.mulf %460, %389 : vector<8x32xf32>
    %464 = arith.mulf %459, %461 : vector<8x32xf32>
    %465 = arith.addf %463, %464 : vector<8x32xf32>
    %466 = math.tanh %465 : vector<8x32xf32>
    %467 = arith.mulf %462, %466 : vector<8x32xf32>
    %468 = tpu.concatenate %391, %410 in 1 : vector<8x32xf32>, vector<8x32xf32> -> vector<8x64xf32>
    %cst_109 = arith.constant dense<0.000000e+00> : vector<8x128xf32>
    %469 = tpu.matmul %468, %9, %cst_109 {dimension_numbers = #tpu.dot_dimension_numbers<[1], [0], [0], [1], [0, 0, 1, 1], [], []>} : vector<8x64xf32>, vector<64x128xf32>, vector<8x128xf32> -> vector<8x128xf32>
    %470 = vector.broadcast %12 : vector<1x128xf32> to vector<8x128xf32>
    %471 = arith.addf %469, %470 : vector<8x128xf32>
    %472 = arith.negf %471 : vector<8x128xf32>
    %473 = math.exp %472 : vector<8x128xf32>
    %cst_110 = arith.constant 1.000000e+00 : f32
    %474 = vector.broadcast %cst_110 : f32 to vector<8x128xf32>
    %475 = arith.addf %474, %473 : vector<8x128xf32>
    %476 = arith.divf %474, %475 : vector<8x128xf32>
    %477 = math.tanh %471 : vector<8x128xf32>
    %478 = vector.extract_strided_slice %476 {offsets = [0, 0], sizes = [8, 32], strides = [1, 1]} : vector<8x128xf32> to vector<8x32xf32>
    %479 = vector.extract_strided_slice %476 {offsets = [0, 32], sizes = [8, 32], strides = [1, 1]} : vector<8x128xf32> to vector<8x32xf32>
    %480 = vector.extract_strided_slice %477 {offsets = [0, 64], sizes = [8, 32], strides = [1, 1]} : vector<8x128xf32> to vector<8x32xf32>
    %481 = vector.extract_strided_slice %476 {offsets = [0, 96], sizes = [8, 32], strides = [1, 1]} : vector<8x128xf32> to vector<8x32xf32>
    %482 = arith.mulf %479, %408 : vector<8x32xf32>
    %483 = arith.mulf %478, %480 : vector<8x32xf32>
    %484 = arith.addf %482, %483 : vector<8x32xf32>
    %485 = math.tanh %484 : vector<8x32xf32>
    %486 = arith.mulf %481, %485 : vector<8x32xf32>
    %487 = tpu.concatenate %410, %429 in 1 : vector<8x32xf32>, vector<8x32xf32> -> vector<8x64xf32>
    %cst_111 = arith.constant dense<0.000000e+00> : vector<8x128xf32>
    %488 = tpu.matmul %487, %10, %cst_111 {dimension_numbers = #tpu.dot_dimension_numbers<[1], [0], [0], [1], [0, 0, 1, 1], [], []>} : vector<8x64xf32>, vector<64x128xf32>, vector<8x128xf32> -> vector<8x128xf32>
    %489 = vector.broadcast %13 : vector<1x128xf32> to vector<8x128xf32>
    %490 = arith.addf %488, %489 : vector<8x128xf32>
    %491 = arith.negf %490 : vector<8x128xf32>
    %492 = math.exp %491 : vector<8x128xf32>
    %cst_112 = arith.constant 1.000000e+00 : f32
    %493 = vector.broadcast %cst_112 : f32 to vector<8x128xf32>
    %494 = arith.addf %493, %492 : vector<8x128xf32>
    %495 = arith.divf %493, %494 : vector<8x128xf32>
    %496 = math.tanh %490 : vector<8x128xf32>
    %497 = vector.extract_strided_slice %495 {offsets = [0, 0], sizes = [8, 32], strides = [1, 1]} : vector<8x128xf32> to vector<8x32xf32>
    %498 = vector.extract_strided_slice %495 {offsets = [0, 32], sizes = [8, 32], strides = [1, 1]} : vector<8x128xf32> to vector<8x32xf32>
    %499 = vector.extract_strided_slice %496 {offsets = [0, 64], sizes = [8, 32], strides = [1, 1]} : vector<8x128xf32> to vector<8x32xf32>
    %500 = vector.extract_strided_slice %495 {offsets = [0, 96], sizes = [8, 32], strides = [1, 1]} : vector<8x128xf32> to vector<8x32xf32>
    %501 = arith.mulf %498, %427 : vector<8x32xf32>
    %502 = arith.mulf %497, %499 : vector<8x32xf32>
    %503 = arith.addf %501, %502 : vector<8x32xf32>
    %504 = math.tanh %503 : vector<8x32xf32>
    %505 = arith.mulf %500, %504 : vector<8x32xf32>
    %506 = tpu.concatenate %429, %448 in 1 : vector<8x32xf32>, vector<8x32xf32> -> vector<8x64xf32>
    %cst_113 = arith.constant dense<0.000000e+00> : vector<8x128xf32>
    %507 = tpu.matmul %506, %11, %cst_113 {dimension_numbers = #tpu.dot_dimension_numbers<[1], [0], [0], [1], [0, 0, 1, 1], [], []>} : vector<8x64xf32>, vector<64x128xf32>, vector<8x128xf32> -> vector<8x128xf32>
    %508 = vector.broadcast %14 : vector<1x128xf32> to vector<8x128xf32>
    %509 = arith.addf %507, %508 : vector<8x128xf32>
    %510 = arith.negf %509 : vector<8x128xf32>
    %511 = math.exp %510 : vector<8x128xf32>
    %cst_114 = arith.constant 1.000000e+00 : f32
    %512 = vector.broadcast %cst_114 : f32 to vector<8x128xf32>
    %513 = arith.addf %512, %511 : vector<8x128xf32>
    %514 = arith.divf %512, %513 : vector<8x128xf32>
    %515 = math.tanh %509 : vector<8x128xf32>
    %516 = vector.extract_strided_slice %514 {offsets = [0, 0], sizes = [8, 32], strides = [1, 1]} : vector<8x128xf32> to vector<8x32xf32>
    %517 = vector.extract_strided_slice %514 {offsets = [0, 32], sizes = [8, 32], strides = [1, 1]} : vector<8x128xf32> to vector<8x32xf32>
    %518 = vector.extract_strided_slice %515 {offsets = [0, 64], sizes = [8, 32], strides = [1, 1]} : vector<8x128xf32> to vector<8x32xf32>
    %519 = vector.extract_strided_slice %514 {offsets = [0, 96], sizes = [8, 32], strides = [1, 1]} : vector<8x128xf32> to vector<8x32xf32>
    %520 = arith.mulf %517, %446 : vector<8x32xf32>
    %521 = arith.mulf %516, %518 : vector<8x32xf32>
    %522 = arith.addf %520, %521 : vector<8x32xf32>
    %523 = math.tanh %522 : vector<8x32xf32>
    %524 = arith.mulf %519, %523 : vector<8x32xf32>
    %525 = tpu.concatenate %467, %486 in 1 : vector<8x32xf32>, vector<8x32xf32> -> vector<8x64xf32>
    %cst_115 = arith.constant dense<0.000000e+00> : vector<8x128xf32>
    %526 = tpu.matmul %525, %9, %cst_115 {dimension_numbers = #tpu.dot_dimension_numbers<[1], [0], [0], [1], [0, 0, 1, 1], [], []>} : vector<8x64xf32>, vector<64x128xf32>, vector<8x128xf32> -> vector<8x128xf32>
    %527 = vector.broadcast %12 : vector<1x128xf32> to vector<8x128xf32>
    %528 = arith.addf %526, %527 : vector<8x128xf32>
    %529 = arith.negf %528 : vector<8x128xf32>
    %530 = math.exp %529 : vector<8x128xf32>
    %cst_116 = arith.constant 1.000000e+00 : f32
    %531 = vector.broadcast %cst_116 : f32 to vector<8x128xf32>
    %532 = arith.addf %531, %530 : vector<8x128xf32>
    %533 = arith.divf %531, %532 : vector<8x128xf32>
    %534 = math.tanh %528 : vector<8x128xf32>
    %535 = vector.extract_strided_slice %533 {offsets = [0, 0], sizes = [8, 32], strides = [1, 1]} : vector<8x128xf32> to vector<8x32xf32>
    %536 = vector.extract_strided_slice %533 {offsets = [0, 32], sizes = [8, 32], strides = [1, 1]} : vector<8x128xf32> to vector<8x32xf32>
    %537 = vector.extract_strided_slice %534 {offsets = [0, 64], sizes = [8, 32], strides = [1, 1]} : vector<8x128xf32> to vector<8x32xf32>
    %538 = vector.extract_strided_slice %533 {offsets = [0, 96], sizes = [8, 32], strides = [1, 1]} : vector<8x128xf32> to vector<8x32xf32>
    %539 = arith.mulf %536, %484 : vector<8x32xf32>
    %540 = arith.mulf %535, %537 : vector<8x32xf32>
    %541 = arith.addf %539, %540 : vector<8x32xf32>
    %542 = math.tanh %541 : vector<8x32xf32>
    %543 = arith.mulf %538, %542 : vector<8x32xf32>
    %544 = tpu.concatenate %486, %505 in 1 : vector<8x32xf32>, vector<8x32xf32> -> vector<8x64xf32>
    %cst_117 = arith.constant dense<0.000000e+00> : vector<8x128xf32>
    %545 = tpu.matmul %544, %10, %cst_117 {dimension_numbers = #tpu.dot_dimension_numbers<[1], [0], [0], [1], [0, 0, 1, 1], [], []>} : vector<8x64xf32>, vector<64x128xf32>, vector<8x128xf32> -> vector<8x128xf32>
    %546 = vector.broadcast %13 : vector<1x128xf32> to vector<8x128xf32>
    %547 = arith.addf %545, %546 : vector<8x128xf32>
    %548 = arith.negf %547 : vector<8x128xf32>
    %549 = math.exp %548 : vector<8x128xf32>
    %cst_118 = arith.constant 1.000000e+00 : f32
    %550 = vector.broadcast %cst_118 : f32 to vector<8x128xf32>
    %551 = arith.addf %550, %549 : vector<8x128xf32>
    %552 = arith.divf %550, %551 : vector<8x128xf32>
    %553 = math.tanh %547 : vector<8x128xf32>
    %554 = vector.extract_strided_slice %552 {offsets = [0, 0], sizes = [8, 32], strides = [1, 1]} : vector<8x128xf32> to vector<8x32xf32>
    %555 = vector.extract_strided_slice %552 {offsets = [0, 32], sizes = [8, 32], strides = [1, 1]} : vector<8x128xf32> to vector<8x32xf32>
    %556 = vector.extract_strided_slice %553 {offsets = [0, 64], sizes = [8, 32], strides = [1, 1]} : vector<8x128xf32> to vector<8x32xf32>
    %557 = vector.extract_strided_slice %552 {offsets = [0, 96], sizes = [8, 32], strides = [1, 1]} : vector<8x128xf32> to vector<8x32xf32>
    %558 = arith.mulf %555, %503 : vector<8x32xf32>
    %559 = arith.mulf %554, %556 : vector<8x32xf32>
    %560 = arith.addf %558, %559 : vector<8x32xf32>
    %561 = math.tanh %560 : vector<8x32xf32>
    %562 = arith.mulf %557, %561 : vector<8x32xf32>
    %563 = tpu.concatenate %505, %524 in 1 : vector<8x32xf32>, vector<8x32xf32> -> vector<8x64xf32>
    %cst_119 = arith.constant dense<0.000000e+00> : vector<8x128xf32>
    %564 = tpu.matmul %563, %11, %cst_119 {dimension_numbers = #tpu.dot_dimension_numbers<[1], [0], [0], [1], [0, 0, 1, 1], [], []>} : vector<8x64xf32>, vector<64x128xf32>, vector<8x128xf32> -> vector<8x128xf32>
    %565 = vector.broadcast %14 : vector<1x128xf32> to vector<8x128xf32>
    %566 = arith.addf %564, %565 : vector<8x128xf32>
    %567 = arith.negf %566 : vector<8x128xf32>
    %568 = math.exp %567 : vector<8x128xf32>
    %cst_120 = arith.constant 1.000000e+00 : f32
    %569 = vector.broadcast %cst_120 : f32 to vector<8x128xf32>
    %570 = arith.addf %569, %568 : vector<8x128xf32>
    %571 = arith.divf %569, %570 : vector<8x128xf32>
    %572 = math.tanh %566 : vector<8x128xf32>
    %573 = vector.extract_strided_slice %571 {offsets = [0, 0], sizes = [8, 32], strides = [1, 1]} : vector<8x128xf32> to vector<8x32xf32>
    %574 = vector.extract_strided_slice %571 {offsets = [0, 32], sizes = [8, 32], strides = [1, 1]} : vector<8x128xf32> to vector<8x32xf32>
    %575 = vector.extract_strided_slice %572 {offsets = [0, 64], sizes = [8, 32], strides = [1, 1]} : vector<8x128xf32> to vector<8x32xf32>
    %576 = vector.extract_strided_slice %571 {offsets = [0, 96], sizes = [8, 32], strides = [1, 1]} : vector<8x128xf32> to vector<8x32xf32>
    %577 = arith.mulf %574, %522 : vector<8x32xf32>
    %578 = arith.mulf %573, %575 : vector<8x32xf32>
    %579 = arith.addf %577, %578 : vector<8x32xf32>
    %580 = math.tanh %579 : vector<8x32xf32>
    %581 = arith.mulf %576, %580 : vector<8x32xf32>
    %582 = tpu.concatenate %543, %562 in 1 : vector<8x32xf32>, vector<8x32xf32> -> vector<8x64xf32>
    %cst_121 = arith.constant dense<0.000000e+00> : vector<8x128xf32>
    %583 = tpu.matmul %582, %10, %cst_121 {dimension_numbers = #tpu.dot_dimension_numbers<[1], [0], [0], [1], [0, 0, 1, 1], [], []>} : vector<8x64xf32>, vector<64x128xf32>, vector<8x128xf32> -> vector<8x128xf32>
    %584 = vector.broadcast %13 : vector<1x128xf32> to vector<8x128xf32>
    %585 = arith.addf %583, %584 : vector<8x128xf32>
    %586 = arith.negf %585 : vector<8x128xf32>
    %587 = math.exp %586 : vector<8x128xf32>
    %cst_122 = arith.constant 1.000000e+00 : f32
    %588 = vector.broadcast %cst_122 : f32 to vector<8x128xf32>
    %589 = arith.addf %588, %587 : vector<8x128xf32>
    %590 = arith.divf %588, %589 : vector<8x128xf32>
    %591 = math.tanh %585 : vector<8x128xf32>
    %592 = vector.extract_strided_slice %590 {offsets = [0, 0], sizes = [8, 32], strides = [1, 1]} : vector<8x128xf32> to vector<8x32xf32>
    %593 = vector.extract_strided_slice %590 {offsets = [0, 32], sizes = [8, 32], strides = [1, 1]} : vector<8x128xf32> to vector<8x32xf32>
    %594 = vector.extract_strided_slice %591 {offsets = [0, 64], sizes = [8, 32], strides = [1, 1]} : vector<8x128xf32> to vector<8x32xf32>
    %595 = vector.extract_strided_slice %590 {offsets = [0, 96], sizes = [8, 32], strides = [1, 1]} : vector<8x128xf32> to vector<8x32xf32>
    %596 = arith.mulf %593, %560 : vector<8x32xf32>
    %597 = arith.mulf %592, %594 : vector<8x32xf32>
    %598 = arith.addf %596, %597 : vector<8x32xf32>
    %599 = math.tanh %598 : vector<8x32xf32>
    %600 = arith.mulf %595, %599 : vector<8x32xf32>
    %601 = tpu.concatenate %562, %581 in 1 : vector<8x32xf32>, vector<8x32xf32> -> vector<8x64xf32>
    %cst_123 = arith.constant dense<0.000000e+00> : vector<8x128xf32>
    %602 = tpu.matmul %601, %11, %cst_123 {dimension_numbers = #tpu.dot_dimension_numbers<[1], [0], [0], [1], [0, 0, 1, 1], [], []>} : vector<8x64xf32>, vector<64x128xf32>, vector<8x128xf32> -> vector<8x128xf32>
    %603 = vector.broadcast %14 : vector<1x128xf32> to vector<8x128xf32>
    %604 = arith.addf %602, %603 : vector<8x128xf32>
    %605 = arith.negf %604 : vector<8x128xf32>
    %606 = math.exp %605 : vector<8x128xf32>
    %cst_124 = arith.constant 1.000000e+00 : f32
    %607 = vector.broadcast %cst_124 : f32 to vector<8x128xf32>
    %608 = arith.addf %607, %606 : vector<8x128xf32>
    %609 = arith.divf %607, %608 : vector<8x128xf32>
    %610 = math.tanh %604 : vector<8x128xf32>
    %611 = vector.extract_strided_slice %609 {offsets = [0, 0], sizes = [8, 32], strides = [1, 1]} : vector<8x128xf32> to vector<8x32xf32>
    %612 = vector.extract_strided_slice %609 {offsets = [0, 32], sizes = [8, 32], strides = [1, 1]} : vector<8x128xf32> to vector<8x32xf32>
    %613 = vector.extract_strided_slice %610 {offsets = [0, 64], sizes = [8, 32], strides = [1, 1]} : vector<8x128xf32> to vector<8x32xf32>
    %614 = vector.extract_strided_slice %609 {offsets = [0, 96], sizes = [8, 32], strides = [1, 1]} : vector<8x128xf32> to vector<8x32xf32>
    %615 = arith.mulf %612, %579 : vector<8x32xf32>
    %616 = arith.mulf %611, %613 : vector<8x32xf32>
    %617 = arith.addf %615, %616 : vector<8x32xf32>
    %618 = math.tanh %617 : vector<8x32xf32>
    %619 = arith.mulf %614, %618 : vector<8x32xf32>
    %620 = tpu.concatenate %600, %619 in 1 : vector<8x32xf32>, vector<8x32xf32> -> vector<8x64xf32>
    %cst_125 = arith.constant dense<0.000000e+00> : vector<8x128xf32>
    %621 = tpu.matmul %620, %11, %cst_125 {dimension_numbers = #tpu.dot_dimension_numbers<[1], [0], [0], [1], [0, 0, 1, 1], [], []>} : vector<8x64xf32>, vector<64x128xf32>, vector<8x128xf32> -> vector<8x128xf32>
    %622 = vector.broadcast %14 : vector<1x128xf32> to vector<8x128xf32>
    %623 = arith.addf %621, %622 : vector<8x128xf32>
    %624 = arith.negf %623 : vector<8x128xf32>
    %625 = math.exp %624 : vector<8x128xf32>
    %cst_126 = arith.constant 1.000000e+00 : f32
    %626 = vector.broadcast %cst_126 : f32 to vector<8x128xf32>
    %627 = arith.addf %626, %625 : vector<8x128xf32>
    %628 = arith.divf %626, %627 : vector<8x128xf32>
    %629 = math.tanh %623 : vector<8x128xf32>
    %630 = vector.extract_strided_slice %628 {offsets = [0, 0], sizes = [8, 32], strides = [1, 1]} : vector<8x128xf32> to vector<8x32xf32>
    %631 = vector.extract_strided_slice %628 {offsets = [0, 32], sizes = [8, 32], strides = [1, 1]} : vector<8x128xf32> to vector<8x32xf32>
    %632 = vector.extract_strided_slice %629 {offsets = [0, 64], sizes = [8, 32], strides = [1, 1]} : vector<8x128xf32> to vector<8x32xf32>
    %633 = vector.extract_strided_slice %628 {offsets = [0, 96], sizes = [8, 32], strides = [1, 1]} : vector<8x128xf32> to vector<8x32xf32>
    %634 = arith.mulf %631, %617 : vector<8x32xf32>
    %635 = arith.mulf %630, %632 : vector<8x32xf32>
    %636 = arith.addf %634, %635 : vector<8x32xf32>
    %637 = math.tanh %636 : vector<8x32xf32>
    %638 = arith.mulf %633, %637 : vector<8x32xf32>
    %c0_127 = arith.constant 0 : index
    %c0_128 = arith.constant 0 : index
    %c0_129 = arith.constant 0 : index
    %639 = vector.load %arg15[%c0_127, %c0_128, %c0_129] : memref<4x8x32xf32, #tpu.memory_space<vmem>>, vector<1x8x32xf32>
    %640 = vector.shape_cast %639 : vector<1x8x32xf32> to vector<8x32xf32>
    %641 = vector.shape_cast %467 : vector<8x32xf32> to vector<1x8x32xf32>
    tpu.vector_store %arg15[%c0_127, %c0_128, %c0_129], %641 {strides = array<i32>} : memref<4x8x32xf32, #tpu.memory_space<vmem>>, vector<1x8x32xf32>,
    %c0_130 = arith.constant 0 : index
    %c0_131 = arith.constant 0 : index
    %c0_132 = arith.constant 0 : index
    %642 = vector.load %arg16[%c0_130, %c0_131, %c0_132] : memref<4x8x32xf32, #tpu.memory_space<vmem>>, vector<1x8x32xf32>
    %643 = vector.shape_cast %642 : vector<1x8x32xf32> to vector<8x32xf32>
    %644 = vector.shape_cast %465 : vector<8x32xf32> to vector<1x8x32xf32>
    tpu.vector_store %arg16[%c0_130, %c0_131, %c0_132], %644 {strides = array<i32>} : memref<4x8x32xf32, #tpu.memory_space<vmem>>, vector<1x8x32xf32>,
    %c1_133 = arith.constant 1 : index
    %c0_134 = arith.constant 0 : index
    %c0_135 = arith.constant 0 : index
    %645 = vector.load %arg15[%c1_133, %c0_134, %c0_135] : memref<4x8x32xf32, #tpu.memory_space<vmem>>, vector<1x8x32xf32>
    %646 = vector.shape_cast %645 : vector<1x8x32xf32> to vector<8x32xf32>
    %647 = vector.shape_cast %543 : vector<8x32xf32> to vector<1x8x32xf32>
    tpu.vector_store %arg15[%c1_133, %c0_134, %c0_135], %647 {strides = array<i32>} : memref<4x8x32xf32, #tpu.memory_space<vmem>>, vector<1x8x32xf32>,
    %c1_136 = arith.constant 1 : index
    %c0_137 = arith.constant 0 : index
    %c0_138 = arith.constant 0 : index
    %648 = vector.load %arg16[%c1_136, %c0_137, %c0_138] : memref<4x8x32xf32, #tpu.memory_space<vmem>>, vector<1x8x32xf32>
    %649 = vector.shape_cast %648 : vector<1x8x32xf32> to vector<8x32xf32>
    %650 = vector.shape_cast %541 : vector<8x32xf32> to vector<1x8x32xf32>
    tpu.vector_store %arg16[%c1_136, %c0_137, %c0_138], %650 {strides = array<i32>} : memref<4x8x32xf32, #tpu.memory_space<vmem>>, vector<1x8x32xf32>,
    %c2_139 = arith.constant 2 : index
    %c0_140 = arith.constant 0 : index
    %c0_141 = arith.constant 0 : index
    %651 = vector.load %arg15[%c2_139, %c0_140, %c0_141] : memref<4x8x32xf32, #tpu.memory_space<vmem>>, vector<1x8x32xf32>
    %652 = vector.shape_cast %651 : vector<1x8x32xf32> to vector<8x32xf32>
    %653 = vector.shape_cast %600 : vector<8x32xf32> to vector<1x8x32xf32>
    tpu.vector_store %arg15[%c2_139, %c0_140, %c0_141], %653 {strides = array<i32>} : memref<4x8x32xf32, #tpu.memory_space<vmem>>, vector<1x8x32xf32>,
    %c2_142 = arith.constant 2 : index
    %c0_143 = arith.constant 0 : index
    %c0_144 = arith.constant 0 : index
    %654 = vector.load %arg16[%c2_142, %c0_143, %c0_144] : memref<4x8x32xf32, #tpu.memory_space<vmem>>, vector<1x8x32xf32>
    %655 = vector.shape_cast %654 : vector<1x8x32xf32> to vector<8x32xf32>
    %656 = vector.shape_cast %598 : vector<8x32xf32> to vector<1x8x32xf32>
    tpu.vector_store %arg16[%c2_142, %c0_143, %c0_144], %656 {strides = array<i32>} : memref<4x8x32xf32, #tpu.memory_space<vmem>>, vector<1x8x32xf32>,
    %c3_145 = arith.constant 3 : index
    %c0_146 = arith.constant 0 : index
    %c0_147 = arith.constant 0 : index
    %657 = vector.load %arg15[%c3_145, %c0_146, %c0_147] : memref<4x8x32xf32, #tpu.memory_space<vmem>>, vector<1x8x32xf32>
    %658 = vector.shape_cast %657 : vector<1x8x32xf32> to vector<8x32xf32>
    %659 = vector.shape_cast %638 : vector<8x32xf32> to vector<1x8x32xf32>
    tpu.vector_store %arg15[%c3_145, %c0_146, %c0_147], %659 {strides = array<i32>} : memref<4x8x32xf32, #tpu.memory_space<vmem>>, vector<1x8x32xf32>,
    %c3_148 = arith.constant 3 : index
    %c0_149 = arith.constant 0 : index
    %c0_150 = arith.constant 0 : index
    %660 = vector.load %arg16[%c3_148, %c0_149, %c0_150] : memref<4x8x32xf32, #tpu.memory_space<vmem>>, vector<1x8x32xf32>
    %661 = vector.shape_cast %660 : vector<1x8x32xf32> to vector<8x32xf32>
    %662 = vector.shape_cast %636 : vector<8x32xf32> to vector<1x8x32xf32>
    tpu.vector_store %arg16[%c3_148, %c0_149, %c0_150], %662 {strides = array<i32>} : memref<4x8x32xf32, #tpu.memory_space<vmem>>, vector<1x8x32xf32>,
    %c0_151 = arith.constant 0 : index
    %c0_152 = arith.constant 0 : index
    %663 = vector.load %arg12[%c0_151, %c0_152] : memref<32x1xf32, #tpu.memory_space<vmem>>, vector<32x1xf32>
    %cst_153 = arith.constant dense<0.000000e+00> : vector<8x1xf32>
    %664 = tpu.matmul %638, %663, %cst_153 {dimension_numbers = #tpu.dot_dimension_numbers<[1], [0], [0], [1], [0, 0, 1, 1], [], []>} : vector<8x32xf32>, vector<32x1xf32>, vector<8x1xf32> -> vector<8x1xf32>
    %c0_154 = arith.constant 0 : index
    %c0_155 = arith.constant 0 : index
    %665 = vector.load %arg13[%c0_154, %c0_155] : memref<1x1xf32, #tpu.memory_space<vmem>>, vector<1x1xf32>
    %666 = vector.broadcast %665 : vector<1x1xf32> to vector<8x1xf32>
    %667 = arith.addf %664, %666 : vector<8x1xf32>
    %c0_156 = arith.constant 0 : index
    %c0_157 = arith.constant 0 : index
    %668 = vector.load %arg14[%c0_156, %c0_157] : memref<8x1xf32, #tpu.memory_space<vmem>>, vector<8x1xf32>
    tpu.vector_store %arg14[%c0_156, %c0_157], %667 {strides = array<i32>} : memref<8x1xf32, #tpu.memory_space<vmem>>, vector<8x1xf32>,
    return
  }
}

</mosaic_0001>

<bundles_post_ra>
// kernel: my_lstm_forward.1
= control target key start
LH: loop header
LB: loop body
LE: loop exit
PB: predicated region body
PF: predicated region fallthrough
CT: control target
= control target key end

     0   :  { %s6352_s0 = inlined_call_operand.vmem [shape: f32[64,16], index: 0, kind: input, shape index: {}]   ;;  %s6353_s1 = inlined_call_operand.vmem [shape: f32[4,8,32], index: 1, kind: input, shape index: {}]   ;;  %s6354_s2 = inlined_call_operand.vmem [shape: f32[4,8,32], index: 2, kind: input, shape index: {}]   ;;  %s6355_s3 = inlined_call_operand.vmem [shape: f32[16,128], index: 3, kind: input, shape index: {}]   ;;  %s6356_s4 = inlined_call_operand.hbm [shape: f32[32,128], index: 4, kind: input, shape index: {}]   ;;  %s6357_s5 = inlined_call_operand.vmem [shape: f32[1,128], index: 5, kind: input, shape index: {}]   ;;  %s6358_s6 = inlined_call_operand.vmem [shape: f32[64,128], index: 6, kind: input, shape index: {}]   ;;  %s6359_s7 = inlined_call_operand.vmem [shape: f32[1,128], index: 7, kind: input, shape index: {}]   ;;  %s6360_s8 = inlined_call_operand.vmem [shape: f32[64,128], index: 8, kind: input, shape index: {}]   ;;  %s6361_s9 = inlined_call_operand.vmem [shape: f32[1,128], index: 9, kind: input, shape index: {}]   ;;  %s6362_s10 = inlined_call_operand.vmem [shape: f32[64,128], index: 10, kind: input, shape index: {}]   ;;  %s6363_s11 = inlined_call_operand.vmem [shape: f32[1,128], index: 11, kind: input, shape index: {}]   ;;  %s6364_s12 = inlined_call_operand.vmem [shape: f32[32,1], index: 12, kind: input, shape index: {}]   ;;  %s6365_s13 = inlined_call_operand.<no memory space> [shape: f32[1,1], index: 13, kind: input, shape index: {}]   ;;  %s6366_s14 = inlined_call_operand.vmem [shape: f32[8,1], index: 14, kind: output, shape index: {0}]   ;;  %s6367_s15 = inlined_call_operand.vmem [shape: f32[4,8,32], index: 15, kind: output, shape index: {1}]   ;;  %s6368_s16 = inlined_call_operand.vmem [shape: f32[4,8,32], index: 16, kind: output, shape index: {2}]  }
   0x1   :  { %6370 = sst [smem:[#allocation7_spill]] %s6352_s0  ;;  %v22_v0 = vstv %s6365_s13 }
   0x2   :  { %23 = vst [vmem:[#allocation3] sm:$0x1] %v22_v0 }
   0x3   :  { %24 = vsyncpa [#allocation5], 0  ;;  %s5327_s23 = smov [#allocation4]   ;;  %s5303_s27 = scalar_lea.hbm %s6356_s4, 512 }
   0x4   :  { %s38_s24 = sshll.u32 %s5327_s23, 4  ;;  %p5304_p0 = scmp.ne.s32.totalorder %s6356_s4, %s5303_s27  ;;  %s39_s24 = int_to_ptr.vmem [resolvable:$true] %s38_s24 }
   0x5   :  { %p5307_p1 = scmp.lt.u32.totalorder %s5303_s27, %s6356_s4 }
   0x7   :  { %p5309_p2 = pnand %p5307_p1, %p5304_p0 }
   0x9   :  { %5312 = shalt.err (!%p5309_p2)
}
   0xa   :  { %s5313_s13 = scalar_lea.vmem %s39_s24, 512  ;;  %p5318_p4 = scmp.lt.s32.totalorder %s39_s24, %s39_s24 }
   0xb   :  { %p5314_p3 = scmp.ne.s32.totalorder %s39_s24, %s5313_s13  ;;  %p5319_p5 = scmp.lt.s32.totalorder %s5313_s13, %s5313_s13 }
   0xd   :  { %p5320_p6 = por %p5319_p5, %p5318_p4 }
   0xf   :  { %p5321_p7 = pnand %p5320_p6, %p5314_p3 }
  0x11   :  { %5324 = shalt.err (!%p5321_p7)
}
  0x12   :  { %s5328_s17 = smov 128   ;;  %s5329_s18 = smov 8  }
  0x13   :  { %44 = dma.hbm_to_vmem [thread:$0]  %s6356_s4, 512, %s39_s24, [#allocation5], %s5328_s17, %s5328_s17, %s5329_s18  }
  0x14   :  { %5325 = dma.done.wait [#allocation5], 512  }
  0x15   :  { %5326 = vsyncadd [#allocation5], 4294966784  ;;  %v5330_v1 = vmov 0.0|0.0   ;;  %vm5331_vm0 = vmmov 0   ;;  %v5332_v2 = vmov 0.0   ;;  %vm83_vm1 = vcmask 130048  }
  0x16   :  { %4692 = vmatprep.subr.bf16.mxu1 %v5330_v1  ;;  %4141 = vmatprep.mubr.msk.f32.mxu1 %vm5331_vm0, %v5332_v2  ;;  %v74_v3 = vld [vmem:[%s6355_s3] sm:$0xff]  ;;  %v75_v4 = vld [vmem:[%s6355_s3 + $0x8] sm:$0xff]  ;;  %s6371_s26 = sld [smem:[#allocation7_spill]]  ;;  %v223_v10 = vld [vmem:[#allocation4 + $0x10] sm:$0xff]  ;;  %vm267_vm2 = vcmask 261120   ;;  %s5333_s13 = smov 64  }
  0x17   :  { %v221_v5 = vld [vmem:[#allocation4] sm:$0xff]  ;;  %v4688_v6 = vpack.c.bf16 %v75_v4, %v74_v3  ;;  %v222_v7 = vld [vmem:[#allocation4 + $0x8] sm:$0xff]  ;;  %v224_v11 = vld [vmem:[#allocation4 + $0x18] sm:$0xff]  ;;  %s5334_s19 = smov 32   ;;  %vm484_vm3 = vcmask 523264   ;;  %s5335_s4 = smov 96  }
  0x18   :  { %v5448_v9 = vpack.c.bf16 %v222_v7, %v221_v5  ;;  %v5455_v13 = vpack.c.bf16 %v224_v11, %v223_v10  ;;  %v252_v14 = vld [vmem:[%s6353_s1] sm:$0xff]  ;;  %v226_v35 = vld [vmem:[%s6358_s6 + $0x8] sm:$0xff]  ;;  %v227_v39 = vld [vmem:[%s6358_s6 + $0x10] sm:$0xff]  ;;  %vm3741_vm4 = vcmask 7168  }
  0x19   :  { %4689 = vmatprep.subr.bf16.mxu0 %v4688_v6  ;;  %v5475_v15 = vld [vmem:[%s6357_s5] ss:$0 sm:$0xff]  ;;  %v228_v40 = vld [vmem:[%s6358_s6 + $0x18] sm:$0xff]  ;;  %v230_v45 = vld [vmem:[%s6358_s6 + $0x28] sm:$0xff] }
  0x1a   :  { %4694 = vmatpush3.bf16.msra.mxu1 %v5448_v9  ;;  %4691 = vmatpush3.bf16.msra.mxu0 %v4688_v6  ;;  %v259_v23 = vld [vmem:[%s6354_s2] sm:$0xff]  ;;  %v5515_v42 = vpack.c.bf16 %v228_v40, %v227_v39  ;;  %v231_v49 = vld [vmem:[%s6358_s6 + $0x30] sm:$0xff]  ;;  %v232_v50 = vld [vmem:[%s6358_s6 + $0x38] sm:$0xff] }
  0x1b   :  { %4695 = vmatprep.subr.bf16.mxu1 %v5330_v1  ;;  %4704 = vmatprep.subr.bf16.mxu0 %v5330_v1  ;;  %v225_v34 = vld [vmem:[%s6358_s6] sm:$0xff]  ;;  %v5549_v52 = vpack.c.bf16 %v232_v50, %v231_v49  ;;  %v3765_v53 = vld [vmem:[%s6353_s1 + $0x8] sm:$0xff]  ;;  %v235_v49 = vld [vmem:[%s6360_s8 + $0x10] sm:$0xff] }
  0x1c   :  { %v66_v8 = vld [vmem:[%s6371_s26] sm:$0xff]  ;;  %v67_v12 = vld [vmem:[%s6371_s26 + $0x8] sm:$0xff]  ;;  %v68_v36 = vld [vmem:[%s6371_s26 + $0x10] sm:$0xff]  ;;  %v5498_v37 = vpack.c.bf16 %v226_v35, %v225_v34 }
  0x1d   :  { %4121 = vmatprep.mubr.msk.f32.mxu0 %vm83_vm1, %v66_v8  ;;  %v69_v38 = vld [vmem:[%s6371_s26 + $0x18] sm:$0xff]  ;;  %v70_v41 = vld [vmem:[%s6371_s26 + $0x20] sm:$0xff]  ;;  %v71_v43 = vld [vmem:[%s6371_s26 + $0x28] sm:$0xff] }
  0x1e   :  { %4122 = vmatmul.mubr.msk.f32.vlgmr.msra.gmra.mrb[0].mxu0 %vm83_vm1, %v67_v12  ;;  %4697 = vmatpush3.bf16.msra.mxu1 %v5455_v13  ;;  %v229_v44 = vld [vmem:[%s6358_s6 + $0x20] sm:$0xff]  ;;  %v72_v46 = vld [vmem:[%s6371_s26 + $0x30] sm:$0xff]  ;;  %v73_v48 = vld [vmem:[%s6371_s26 + $0x38] sm:$0xff] }
  0x1f   :  { %4698 = vmatprep.subr.bf16.mxu1 %v5330_v1  ;;  %4124 = vmatprep.mubr.msk.f32.mxu0 %vm83_vm1, %v68_v36  ;;  %v5533_v47 = vpack.c.bf16 %v230_v45, %v229_v44  ;;  %v5597_v4 = vld [vmem:[%s6359_s7] ss:$0 sm:$0xff]  ;;  %v3766_v44 = vld [vmem:[%s6353_s1 + $0x10] sm:$0xff]  ;;  %v236_v50 = vld [vmem:[%s6360_s8 + $0x18] sm:$0xff] }
  0x20   :  { %4706 = vmatpush3.bf16.msra.mxu0 %v5498_v37  ;;  %v233_v45 = vld [vmem:[%s6360_s8] sm:$0xff] }
  0x21   :  { %4142 = vmatmul.mubr.msk.f32.vlgmr.msra.gmra.mrb[0].mxu1 %vm267_vm2, %v252_v14  ;;  %4707 = vmatprep.subr.bf16.mxu0 %v5330_v1 }
  0x22   :  { %4700 = vmatpush3.bf16.msra.mxu1 %v5448_v9  ;;  %4152 = vmatprep.mubr.msk.f32.mxu1 %vm5331_vm0, %v5332_v2 }
  0x23   :  { %4701 = vmatprep.subr.bf16.mxu1 %v5330_v1  ;;  %4125 = vmatmul.mubr.msk.f32.gmra.mrb[2].mxu0 %vm83_vm1, %v69_v38 }
  0x24   :  { %4127 = vmatprep.mubr.msk.f32.mxu0 %vm83_vm1, %v70_v41  ;;  %4709 = vmatpush3.bf16.msra.mxu0 %v5515_v42 }
  0x25   :  { %4710 = vmatprep.subr.bf16.mxu0 %v5330_v1 }
  0x26   :  { %4703 = vmatpush3.bf16.msra.mxu1 %v5455_v13 }
  0x27   :  { %4716 = vmatprep.subr.bf16.mxu1 %v5330_v1  ;;  %4128 = vmatmul.mubr.msk.f32.gmra.mrb[4].mxu0 %vm83_vm1, %v71_v43 }
  0x28   :  { %4130 = vmatprep.mubr.msk.f32.mxu0 %vm83_vm1, %v72_v46  ;;  %4712 = vmatpush3.bf16.msra.mxu0 %v5533_v47  ;;  %v234_v46 = vld [vmem:[%s6360_s8 + $0x8] sm:$0xff] }
  0x29   :  { %4713 = vmatprep.subr.bf16.mxu0 %v5330_v1 }
  0x2b   :  { %4131 = vmatmul.mubr.msk.f32.gmra.mrb[6].mxu0 %vm83_vm1, %v73_v48  ;;  %v5630_v48 = vpack.c.bf16 %v234_v46, %v233_v45 }
  0x2c   :  { %4171 = vmatprep.mubr.msk.f32.mxu0 %vm5331_vm0, %v5332_v2  ;;  %4715 = vmatpush3.bf16.msra.mxu0 %v5549_v52 }
  0x2d   :  { %4722 = vmatprep.subr.bf16.mxu0 %v5330_v1 }
  0xf1   :  { %v5477_v16 = vpop.f32.mrb[0].mxu0 }
  0xf2   :  { %v174_v17 = vpop.f32.mrb[1].mxu0  ;;  %v180_v3 = vadd.f32 %v5477_v16, %v5475_v15  ;;  %v3768_v16 = vld [vmem:[%s6354_s2 + $0x8] sm:$0xff] }
  0xf3   :  { %v175_v18 = vadd.f32 %v5475_v15, %v174_v17 }
  0xf4   :  { %v337_v19 = vpop.f32.mrb[0].mxu1 }
  0xf5   :  { %v341_v20 = vadd.f32 %v337_v19, %v175_v18  ;;  %v4143_v21 = vpop.f32.mrb[1].mxu1 }
  0xf6   :  { %v5561_v56 = vpop.f32.mrb[2].mxu0 }
  0xf7   :  { %5043 = vtanh.f32 %v341_v20  ;;  %v3772_v24 = vmul.f32 -1.442695, %v341_v20  ;;  %v5563_v57 = vpop.f32.mrb[3].mxu0 }
  0xf9   :  { %5045 = vpow2.f32 %v3772_v24 }
  0xfa   :  { %v5565_v58 = vpop.f32.mrb[4].mxu0 }
  0xfb   :  { %v5567_v59 = vpop.f32.mrb[5].mxu0 }
  0xfe   :  { %v5569_v60 = vpop.f32.mrb[6].mxu0 }
  0xff   :  { %v5571_v61 = vpop.f32.mrb[7].mxu0 }
 0x101   :  { %v5044_v22 = vpop.eup %5043 }
 0x102   :  { %355 = vrot.lane.b32.xlu0 %v5044_v22, %s5333_s13 }
 0x103   :  { %v5046_v25 = vpop.eup %5045 }
 0x104   :  { %v345_v26 = vadd.f32 1.0, %v5046_v25 }
 0x106   :  { %350 = vrot.lane.b32.xlu0 %v259_v23, %s5334_s19  ;;  %5047 = vrcp.f32 %v345_v26 }
 0x110   :  { %v5048_v27 = vpop.eup %5047 }
 0x174   :  { %v356_v28 = vpop.permute.xlu0 %355 }
 0x175   :  { %v358_v29 = vmul.f32 %v5048_v27, %v356_v28 }
 0x177   :  { %360 = vrot.lane.b32.xlu1 %v358_v29, %s5334_s19 }
 0x178   :  { %v351_v30 = vpop.permute.xlu0 %350 }
 0x179   :  { %v353_v31 = vmul.f32 %v5048_v27, %v351_v30 }
 0x1e9   :  { %v361_v32 = vpop.permute.xlu1 %360 }
 0x1ea   :  { %v5486_v33 = vadd.f32 %v361_v32, %v353_v31 }
 0x1ec   :  { %5049 = vtanh.f32 %v5486_v33 }
 0x1f6   :  { %v5050_v51 = vpop.eup %5049 }
 0x1f7   :  { %366 = vrot.lane.b32.xlu1 %v5050_v51, %s5333_s13 }
 0x1fb   :  { %474 = vrot.lane.b32.xlu1 %v3765_v53, %s5334_s19  ;;  %v5640_v53 = vpack.c.bf16 %v236_v50, %v235_v49 }
 0x269   :  { %v367_v54 = vpop.permute.xlu1 %366 }
 0x26a   :  { %v369_v55 = vmul.f32 %v5048_v27, %v367_v54  ;;  %v237_v54 = vld [vmem:[%s6360_s8 + $0x20] sm:$0xff] }
 0x26c   :  { %373 = vrot.lane.b32.xlu0 %v369_v55, %s5334_s19  ;;  %v238_v55 = vld [vmem:[%s6360_s8 + $0x28] sm:$0xff] }
 0x26d   :  { %v475_v62 = vpop.permute.xlu1 %474 }
 0x2de   :  { %v374_v63 = vpop.permute.xlu0 %373 }
 0x2df   :  { %v477_v0 = vsel %vm267_vm2, %v374_v63, %v475_v62  ;;  %4153 = vmatmul.mubr.msk.f32.vlgmr.msra.gmra.mrb[2].mxu1 %vm267_vm2, %v374_v63 }
 0x2e0   :  { %4172 = vmatmul.mubr.msk.f32.vlgmr.msra.gmra.mrb[8].mxu0 %vm484_vm3, %v477_v0  ;;  %4718 = vmatpush3.bf16.msra.mxu1 %v5448_v9  ;;  %v5654_v0 = vpack.c.bf16 %v238_v55, %v237_v54 }
 0x2e1   :  { %4724 = vmatpush3.bf16.msra.mxu0 %v5498_v37  ;;  %4719 = vmatprep.subr.bf16.mxu1 %v5330_v1 }
 0x2e2   :  { %4725 = vmatprep.subr.bf16.mxu0 %v5330_v1  ;;  %4182 = vmatprep.mubr.msk.f32.mxu1 %vm5331_vm0, %v5332_v2 }
 0x2e3   :  { %4201 = vmatprep.mubr.msk.f32.mxu0 %vm5331_vm0, %v5332_v2 }
 0x2e4   :  { %4721 = vmatpush3.bf16.msra.mxu1 %v5455_v13 }
 0x2e5   :  { %4727 = vmatpush3.bf16.msra.mxu0 %v5515_v42  ;;  %4734 = vmatprep.subr.bf16.mxu1 %v5330_v1 }
 0x2e6   :  { %4728 = vmatprep.subr.bf16.mxu0 %v5330_v1 }
 0x2e9   :  { %4730 = vmatpush3.bf16.msra.mxu0 %v5533_v47 }
 0x2ea   :  { %4731 = vmatprep.subr.bf16.mxu0 %v5330_v1 }
 0x2ed   :  { %4733 = vmatpush3.bf16.msra.mxu0 %v5549_v52 }
 0x2ee   :  { %4746 = vmatprep.subr.bf16.mxu0 %v5330_v1 }
 0x3b2   :  { %v443_v5 = vpop.f32.mrb[2].mxu1 }
 0x3b3   :  { %v447_v6 = vadd.f32 %v443_v5, %v180_v3  ;;  %v4154_v7 = vpop.f32.mrb[3].mxu1  ;;  %v554_v8 = vpop.f32.mrb[8].mxu0  ;;  %v239_v3 = vld [vmem:[%s6360_s8 + $0x30] sm:$0xff]  ;;  %v240_v5 = vld [vmem:[%s6360_s8 + $0x38] sm:$0xff] }
 0x3b4   :  { %v555_v10 = vadd.f32 %v5597_v4, %v554_v8  ;;  %v4173_v11 = vpop.f32.mrb[9].mxu0 }
 0x3b5   :  { %5051 = vtanh.f32 %v447_v6  ;;  %v3774_v17 = vmul.f32 -1.442695, %v447_v6  ;;  %v5668_v6 = vpack.c.bf16 %v240_v5, %v239_v3  ;;  %v185_v11 = vadd.f32 %v5475_v15, %v5563_v57 }
 0x3b6   :  { %5053 = vtanh.f32 %v555_v10  ;;  %v3777_v18 = vmul.f32 -1.442695, %v555_v10 }
 0x3b7   :  { %5055 = vpow2.f32 %v3774_v17 }
 0x3b8   :  { %5057 = vpow2.f32 %v3777_v18 }
 0x3bf   :  { %v5052_v12 = vpop.eup %5051 }
 0x3c0   :  { %v5054_v14 = vpop.eup %5053  ;;  %457 = vrot.lane.b32.xlu0 %v5052_v12, %s5333_s13 }
 0x3c1   :  { %571 = vrot.lane.b32.xlu1 %v5054_v14, %s5333_s13  ;;  %v5056_v19 = vpop.eup %5055 }
 0x3c2   :  { %v451_v20 = vadd.f32 1.0, %v5056_v19  ;;  %v5058_v21 = vpop.eup %5057 }
 0x3c3   :  { %v561_v22 = vadd.f32 1.0, %v5058_v21  ;;  %v5694_v21 = vld [vmem:[%s6361_s9] ss:$0 sm:$0xff] }
 0x3c4   :  { %5059 = vrcp.f32 %v451_v20 }
 0x3c5   :  { %566 = vrot.lane.b32.xlu1 %v3768_v16, %s5334_s19  ;;  %5061 = vrcp.f32 %v561_v22 }
 0x3ce   :  { %v5060_v23 = vpop.eup %5059 }
 0x3cf   :  { %v5062_v27 = vpop.eup %5061  ;;  %v455_v29 = vmul.f32 %v5060_v23, %v5486_v33 }
 0x432   :  { %v458_v24 = vpop.permute.xlu0 %457 }
 0x433   :  { %v460_v25 = vmul.f32 %v5060_v23, %v458_v24  ;;  %v572_v26 = vpop.permute.xlu1 %571 }
 0x434   :  { %v574_v28 = vmul.f32 %v5062_v27, %v572_v26 }
 0x435   :  { %462 = vrot.lane.b32.xlu0 %v460_v25, %s5334_s19 }
 0x437   :  { %v567_v30 = vpop.permute.xlu1 %566 }
 0x438   :  { %v569_v34 = vmul.f32 %v5062_v27, %v567_v30 }
 0x439   :  { %576 = vrot.lane.b32.xlu0 %v574_v28, %s5334_s19 }
 0x4a7   :  { %v463_v31 = vpop.permute.xlu0 %462 }
 0x4a8   :  { %v5609_v32 = vadd.f32 %v463_v31, %v455_v29 }
 0x4aa   :  { %5063 = vtanh.f32 %v5609_v32 }
 0x4ab   :  { %v577_v35 = vpop.permute.xlu0 %576 }
 0x4ac   :  { %v5612_v36 = vadd.f32 %v577_v35, %v569_v34 }
 0x4ae   :  { %5065 = vtanh.f32 %v5612_v36 }
 0x4b4   :  { %v5064_v38 = vpop.eup %5063 }
 0x4b5   :  { %468 = vrot.lane.b32.xlu1 %v5064_v38, %s5333_s13 }
 0x4b8   :  { %v5066_v39 = vpop.eup %5065 }
 0x4b9   :  { %582 = vrot.lane.b32.xlu0 %v5066_v39, %s5333_s13 }
 0x527   :  { %v469_v40 = vpop.permute.xlu1 %468 }
 0x528   :  { %v471_v33 = vmul.f32 %v5060_v23, %v469_v40 }
 0x52a   :  { %589 = vrot.lane.b32.xlu1 %v471_v33, %s5334_s19 }
 0x52b   :  { %v583_v41 = vpop.permute.xlu0 %582 }
 0x52c   :  { %v585_v43 = vmul.f32 %v5062_v27, %v583_v41  ;;  %v3769_v41 = vld [vmem:[%s6354_s2 + $0x10] sm:$0xff] }
 0x52e   :  { %791 = vrot.lane.b32.xlu1 %v585_v43, %s5334_s19  ;;  %690 = vrot.lane.b32.xlu0 %v585_v43, %s5333_s13 }
 0x532   :  { %795 = vrot.lane.b32.xlu0 %v3766_v44, %s5334_s19 }
 0x59c   :  { %v590_v51 = vpop.permute.xlu1 %589 }
 0x59d   :  { %4183 = vmatmul.mubr.msk.f32.vlgmr.msra.gmra.mrb[4].mxu1 %vm267_vm2, %v590_v51 }
 0x59e   :  { %4736 = vmatpush3.bf16.msra.mxu1 %v5630_v48  ;;  %4220 = vmatprep.mubr.msk.f32.mxu1 %vm5331_vm0, %v5332_v2 }
 0x59f   :  { %4737 = vmatprep.subr.bf16.mxu1 %v5330_v1 }
 0x5a0   :  { %v691_v62 = vpop.permute.xlu0 %690  ;;  %v792_v8 = vpop.permute.xlu1 %791 }
 0x5a1   :  { %v693_v63 = vsel %vm267_vm2, %v590_v51, %v691_v62 }
 0x5a2   :  { %4739 = vmatpush3.bf16.msra.mxu1 %v5640_v53  ;;  %4202 = vmatmul.mubr.msk.f32.vlgmr.msra.gmra.mrb[10].mxu0 %vm484_vm3, %v693_v63 }
 0x5a3   :  { %4740 = vmatprep.subr.bf16.mxu1 %v5330_v1  ;;  %4748 = vmatpush3.bf16.msra.mxu0 %v5448_v9 }
 0x5a4   :  { %4749 = vmatprep.subr.bf16.mxu0 %v5330_v1  ;;  %4231 = vmatprep.mubr.msk.f32.mxu0 %vm5331_vm0, %v5332_v2  ;;  %v796_v7 = vpop.permute.xlu0 %795 }
 0x5a5   :  { %v798_v10 = vsel %vm267_vm2, %v792_v8, %v796_v7 }
 0x5a6   :  { %4742 = vmatpush3.bf16.msra.mxu1 %v5654_v0 }
 0x5a7   :  { %4743 = vmatprep.subr.bf16.mxu1 %v5330_v1  ;;  %4751 = vmatpush3.bf16.msra.mxu0 %v5455_v13 }
 0x5a8   :  { %4764 = vmatprep.subr.bf16.mxu0 %v5330_v1 }
 0x5aa   :  { %4745 = vmatpush3.bf16.msra.mxu1 %v5668_v6 }
 0x5ab   :  { %4752 = vmatprep.subr.bf16.mxu1 %v5330_v1 }
 0x5ad   :  { %4221 = vmatmul.mubr.msk.f32.vlgmr.msra.gmra.mrb[6].mxu1 %vm484_vm3, %v798_v10 }
 0x5ae   :  { %4754 = vmatpush3.bf16.msra.mxu1 %v5498_v37  ;;  %4250 = vmatprep.mubr.msk.f32.mxu1 %vm5331_vm0, %v5332_v2 }
 0x5af   :  { %4755 = vmatprep.subr.bf16.mxu1 %v5330_v1 }
 0x5b2   :  { %4757 = vmatpush3.bf16.msra.mxu1 %v5515_v42 }
 0x5b3   :  { %4758 = vmatprep.subr.bf16.mxu1 %v5330_v1 }
 0x5b6   :  { %4760 = vmatpush3.bf16.msra.mxu1 %v5533_v47 }
 0x5b7   :  { %4761 = vmatprep.subr.bf16.mxu1 %v5330_v1 }
 0x5ba   :  { %4763 = vmatpush3.bf16.msra.mxu1 %v5549_v52 }
 0x5bb   :  { %4776 = vmatprep.subr.bf16.mxu1 %v5330_v1 }
 0x670   :  { %v659_v12 = vpop.f32.mrb[4].mxu1 }
 0x671   :  { %v663_v14 = vadd.f32 %v659_v12, %v185_v11  ;;  %v4184_v16 = vpop.f32.mrb[5].mxu1 }
 0x673   :  { %5067 = vtanh.f32 %v663_v14  ;;  %v3779_v26 = vmul.f32 -1.442695, %v663_v14 }
 0x675   :  { %v763_v17 = vpop.f32.mrb[10].mxu0 }
 0x676   :  { %v764_v18 = vadd.f32 %v5597_v4, %v763_v17  ;;  %v4203_v19 = vpop.f32.mrb[11].mxu0 }
 0x678   :  { %5069 = vtanh.f32 %v764_v18  ;;  %v3781_v27 = vmul.f32 -1.442695, %v764_v18 }
 0x67d   :  { %v5068_v20 = vpop.eup %5067 }
 0x67e   :  { %673 = vrot.lane.b32.xlu1 %v5068_v20, %s5333_s13  ;;  %v3767_v20 = vld [vmem:[%s6353_s1 + $0x18] sm:$0xff] }
 0x680   :  { %v874_v22 = vpop.f32.mrb[6].mxu1 }
 0x681   :  { %v875_v57 = vadd.f32 %v5694_v21, %v874_v22  ;;  %v4222_v23 = vpop.f32.mrb[7].mxu1 }
 0x682   :  { %v5070_v24 = vpop.eup %5069  ;;  %v242_v23 = vld [vmem:[%s6362_s10 + $0x8] sm:$0xff] }
 0x683   :  { %5071 = vtanh.f32 %v875_v57  ;;  %776 = vrot.lane.b32.xlu0 %v5070_v24, %s5333_s13  ;;  %v3784_v29 = vmul.f32 -1.442695, %v875_v57  ;;  %v241_v57 = vld [vmem:[%s6362_s10] sm:$0xff] }
 0x684   :  { %5073 = vpow2.f32 %v3779_v26  ;;  %v5740_v24 = vpack.c.bf16 %v242_v23, %v241_v57  ;;  %v243_v26 = vld [vmem:[%s6362_s10 + $0x10] sm:$0xff] }
 0x685   :  { %5075 = vpow2.f32 %v3781_v27  ;;  %v244_v27 = vld [vmem:[%s6362_s10 + $0x18] sm:$0xff] }
 0x686   :  { %5077 = vpow2.f32 %v3784_v29  ;;  %v5753_v29 = vpack.c.bf16 %v244_v27, %v243_v26 }
 0x68d   :  { %v5072_v25 = vpop.eup %5071 }
 0x68e   :  { %891 = vrot.lane.b32.xlu1 %v5072_v25, %s5333_s13  ;;  %v5074_v28 = vpop.eup %5073 }
 0x68f   :  { %v667_v30 = vadd.f32 1.0, %v5074_v28  ;;  %v5076_v31 = vpop.eup %5075 }
 0x690   :  { %v770_v34 = vadd.f32 1.0, %v5076_v31  ;;  %v5078_v35 = vpop.eup %5077  ;;  %v246_v31 = vld [vmem:[%s6362_s10 + $0x28] sm:$0xff] }
 0x691   :  { %5079 = vrcp.f32 %v667_v30  ;;  %v881_v33 = vadd.f32 1.0, %v5078_v35  ;;  %v245_v30 = vld [vmem:[%s6362_s10 + $0x20] sm:$0xff]  ;;  %v247_v35 = vld [vmem:[%s6362_s10 + $0x30] sm:$0xff] }
 0x692   :  { %5081 = vrcp.f32 %v770_v34  ;;  %v5767_v34 = vpack.c.bf16 %v246_v31, %v245_v30 }
 0x693   :  { %5083 = vrcp.f32 %v881_v33 }
 0x69b   :  { %v5080_v38 = vpop.eup %5079 }
 0x69c   :  { %v5082_v43 = vpop.eup %5081  ;;  %v671_v51 = vmul.f32 %v5080_v38, %v5609_v32 }
 0x69d   :  { %v5084_v46 = vpop.eup %5083  ;;  %v774_v62 = vmul.f32 %v5082_v43, %v5612_v36 }
 0x6f0   :  { %v674_v39 = vpop.permute.xlu1 %673 }
 0x6f1   :  { %v676_v40 = vmul.f32 %v5080_v38, %v674_v39 }
 0x6f3   :  { %678 = vrot.lane.b32.xlu0 %v676_v40, %s5334_s19 }
 0x6f5   :  { %v777_v44 = vpop.permute.xlu0 %776 }
 0x6f6   :  { %v779_v45 = vmul.f32 %v5082_v43, %v777_v44 }
 0x6f7   :  { %886 = vrot.lane.b32.xlu0 %v3769_v41, %s5334_s19 }
 0x6f8   :  { %781 = vrot.lane.b32.xlu1 %v779_v45, %s5334_s19 }
 0x700   :  { %v892_v49 = vpop.permute.xlu1 %891 }
 0x701   :  { %v894_v50 = vmul.f32 %v5084_v46, %v892_v49 }
 0x703   :  { %896 = vrot.lane.b32.xlu1 %v894_v50, %s5334_s19 }
 0x765   :  { %v679_v54 = vpop.permute.xlu0 %678 }
 0x766   :  { %v5707_v55 = vadd.f32 %v679_v54, %v671_v51 }
 0x768   :  { %5085 = vtanh.f32 %v5707_v55 }
 0x769   :  { %v887_v5 = vpop.permute.xlu0 %886 }
 0x76a   :  { %v782_v63 = vpop.permute.xlu1 %781  ;;  %v889_v8 = vmul.f32 %v5084_v46, %v887_v5 }
 0x76b   :  { %v5711_v3 = vadd.f32 %v782_v63, %v774_v62 }
 0x76d   :  { %5087 = vtanh.f32 %v5711_v3 }
 0x772   :  { %v5086_v7 = vpop.eup %5085 }
 0x773   :  { %684 = vrot.lane.b32.xlu0 %v5086_v7, %s5333_s13 }
 0x775   :  { %v897_v10 = vpop.permute.xlu1 %896 }
 0x776   :  { %v5715_v11 = vadd.f32 %v897_v10, %v889_v8 }
 0x777   :  { %v5088_v32 = vpop.eup %5087 }
 0x778   :  { %5089 = vtanh.f32 %v5715_v11  ;;  %787 = vrot.lane.b32.xlu1 %v5088_v32, %s5333_s13 }
 0x782   :  { %v5090_v12 = vpop.eup %5089 }
 0x783   :  { %902 = vrot.lane.b32.xlu0 %v5090_v12, %s5333_s13 }
 0x7e5   :  { %v685_v36 = vpop.permute.xlu0 %684 }
 0x7e6   :  { %v687_v14 = vmul.f32 %v5080_v38, %v685_v36  ;;  %v248_v38 = vld [vmem:[%s6362_s10 + $0x38] sm:$0xff] }
 0x7e7   :  { %v5779_v33 = vpack.c.bf16 %v248_v38, %v247_v35  ;;  %v3770_v38 = vld [vmem:[%s6354_s2 + $0x18] sm:$0xff] }
 0x7e8   :  { %909 = vrot.lane.b32.xlu1 %v687_v14, %s5334_s19 }
 0x7ea   :  { %v788_v16 = vpop.permute.xlu1 %787 }
 0x7eb   :  { %v790_v17 = vmul.f32 %v5082_v43, %v788_v16 }
 0x7ed   :  { %1111 = vrot.lane.b32.xlu1 %v790_v17, %s5334_s19  ;;  %1010 = vrot.lane.b32.xlu0 %v790_v17, %s5333_s13 }
 0x7f5   :  { %v903_v18 = vpop.permute.xlu0 %902 }
 0x7f6   :  { %v905_v19 = vmul.f32 %v5084_v46, %v903_v18  ;;  %v190_v46 = vadd.f32 %v5561_v56, %v5475_v15  ;;  %v5813_v56 = vld [vmem:[%s6363_s11] ss:$0 sm:$0xff] }
 0x7f8   :  { %1216 = vrot.lane.b32.xlu1 %v905_v19, %s5334_s19  ;;  %1115 = vrot.lane.b32.xlu0 %v905_v19, %s5333_s13 }
 0x7fc   :  { %1220 = vrot.lane.b32.xlu0 %v3767_v20, %s5334_s19 }
 0x85a   :  { %v910_v22 = vpop.permute.xlu1 %909 }
 0x85b   :  { %4232 = vmatmul.mubr.msk.f32.vlgmr.msra.gmra.mrb[12].mxu0 %vm267_vm2, %v910_v22 }
 0x85c   :  { %4766 = vmatpush3.bf16.msra.mxu0 %v5630_v48  ;;  %4269 = vmatprep.mubr.msk.f32.mxu0 %vm5331_vm0, %v5332_v2 }
 0x85d   :  { %4767 = vmatprep.subr.bf16.mxu0 %v5330_v1 }
 0x85f   :  { %v1011_v25 = vpop.permute.xlu0 %1010  ;;  %v1112_v39 = vpop.permute.xlu1 %1111 }
 0x860   :  { %v1013_v28 = vsel %vm267_vm2, %v910_v22, %v1011_v25  ;;  %4769 = vmatpush3.bf16.msra.mxu0 %v5640_v53 }
 0x861   :  { %4251 = vmatmul.mubr.msk.f32.vlgmr.msra.gmra.mrb[8].mxu1 %vm484_vm3, %v1013_v28  ;;  %4770 = vmatprep.subr.bf16.mxu0 %v5330_v1 }
 0x862   :  { %4778 = vmatpush3.bf16.msra.mxu1 %v5740_v24  ;;  %4288 = vmatprep.mubr.msk.f32.mxu1 %vm5331_vm0, %v5332_v2 }
 0x863   :  { %4779 = vmatprep.subr.bf16.mxu1 %v5330_v1 }
 0x864   :  { %4772 = vmatpush3.bf16.msra.mxu0 %v5654_v0 }
 0x865   :  { %4773 = vmatprep.subr.bf16.mxu0 %v5330_v1 }
 0x866   :  { %4781 = vmatpush3.bf16.msra.mxu1 %v5753_v29 }
 0x867   :  { %4782 = vmatprep.subr.bf16.mxu1 %v5330_v1 }
 0x868   :  { %4775 = vmatpush3.bf16.msra.mxu0 %v5668_v6 }
 0x869   :  { %4788 = vmatprep.subr.bf16.mxu0 %v5330_v1 }
 0x86a   :  { %v1116_v40 = vpop.permute.xlu0 %1115  ;;  %4784 = vmatpush3.bf16.msra.mxu1 %v5767_v34  ;;  %v1217_v43 = vpop.permute.xlu1 %1216 }
 0x86b   :  { %v1118_v41 = vsel %vm267_vm2, %v1112_v39, %v1116_v40  ;;  %4785 = vmatprep.subr.bf16.mxu1 %v5330_v1 }
 0x86c   :  { %4270 = vmatmul.mubr.msk.f32.vlgmr.msra.gmra.mrb[14].mxu0 %vm484_vm3, %v1118_v41 }
 0x86d   :  { %4790 = vmatpush3.bf16.msra.mxu0 %v5448_v9  ;;  %4299 = vmatprep.mubr.msk.f32.mxu0 %vm5331_vm0, %v5332_v2 }
 0x86e   :  { %v1221_v44 = vpop.permute.xlu0 %1220  ;;  %4787 = vmatpush3.bf16.msra.mxu1 %v5779_v33  ;;  %4791 = vmatprep.subr.bf16.mxu0 %v5330_v1 }
 0x86f   :  { %v1223_v45 = vsel %vm267_vm2, %v1217_v43, %v1221_v44  ;;  %4806 = vmatprep.subr.bf16.mxu1 %v5330_v1 }
 0x871   :  { %4289 = vmatmul.mubr.msk.f32.vlgmr.msra.gmra.mrb[10].mxu1 %vm484_vm3, %v1223_v45  ;;  %4793 = vmatpush3.bf16.msra.mxu0 %v5455_v13 }
 0x872   :  { %4794 = vmatprep.subr.bf16.mxu0 %v5330_v1  ;;  %4808 = vmatpush3.bf16.msra.mxu1 %v5630_v48 }
 0x873   :  { %4809 = vmatprep.subr.bf16.mxu1 %v5330_v1  ;;  %4337 = vmatprep.mubr.msk.f32.mxu1 %vm5331_vm0, %v5332_v2 }
 0x876   :  { %4811 = vmatpush3.bf16.msra.mxu1 %v5640_v53 }
 0x877   :  { %4812 = vmatprep.subr.bf16.mxu1 %v5330_v1 }
 0x87a   :  { %4814 = vmatpush3.bf16.msra.mxu1 %v5654_v0 }
 0x87b   :  { %4815 = vmatprep.subr.bf16.mxu1 %v5330_v1 }
 0x87e   :  { %4817 = vmatpush3.bf16.msra.mxu1 %v5668_v6 }
 0x87f   :  { %4830 = vmatprep.subr.bf16.mxu1 %v5330_v1 }
 0x92e   :  { %v979_v49 = vpop.f32.mrb[12].mxu0 }
 0x92f   :  { %v983_v50 = vadd.f32 %v979_v49, %v190_v46  ;;  %v4233_v51 = vpop.f32.mrb[13].mxu0 }
 0x931   :  { %5091 = vtanh.f32 %v983_v50  ;;  %v3786_v18 = vmul.f32 -1.442695, %v983_v50 }
 0x934   :  { %v1083_v54 = vpop.f32.mrb[8].mxu1 }
 0x935   :  { %v1084_v62 = vadd.f32 %v5597_v4, %v1083_v54  ;;  %v4252_v63 = vpop.f32.mrb[9].mxu1 }
 0x937   :  { %5093 = vtanh.f32 %v1084_v62  ;;  %v3788_v19 = vmul.f32 -1.442695, %v1084_v62 }
 0x93b   :  { %v5092_v5 = vpop.eup %5091 }
 0x93c   :  { %993 = vrot.lane.b32.xlu1 %v5092_v5, %s5333_s13 }
 0x93f   :  { %v1188_v7 = vpop.f32.mrb[14].mxu0 }
 0x940   :  { %v1189_v8 = vadd.f32 %v5694_v21, %v1188_v7  ;;  %v4271_v10 = vpop.f32.mrb[15].mxu0 }
 0x941   :  { %v5094_v32 = vpop.eup %5093 }
 0x942   :  { %5095 = vtanh.f32 %v1189_v8  ;;  %1096 = vrot.lane.b32.xlu0 %v5094_v32, %s5333_s13  ;;  %v3790_v57 = vmul.f32 -1.442695, %v1189_v8 }
 0x944   :  { %v1299_v12 = vpop.f32.mrb[10].mxu1 }
 0x945   :  { %v1300_v36 = vadd.f32 %v5813_v56, %v1299_v12  ;;  %v4290_v14 = vpop.f32.mrb[11].mxu1 }
 0x947   :  { %5097 = vtanh.f32 %v1300_v36  ;;  %v3793_v25 = vmul.f32 -1.442695, %v1300_v36 }
 0x948   :  { %5099 = vpow2.f32 %v3786_v18 }
 0x949   :  { %5101 = vpow2.f32 %v3788_v19 }
 0x94c   :  { %v5096_v16 = vpop.eup %5095 }
 0x94d   :  { %1201 = vrot.lane.b32.xlu1 %v5096_v16, %s5333_s13 }
 0x951   :  { %v5098_v17 = vpop.eup %5097 }
 0x952   :  { %1316 = vrot.lane.b32.xlu0 %v5098_v17, %s5333_s13  ;;  %v5100_v20 = vpop.eup %5099 }
 0x953   :  { %v987_v22 = vadd.f32 1.0, %v5100_v20  ;;  %v5102_v23 = vpop.eup %5101 }
 0x954   :  { %v1090_v26 = vadd.f32 1.0, %v5102_v23 }
 0x955   :  { %5103 = vrcp.f32 %v987_v22 }
 0x956   :  { %5105 = vpow2.f32 %v3790_v57 }
 0x957   :  { %5107 = vpow2.f32 %v3793_v25 }
 0x958   :  { %5109 = vrcp.f32 %v1090_v26 }
 0x95f   :  { %v5104_v27 = vpop.eup %5103 }
 0x960   :  { %v5106_v28 = vpop.eup %5105  ;;  %v991_v62 = vmul.f32 %v5104_v27, %v5707_v55 }
 0x961   :  { %v1195_v35 = vadd.f32 1.0, %v5106_v28  ;;  %v5108_v39 = vpop.eup %5107 }
 0x962   :  { %v5110_v40 = vpop.eup %5109  ;;  %v1306_v44 = vadd.f32 1.0, %v5108_v39 }
 0x963   :  { %5111 = vrcp.f32 %v1195_v35  ;;  %v1094_v7 = vmul.f32 %v5110_v40, %v5711_v3 }
 0x964   :  { %5113 = vrcp.f32 %v1306_v44 }
 0x96d   :  { %v5112_v45 = vpop.eup %5111 }
 0x96e   :  { %v5114_v50 = vpop.eup %5113  ;;  %v1199_v12 = vmul.f32 %v5112_v45, %v5715_v11 }
 0x9ae   :  { %v994_v30 = vpop.permute.xlu1 %993 }
 0x9af   :  { %v996_v31 = vmul.f32 %v5104_v27, %v994_v30 }
 0x9b1   :  { %998 = vrot.lane.b32.xlu1 %v996_v31, %s5334_s19 }
 0x9b4   :  { %v1097_v41 = vpop.permute.xlu0 %1096 }
 0x9b5   :  { %v1099_v43 = vmul.f32 %v5110_v40, %v1097_v41  ;;  %1311 = vrot.lane.b32.xlu1 %v3770_v38, %s5334_s19 }
 0x9b7   :  { %1101 = vrot.lane.b32.xlu0 %v1099_v43, %s5334_s19 }
 0x9bf   :  { %v1202_v46 = vpop.permute.xlu1 %1201 }
 0x9c0   :  { %v1204_v49 = vmul.f32 %v5112_v45, %v1202_v46 }
 0x9c2   :  { %1206 = vrot.lane.b32.xlu0 %v1204_v49, %s5334_s19 }
 0x9c4   :  { %v1317_v51 = vpop.permute.xlu0 %1316 }
 0x9c5   :  { %v1319_v54 = vmul.f32 %v5114_v50, %v1317_v51 }
 0x9c7   :  { %1321 = vrot.lane.b32.xlu1 %v1319_v54, %s5334_s19 }
 0xa23   :  { %v999_v63 = vpop.permute.xlu1 %998 }
 0xa24   :  { %v5827_v5 = vadd.f32 %v999_v63, %v991_v62 }
 0xa26   :  { %5115 = vtanh.f32 %v5827_v5 }
 0xa27   :  { %v1312_v14 = vpop.permute.xlu1 %1311 }
 0xa28   :  { %v1314_v3 = vmul.f32 %v5114_v50, %v1312_v14 }
 0xa29   :  { %v1102_v8 = vpop.permute.xlu0 %1101 }
 0xa2a   :  { %v5831_v10 = vadd.f32 %v1102_v8, %v1094_v7 }
 0xa2c   :  { %5117 = vtanh.f32 %v5831_v10 }
 0xa30   :  { %v5116_v32 = vpop.eup %5115 }
 0xa31   :  { %1004 = vrot.lane.b32.xlu0 %v5116_v32, %s5333_s13 }
 0xa34   :  { %v1207_v36 = vpop.permute.xlu0 %1206 }
 0xa35   :  { %v5836_v55 = vadd.f32 %v1207_v36, %v1199_v12 }
 0xa36   :  { %v5118_v16 = vpop.eup %5117 }
 0xa37   :  { %5119 = vtanh.f32 %v5836_v55  ;;  %1107 = vrot.lane.b32.xlu1 %v5118_v16, %s5333_s13 }
 0xa39   :  { %v1322_v17 = vpop.permute.xlu1 %1321 }
 0xa3a   :  { %v5840_v18 = vadd.f32 %v1322_v17, %v1314_v3 }
 0xa3c   :  { %5121 = vtanh.f32 %v5840_v18 }
 0xa41   :  { %v5120_v19 = vpop.eup %5119 }
 0xa42   :  { %1212 = vrot.lane.b32.xlu0 %v5120_v19, %s5333_s13 }
 0xa46   :  { %v5122_v20 = vpop.eup %5121 }
 0xa47   :  { %1327 = vrot.lane.b32.xlu1 %v5122_v20, %s5333_s13 }
 0xaa3   :  { %v1005_v11 = vpop.permute.xlu0 %1004 }
 0xaa4   :  { %v1007_v22 = vmul.f32 %v5104_v27, %v1005_v11 }
 0xaa6   :  { %1334 = vrot.lane.b32.xlu0 %v1007_v22, %s5334_s19 }
 0xaa9   :  { %v1108_v57 = vpop.permute.xlu1 %1107 }
 0xaaa   :  { %v1110_v23 = vmul.f32 %v5110_v40, %v1108_v57 }
 0xaac   :  { %1435 = vrot.lane.b32.xlu1 %v1110_v23, %s5333_s13  ;;  %1536 = vrot.lane.b32.xlu0 %v1110_v23, %s5334_s19 }
 0xab4   :  { %v1213_v25 = vpop.permute.xlu0 %1212 }
 0xab5   :  { %v1215_v26 = vmul.f32 %v5112_v45, %v1213_v25  ;;  %v195_v45 = vadd.f32 %v5475_v15, %v5567_v59 }
 0xab7   :  { %1641 = vrot.lane.b32.xlu0 %v1215_v26, %s5334_s19  ;;  %1540 = vrot.lane.b32.xlu1 %v1215_v26, %s5333_s13 }
 0xab9   :  { %v1328_v28 = vpop.permute.xlu1 %1327 }
 0xaba   :  { %v1330_v30 = vmul.f32 %v5114_v50, %v1328_v28 }
 0xabc   :  { %1645 = vrot.lane.b32.xlu1 %v1330_v30, %s5333_s13 }
 0xb18   :  { %v1335_v31 = vpop.permute.xlu0 %1334 }
 0xb19   :  { %4300 = vmatmul.mubr.msk.f32.vlgmr.msra.gmra.mrb[16].mxu0 %vm267_vm2, %v1335_v31 }
 0xb1a   :  { %4796 = vmatpush3.bf16.msra.mxu0 %v5498_v37  ;;  %4318 = vmatprep.mubr.msk.f32.mxu0 %vm5331_vm0, %v5332_v2 }
 0xb1b   :  { %4797 = vmatprep.subr.bf16.mxu0 %v5330_v1 }
 0xb1e   :  { %4799 = vmatpush3.bf16.msra.mxu0 %v5515_v42  ;;  %v1436_v27 = vpop.permute.xlu1 %1435  ;;  %v1537_v38 = vpop.permute.xlu0 %1536 }
 0xb1f   :  { %4800 = vmatprep.subr.bf16.mxu0 %v5330_v1  ;;  %v1438_v35 = vsel %vm267_vm2, %v1335_v31, %v1436_v27 }
 0xb22   :  { %4802 = vmatpush3.bf16.msra.mxu0 %v5533_v47 }
 0xb23   :  { %4803 = vmatprep.subr.bf16.mxu0 %v5330_v1 }
 0xb26   :  { %4805 = vmatpush3.bf16.msra.mxu0 %v5549_v52 }
 0xb27   :  { %4818 = vmatprep.subr.bf16.mxu0 %v5330_v1 }
 0xb29   :  { %v1541_v39 = vpop.permute.xlu1 %1540  ;;  %4319 = vmatmul.mubr.msk.f32.vlgmr.msra.gmra.mrb[18].mxu0 %vm484_vm3, %v1438_v35  ;;  %v1642_v43 = vpop.permute.xlu0 %1641 }
 0xb2a   :  { %v1543_v40 = vsel %vm267_vm2, %v1537_v38, %v1541_v39  ;;  %4820 = vmatpush3.bf16.msra.mxu0 %v5740_v24  ;;  %4356 = vmatprep.mubr.msk.f32.mxu0 %vm5331_vm0, %v5332_v2 }
 0xb2b   :  { %4338 = vmatmul.mubr.msk.f32.vlgmr.msra.gmra.mrb[12].mxu1 %vm484_vm3, %v1543_v40  ;;  %4821 = vmatprep.subr.bf16.mxu0 %v5330_v1 }
 0xb2c   :  { %4832 = vmatpush3.bf16.msra.mxu1 %v5448_v9  ;;  %4367 = vmatprep.mubr.msk.f32.mxu1 %vm5331_vm0, %v5332_v2 }
 0xb2d   :  { %4833 = vmatprep.subr.bf16.mxu1 %v5330_v1 }
 0xb2e   :  { %4823 = vmatpush3.bf16.msra.mxu0 %v5753_v29  ;;  %v1646_v41 = vpop.permute.xlu1 %1645 }
 0xb2f   :  { %4824 = vmatprep.subr.bf16.mxu0 %v5330_v1  ;;  %v1648_v44 = vsel %vm267_vm2, %v1642_v43, %v1646_v41 }
 0xb30   :  { %4835 = vmatpush3.bf16.msra.mxu1 %v5455_v13 }
 0xb31   :  { %4836 = vmatprep.subr.bf16.mxu1 %v5330_v1 }
 0xb32   :  { %4826 = vmatpush3.bf16.msra.mxu0 %v5767_v34 }
 0xb33   :  { %4827 = vmatprep.subr.bf16.mxu0 %v5330_v1 }
 0xb36   :  { %4829 = vmatpush3.bf16.msra.mxu0 %v5779_v33 }
 0xb37   :  { %4848 = vmatprep.subr.bf16.mxu0 %v5330_v1 }
 0xb39   :  { %4357 = vmatmul.mubr.msk.f32.vlgmr.msra.gmra.mrb[20].mxu0 %vm484_vm3, %v1648_v44 }
 0xb3a   :  { %4850 = vmatpush3.bf16.msra.mxu0 %v5630_v48  ;;  %4405 = vmatprep.mubr.msk.f32.mxu0 %vm5331_vm0, %v5332_v2 }
 0xb3b   :  { %4851 = vmatprep.subr.bf16.mxu0 %v5330_v1 }
 0xb3e   :  { %4853 = vmatpush3.bf16.msra.mxu0 %v5640_v53 }
 0xb3f   :  { %4854 = vmatprep.subr.bf16.mxu0 %v5330_v1 }
 0xb42   :  { %4856 = vmatpush3.bf16.msra.mxu0 %v5654_v0 }
 0xb43   :  { %4857 = vmatprep.subr.bf16.mxu0 %v5330_v1 }
 0xb46   :  { %4859 = vmatpush3.bf16.msra.mxu0 %v5668_v6 }
 0xb47   :  { %4872 = vmatprep.subr.bf16.mxu0 %v5330_v1 }
 0xbec   :  { %v1404_v46 = vpop.f32.mrb[16].mxu0 }
 0xbed   :  { %v1408_v49 = vadd.f32 %v1404_v46, %v195_v45  ;;  %v4301_v50 = vpop.f32.mrb[17].mxu0 }
 0xbef   :  { %5123 = vtanh.f32 %v1408_v49 }
 0xbf9   :  { %v5124_v51 = vpop.eup %5123 }
 0xbfa   :  { %1418 = vrot.lane.b32.xlu0 %v5124_v51, %s5333_s13 }
 0xbfc   :  { %v1508_v54 = vpop.f32.mrb[18].mxu0 }
 0xbfd   :  { %v1509_v62 = vadd.f32 %v5597_v4, %v1508_v54  ;;  %v4320_v63 = vpop.f32.mrb[19].mxu0  ;;  %v3795_v4 = vmul.f32 -1.442695, %v1408_v49 }
 0xbfe   :  { %v1613_v7 = vpop.f32.mrb[12].mxu1 }
 0xbff   :  { %5125 = vtanh.f32 %v1509_v62  ;;  %v1614_v8 = vadd.f32 %v5694_v21, %v1613_v7  ;;  %v4339_v32 = vpop.f32.mrb[13].mxu1  ;;  %v3797_v17 = vmul.f32 -1.442695, %v1509_v62 }
 0xc01   :  { %5127 = vtanh.f32 %v1614_v8  ;;  %v3799_v20 = vmul.f32 -1.442695, %v1614_v8 }
 0xc09   :  { %v5126_v12 = vpop.eup %5125 }
 0xc0a   :  { %1521 = vrot.lane.b32.xlu1 %v5126_v12, %s5333_s13 }
 0xc0b   :  { %v5128_v15 = vpop.eup %5127 }
 0xc0c   :  { %v1718_v59 = vpop.f32.mrb[20].mxu0  ;;  %1626 = vrot.lane.b32.xlu0 %v5128_v15, %s5333_s13 }
 0xc0d   :  { %v1719_v36 = vadd.f32 %v5813_v56, %v1718_v59  ;;  %v4358_v14 = vpop.f32.mrb[21].mxu0 }
 0xc0f   :  { %5129 = vtanh.f32 %v1719_v36  ;;  %v3801_v23 = vmul.f32 -1.442695, %v1719_v36 }
 0xc10   :  { %5131 = vpow2.f32 %v3795_v4 }
 0xc11   :  { %5133 = vpow2.f32 %v3797_v17 }
 0xc19   :  { %v5130_v16 = vpop.eup %5129 }
 0xc1a   :  { %1731 = vrot.lane.b32.xlu1 %v5130_v16, %s5333_s13  ;;  %v5132_v3 = vpop.eup %5131 }
 0xc1b   :  { %v1412_v19 = vadd.f32 1.0, %v5132_v3  ;;  %v5134_v11 = vpop.eup %5133 }
 0xc1c   :  { %v1515_v28 = vadd.f32 1.0, %v5134_v11 }
 0xc1d   :  { %5135 = vrcp.f32 %v1412_v19 }
 0xc1e   :  { %5137 = vpow2.f32 %v3799_v20 }
 0xc1f   :  { %5139 = vpow2.f32 %v3801_v23 }
 0xc20   :  { %5141 = vrcp.f32 %v1515_v28 }
 0xc27   :  { %v5136_v22 = vpop.eup %5135 }
 0xc28   :  { %v5138_v26 = vpop.eup %5137  ;;  %v1416_v49 = vmul.f32 %v5136_v22, %v5827_v5 }
 0xc29   :  { %v1620_v30 = vadd.f32 1.0, %v5138_v26  ;;  %v5140_v31 = vpop.eup %5139 }
 0xc2a   :  { %v5142_v27 = vpop.eup %5141  ;;  %v1725_v39 = vadd.f32 1.0, %v5140_v31 }
 0xc2b   :  { %5143 = vrcp.f32 %v1620_v30  ;;  %v1519_v62 = vmul.f32 %v5142_v27, %v5831_v10 }
 0xc2c   :  { %5145 = vrcp.f32 %v1725_v39 }
 0xc35   :  { %v5144_v40 = vpop.eup %5143 }
 0xc36   :  { %v5146_v44 = vpop.eup %5145  ;;  %v1624_v8 = vmul.f32 %v5144_v40, %v5836_v55 }
 0xc37   :  { %v1729_v15 = vmul.f32 %v5146_v44, %v5840_v18 }
 0xc6c   :  { %v1419_v57 = vpop.permute.xlu0 %1418 }
 0xc6d   :  { %v1421_v25 = vmul.f32 %v5136_v22, %v1419_v57 }
 0xc6f   :  { %1423 = vrot.lane.b32.xlu0 %v1421_v25, %s5334_s19 }
 0xc7c   :  { %v1522_v35 = vpop.permute.xlu1 %1521 }
 0xc7d   :  { %v1524_v38 = vmul.f32 %v5142_v27, %v1522_v35 }
 0xc7e   :  { %v1627_v41 = vpop.permute.xlu0 %1626 }
 0xc7f   :  { %1526 = vrot.lane.b32.xlu1 %v1524_v38, %s5334_s19  ;;  %v1629_v43 = vmul.f32 %v5144_v40, %v1627_v41 }
 0xc81   :  { %1631 = vrot.lane.b32.xlu0 %v1629_v43, %s5334_s19 }
 0xc8c   :  { %v1732_v45 = vpop.permute.xlu1 %1731 }
 0xc8d   :  { %v1734_v46 = vmul.f32 %v5146_v44, %v1732_v45 }
 0xc8f   :  { %1736 = vrot.lane.b32.xlu1 %v1734_v46, %s5334_s19 }
 0xce1   :  { %v1424_v50 = vpop.permute.xlu0 %1423 }
 0xce2   :  { %v5908_v51 = vadd.f32 %v1424_v50, %v1416_v49 }
 0xce4   :  { %5147 = vtanh.f32 %v5908_v51 }
 0xcee   :  { %v5148_v54 = vpop.eup %5147 }
 0xcef   :  { %1429 = vrot.lane.b32.xlu0 %v5148_v54, %s5333_s13 }
 0xcf1   :  { %v1527_v63 = vpop.permute.xlu1 %1526 }
 0xcf2   :  { %v5913_v7 = vadd.f32 %v1527_v63, %v1519_v62 }
 0xcf3   :  { %v1632_v32 = vpop.permute.xlu0 %1631 }
 0xcf4   :  { %5149 = vtanh.f32 %v5913_v7  ;;  %v5917_v12 = vadd.f32 %v1632_v32, %v1624_v8 }
 0xcf6   :  { %5151 = vtanh.f32 %v5917_v12 }
 0xcfe   :  { %v5150_v5 = vpop.eup %5149 }
 0xcff   :  { %1532 = vrot.lane.b32.xlu1 %v5150_v5, %s5333_s13 }
 0xd00   :  { %v5152_v59 = vpop.eup %5151 }
 0xd01   :  { %v1737_v36 = vpop.permute.xlu1 %1736  ;;  %1637 = vrot.lane.b32.xlu0 %v5152_v59, %s5333_s13 }
 0xd02   :  { %v5923_v10 = vadd.f32 %v1737_v36, %v1729_v15 }
 0xd04   :  { %5153 = vtanh.f32 %v5923_v10 }
 0xd0e   :  { %v5154_v55 = vpop.eup %5153 }
 0xd0f   :  { %1742 = vrot.lane.b32.xlu1 %v5154_v55, %s5333_s13 }
 0xd61   :  { %v1430_v14 = vpop.permute.xlu0 %1429 }
 0xd62   :  { %v1432_v16 = vmul.f32 %v5136_v22, %v1430_v14 }
 0xd64   :  { %1749 = vrot.lane.b32.xlu0 %v1432_v16, %s5334_s19 }
 0xd71   :  { %v1533_v4 = vpop.permute.xlu1 %1532 }
 0xd72   :  { %v1535_v3 = vmul.f32 %v5142_v27, %v1533_v4  ;;  %v5979_v27 = vld [vmem:[%s6357_s5] ss:$0 sm:$0xff] }
 0xd73   :  { %v1638_v17 = vpop.permute.xlu0 %1637  ;;  %v200_v35 = vadd.f32 %v5979_v27, %v5565_v58 }
 0xd74   :  { %1951 = vrot.lane.b32.xlu0 %v1535_v3, %s5334_s19  ;;  %1850 = vrot.lane.b32.xlu1 %v1535_v3, %s5333_s13  ;;  %v1640_v18 = vmul.f32 %v5144_v40, %v1638_v17 }
 0xd78   :  { %2056 = vrot.lane.b32.xlu0 %v1640_v18, %s5334_s19  ;;  %1955 = vrot.lane.b32.xlu1 %v1640_v18, %s5333_s13 }
 0xd81   :  { %v1743_v19 = vpop.permute.xlu1 %1742 }
 0xd82   :  { %v1745_v20 = vmul.f32 %v5146_v44, %v1743_v19  ;;  %v5987_v44 = vld [vmem:[%s6359_s7] ss:$0 sm:$0xff] }
 0xd84   :  { %2060 = vrot.lane.b32.xlu1 %v1745_v20, %s5333_s13 }
 0xdd6   :  { %v1750_v11 = vpop.permute.xlu0 %1749 }
 0xdd7   :  { %4368 = vmatmul.mubr.msk.f32.vlgmr.msra.gmra.mrb[14].mxu1 %vm267_vm2, %v1750_v11 }
 0xdd8   :  { %4838 = vmatpush3.bf16.msra.mxu1 %v5498_v37  ;;  %4386 = vmatprep.mubr.msk.f32.mxu1 %vm5331_vm0, %v5332_v2 }
 0xdd9   :  { %4839 = vmatprep.subr.bf16.mxu1 %v5330_v1 }
 0xddc   :  { %4841 = vmatpush3.bf16.msra.mxu1 %v5515_v42 }
 0xddd   :  { %4842 = vmatprep.subr.bf16.mxu1 %v5330_v1 }
 0xde0   :  { %4844 = vmatpush3.bf16.msra.mxu1 %v5533_v47 }
 0xde1   :  { %4845 = vmatprep.subr.bf16.mxu1 %v5330_v1 }
 0xde4   :  { %4847 = vmatpush3.bf16.msra.mxu1 %v5549_v52 }
 0xde5   :  { %4860 = vmatprep.subr.bf16.mxu1 %v5330_v1 }
 0xde6   :  { %v1851_v22 = vpop.permute.xlu1 %1850  ;;  %v1952_v23 = vpop.permute.xlu0 %1951 }
 0xde7   :  { %v1853_v57 = vsel %vm267_vm2, %v1750_v11, %v1851_v22 }
 0xde8   :  { %4387 = vmatmul.mubr.msk.f32.vlgmr.msra.gmra.mrb[16].mxu1 %vm484_vm3, %v1853_v57 }
 0xde9   :  { %4862 = vmatpush3.bf16.msra.mxu1 %v5740_v24  ;;  %4424 = vmatprep.mubr.msk.f32.mxu1 %vm5331_vm0, %v5332_v2 }
 0xdea   :  { %v1956_v25 = vpop.permute.xlu1 %1955  ;;  %4863 = vmatprep.subr.bf16.mxu1 %v5330_v1  ;;  %v2057_v28 = vpop.permute.xlu0 %2056 }
 0xdeb   :  { %v1958_v26 = vsel %vm267_vm2, %v1952_v23, %v1956_v25 }
 0xdec   :  { %4406 = vmatmul.mubr.msk.f32.vlgmr.msra.gmra.mrb[22].mxu0 %vm484_vm3, %v1958_v26 }
 0xded   :  { %4865 = vmatpush3.bf16.msra.mxu1 %v5753_v29  ;;  %4874 = vmatpush3.bf16.msra.mxu0 %v5448_v9 }
 0xdee   :  { %4866 = vmatprep.subr.bf16.mxu1 %v5330_v1  ;;  %4875 = vmatprep.subr.bf16.mxu0 %v5330_v1 }
 0xdef   :  { %4435 = vmatprep.mubr.msk.f32.mxu0 %vm5331_vm0, %v5332_v2 }
 0xdf1   :  { %4868 = vmatpush3.bf16.msra.mxu1 %v5767_v34  ;;  %4877 = vmatpush3.bf16.msra.mxu0 %v5455_v13 }
 0xdf2   :  { %4869 = vmatprep.subr.bf16.mxu1 %v5330_v1  ;;  %4878 = vmatprep.subr.bf16.mxu0 %v5330_v1 }
 0xdf5   :  { %4871 = vmatpush3.bf16.msra.mxu1 %v5779_v33 }
 0xdf6   :  { %v2061_v30 = vpop.permute.xlu1 %2060  ;;  %4890 = vmatprep.subr.bf16.mxu1 %v5330_v1 }
 0xdf7   :  { %v2063_v31 = vsel %vm267_vm2, %v2057_v28, %v2061_v30 }
 0xdf8   :  { %4425 = vmatmul.mubr.msk.f32.vlgmr.msra.gmra.mrb[18].mxu1 %vm484_vm3, %v2063_v31 }
 0xdf9   :  { %4892 = vmatpush3.bf16.msra.mxu1 %v5630_v48  ;;  %4473 = vmatprep.mubr.msk.f32.mxu1 %vm5331_vm0, %v5332_v2 }
 0xdfa   :  { %4893 = vmatprep.subr.bf16.mxu1 %v5330_v1 }
 0xdfd   :  { %4895 = vmatpush3.bf16.msra.mxu1 %v5640_v53 }
 0xdfe   :  { %4896 = vmatprep.subr.bf16.mxu1 %v5330_v1 }
 0xe01   :  { %4898 = vmatpush3.bf16.msra.mxu1 %v5654_v0 }
 0xe02   :  { %4899 = vmatprep.subr.bf16.mxu1 %v5330_v1 }
 0xe05   :  { %4901 = vmatpush3.bf16.msra.mxu1 %v5668_v6 }
 0xe06   :  { %4914 = vmatprep.subr.bf16.mxu1 %v5330_v1 }
 0xeaa   :  { %v1819_v38 = vpop.f32.mrb[14].mxu1 }
 0xeab   :  { %v1823_v39 = vadd.f32 %v1819_v38, %v200_v35  ;;  %v4369_v40 = vpop.f32.mrb[15].mxu1 }
 0xead   :  { %5155 = vtanh.f32 %v1823_v39  ;;  %v3803_v15 = vmul.f32 -1.442695, %v1823_v39 }
 0xeb7   :  { %v5156_v41 = vpop.eup %5155 }
 0xeb8   :  { %1833 = vrot.lane.b32.xlu0 %v5156_v41, %s5333_s13 }
 0xebb   :  { %v1923_v43 = vpop.f32.mrb[16].mxu1 }
 0xebc   :  { %v1924_v45 = vadd.f32 %v5987_v44, %v1923_v43  ;;  %v4388_v46 = vpop.f32.mrb[17].mxu1 }
 0xebe   :  { %5157 = vtanh.f32 %v1924_v45  ;;  %v3805_v36 = vmul.f32 -1.442695, %v1924_v45 }
 0xebf   :  { %v2028_v49 = vpop.f32.mrb[22].mxu0 }
 0xec0   :  { %v2029_v58 = vadd.f32 %v5694_v21, %v2028_v49  ;;  %v4407_v50 = vpop.f32.mrb[23].mxu0 }
 0xec2   :  { %5159 = vtanh.f32 %v2029_v58  ;;  %v3807_v55 = vmul.f32 -1.442695, %v2029_v58 }
 0xec8   :  { %v5158_v54 = vpop.eup %5157 }
 0xec9   :  { %1936 = vrot.lane.b32.xlu1 %v5158_v54, %s5333_s13 }
 0xecb   :  { %v2133_v62 = vpop.f32.mrb[18].mxu1 }
 0xecc   :  { %v5160_v63 = vpop.eup %5159  ;;  %v2134_v8 = vadd.f32 %v5813_v56, %v2133_v62  ;;  %v4426_v32 = vpop.f32.mrb[19].mxu1 }
 0xecd   :  { %2041 = vrot.lane.b32.xlu0 %v5160_v63, %s5333_s13 }
 0xece   :  { %5161 = vtanh.f32 %v2134_v8  ;;  %v3809_v17 = vmul.f32 -1.442695, %v2134_v8 }
 0xecf   :  { %5163 = vpow2.f32 %v3803_v15 }
 0xed8   :  { %v5162_v5 = vpop.eup %5161 }
 0xed9   :  { %2146 = vrot.lane.b32.xlu1 %v5162_v5, %s5333_s13  ;;  %v5164_v59 = vpop.eup %5163 }
 0xeda   :  { %v1827_v21 = vadd.f32 1.0, %v5164_v59 }
 0xedc   :  { %5165 = vrcp.f32 %v1827_v21 }
 0xedd   :  { %5167 = vpow2.f32 %v3805_v36 }
 0xede   :  { %5169 = vpow2.f32 %v3807_v55 }
 0xedf   :  { %5171 = vpow2.f32 %v3809_v17 }
 0xee6   :  { %v5166_v14 = vpop.eup %5165 }
 0xee7   :  { %v5168_v16 = vpop.eup %5167  ;;  %v1831_v39 = vmul.f32 %v5166_v14, %v5908_v51 }
 0xee8   :  { %v1930_v18 = vadd.f32 1.0, %v5168_v16  ;;  %v5170_v19 = vpop.eup %5169 }
 0xee9   :  { %v2035_v20 = vadd.f32 1.0, %v5170_v19  ;;  %v5172_v11 = vpop.eup %5171 }
 0xeea   :  { %5173 = vrcp.f32 %v1930_v18  ;;  %v2140_v25 = vadd.f32 1.0, %v5172_v11 }
 0xeeb   :  { %5175 = vrcp.f32 %v2035_v20 }
 0xeec   :  { %5177 = vrcp.f32 %v2140_v25 }
 0xef4   :  { %v5174_v22 = vpop.eup %5173 }
 0xef5   :  { %v5176_v26 = vpop.eup %5175  ;;  %v1934_v45 = vmul.f32 %v5174_v22, %v5913_v7 }
 0xef6   :  { %v5178_v31 = vpop.eup %5177  ;;  %v2039_v58 = vmul.f32 %v5176_v26, %v5917_v12 }
 0xef7   :  { %v2144_v62 = vmul.f32 %v5178_v31, %v5923_v10 }
 0xf2a   :  { %v1834_v4 = vpop.permute.xlu0 %1833 }
 0xf2b   :  { %v1836_v3 = vmul.f32 %v5166_v14, %v1834_v4 }
 0xf2d   :  { %1838 = vrot.lane.b32.xlu0 %v1836_v3, %s5334_s19 }
 0xf3b   :  { %v1937_v57 = vpop.permute.xlu1 %1936 }
 0xf3c   :  { %v1939_v23 = vmul.f32 %v5174_v22, %v1937_v57 }
 0xf3e   :  { %1941 = vrot.lane.b32.xlu1 %v1939_v23, %s5334_s19 }
 0xf3f   :  { %v2042_v28 = vpop.permute.xlu0 %2041 }
 0xf40   :  { %v2044_v30 = vmul.f32 %v5176_v26, %v2042_v28 }
 0xf42   :  { %2046 = vrot.lane.b32.xlu0 %v2044_v30, %s5334_s19 }
 0xf4b   :  { %v2147_v35 = vpop.permute.xlu1 %2146 }
 0xf4c   :  { %v2149_v38 = vmul.f32 %v5178_v31, %v2147_v35 }
 0xf4e   :  { %2151 = vrot.lane.b32.xlu1 %v2149_v38, %s5334_s19 }
 0xf9f   :  { %v1839_v40 = vpop.permute.xlu0 %1838 }
 0xfa0   :  { %v6000_v41 = vadd.f32 %v1839_v40, %v1831_v39 }
 0xfa2   :  { %5179 = vtanh.f32 %v6000_v41 }
 0xfac   :  { %v5180_v43 = vpop.eup %5179 }
 0xfad   :  { %1844 = vrot.lane.b32.xlu0 %v5180_v43, %s5333_s13 }
 0xfb0   :  { %v1942_v46 = vpop.permute.xlu1 %1941 }
 0xfb1   :  { %v6005_v49 = vadd.f32 %v1942_v46, %v1934_v45 }
 0xfb3   :  { %5181 = vtanh.f32 %v6005_v49 }
 0xfb4   :  { %v2047_v50 = vpop.permute.xlu0 %2046 }
 0xfb5   :  { %v6009_v54 = vadd.f32 %v2047_v50, %v2039_v58 }
 0xfb7   :  { %5183 = vtanh.f32 %v6009_v54 }
 0xfbd   :  { %v5182_v51 = vpop.eup %5181 }
 0xfbe   :  { %1947 = vrot.lane.b32.xlu1 %v5182_v51, %s5333_s13 }
 0xfc0   :  { %v2152_v63 = vpop.permute.xlu1 %2151 }
 0xfc1   :  { %v5184_v8 = vpop.eup %5183  ;;  %v6014_v7 = vadd.f32 %v2152_v63, %v2144_v62 }
 0xfc2   :  { %2052 = vrot.lane.b32.xlu0 %v5184_v8, %s5333_s13 }
 0xfc3   :  { %5185 = vtanh.f32 %v6014_v7 }
 0xfcd   :  { %v5186_v32 = vpop.eup %5185 }
 0xfce   :  { %2157 = vrot.lane.b32.xlu1 %v5186_v32, %s5333_s13 }
0x101f   :  { %v1845_v12 = vpop.permute.xlu0 %1844 }
0x1020   :  { %v1847_v5 = vmul.f32 %v5166_v14, %v1845_v12 }
0x1022   :  { %2164 = vrot.lane.b32.xlu0 %v1847_v5, %s5334_s19 }
0x1030   :  { %v1948_v15 = vpop.permute.xlu1 %1947 }
0x1031   :  { %v1950_v59 = vmul.f32 %v5174_v22, %v1948_v15 }
0x1033   :  { %2265 = vrot.lane.b32.xlu1 %v1950_v59, %s5333_s13  ;;  %2366 = vrot.lane.b32.xlu0 %v1950_v59, %s5334_s19 }
0x1034   :  { %v2053_v10 = vpop.permute.xlu0 %2052 }
0x1035   :  { %v2055_v21 = vmul.f32 %v5176_v26, %v2053_v10 }
0x1037   :  { %2471 = vrot.lane.b32.xlu0 %v2055_v21, %s5334_s19  ;;  %2370 = vrot.lane.b32.xlu1 %v2055_v21, %s5333_s13 }
0x1040   :  { %v2158_v36 = vpop.permute.xlu1 %2157 }
0x1041   :  { %v2160_v55 = vmul.f32 %v5178_v31, %v2158_v36  ;;  %v6075_v31 = vld [vmem:[%s6361_s9] ss:$0 sm:$0xff] }
0x1043   :  { %2475 = vrot.lane.b32.xlu1 %v2160_v55, %s5333_s13 }
0x1094   :  { %v2165_v16 = vpop.permute.xlu0 %2164 }
0x1095   :  { %4436 = vmatmul.mubr.msk.f32.vlgmr.msra.gmra.mrb[24].mxu0 %vm267_vm2, %v2165_v16 }
0x1096   :  { %4880 = vmatpush3.bf16.msra.mxu0 %v5498_v37  ;;  %4454 = vmatprep.mubr.msk.f32.mxu0 %vm5331_vm0, %v5332_v2 }
0x1097   :  { %4881 = vmatprep.subr.bf16.mxu0 %v5330_v1 }
0x109a   :  { %4883 = vmatpush3.bf16.msra.mxu0 %v5515_v42 }
0x109b   :  { %4884 = vmatprep.subr.bf16.mxu0 %v5330_v1 }
0x109e   :  { %4886 = vmatpush3.bf16.msra.mxu0 %v5533_v47 }
0x109f   :  { %4887 = vmatprep.subr.bf16.mxu0 %v5330_v1 }
0x10a2   :  { %4889 = vmatpush3.bf16.msra.mxu0 %v5549_v52 }
0x10a3   :  { %4902 = vmatprep.subr.bf16.mxu0 %v5330_v1 }
0x10a5   :  { %v2266_v14 = vpop.permute.xlu1 %2265  ;;  %v2367_v3 = vpop.permute.xlu0 %2366 }
0x10a6   :  { %v2268_v4 = vsel %vm267_vm2, %v2165_v16, %v2266_v14 }
0x10a7   :  { %4455 = vmatmul.mubr.msk.f32.vlgmr.msra.gmra.mrb[26].mxu0 %vm484_vm3, %v2268_v4 }
0x10a8   :  { %4904 = vmatpush3.bf16.msra.mxu0 %v5740_v24  ;;  %4492 = vmatprep.mubr.msk.f32.mxu0 %vm5331_vm0, %v5332_v2 }
0x10a9   :  { %v2371_v17 = vpop.permute.xlu1 %2370  ;;  %4905 = vmatprep.subr.bf16.mxu0 %v5330_v1  ;;  %v2472_v19 = vpop.permute.xlu0 %2471 }
0x10aa   :  { %v2373_v18 = vsel %vm267_vm2, %v2367_v3, %v2371_v17 }
0x10ab   :  { %4474 = vmatmul.mubr.msk.f32.vlgmr.msra.gmra.mrb[20].mxu1 %vm484_vm3, %v2373_v18 }
0x10ac   :  { %4907 = vmatpush3.bf16.msra.mxu0 %v5753_v29  ;;  %4916 = vmatpush3.bf16.msra.mxu1 %v5448_v9 }
0x10ad   :  { %4908 = vmatprep.subr.bf16.mxu0 %v5330_v1  ;;  %4917 = vmatprep.subr.bf16.mxu1 %v5330_v1 }
0x10ae   :  { %4503 = vmatprep.mubr.msk.f32.mxu1 %vm5331_vm0, %v5332_v2 }
0x10b0   :  { %4910 = vmatpush3.bf16.msra.mxu0 %v5767_v34  ;;  %4919 = vmatpush3.bf16.msra.mxu1 %v5455_v13  ;;  %v205_v13 = vadd.f32 %v5979_v27, %v5571_v61 }
0x10b1   :  { %4911 = vmatprep.subr.bf16.mxu0 %v5330_v1  ;;  %4920 = vmatprep.subr.bf16.mxu1 %v5330_v1 }
0x10b4   :  { %4913 = vmatpush3.bf16.msra.mxu0 %v5779_v33 }
0x10b5   :  { %v2476_v20 = vpop.permute.xlu1 %2475  ;;  %4932 = vmatprep.subr.bf16.mxu0 %v5330_v1 }
0x10b6   :  { %v2478_v9 = vsel %vm267_vm2, %v2472_v19, %v2476_v20 }
0x10b7   :  { %4493 = vmatmul.mubr.msk.f32.vlgmr.msra.gmra.mrb[28].mxu0 %vm484_vm3, %v2478_v9 }
0x10b8   :  { %4934 = vmatpush3.bf16.msra.mxu0 %v5630_v48  ;;  %4541 = vmatprep.mubr.msk.f32.mxu0 %vm5331_vm0, %v5332_v2 }
0x10b9   :  { %4935 = vmatprep.subr.bf16.mxu0 %v5330_v1 }
0x10bc   :  { %4937 = vmatpush3.bf16.msra.mxu0 %v5640_v53 }
0x10bd   :  { %4938 = vmatprep.subr.bf16.mxu0 %v5330_v1 }
0x10c0   :  { %4940 = vmatpush3.bf16.msra.mxu0 %v5654_v0 }
0x10c1   :  { %4941 = vmatprep.subr.bf16.mxu0 %v5330_v1 }
0x10c4   :  { %4943 = vmatpush3.bf16.msra.mxu0 %v5668_v6 }
0x10c5   :  { %4956 = vmatprep.subr.bf16.mxu0 %v5330_v1 }
0x1168   :  { %v2234_v11 = vpop.f32.mrb[24].mxu0 }
0x1169   :  { %v2238_v22 = vadd.f32 %v2234_v11, %v205_v13  ;;  %v4437_v57 = vpop.f32.mrb[25].mxu0 }
0x116b   :  { %5187 = vtanh.f32 %v2238_v22  ;;  %v3811_v58 = vmul.f32 -1.442695, %v2238_v22 }
0x1175   :  { %v5188_v23 = vpop.eup %5187 }
0x1176   :  { %2248 = vrot.lane.b32.xlu0 %v5188_v23, %s5333_s13 }
0x117a   :  { %v2338_v25 = vpop.f32.mrb[26].mxu0 }
0x117b   :  { %v2339_v26 = vadd.f32 %v5987_v44, %v2338_v25  ;;  %v4456_v28 = vpop.f32.mrb[27].mxu0 }
0x117d   :  { %5189 = vtanh.f32 %v2339_v26  ;;  %v3813_v62 = vmul.f32 -1.442695, %v2339_v26 }
0x117e   :  { %v2443_v30 = vpop.f32.mrb[20].mxu1 }
0x117f   :  { %v2444_v61 = vadd.f32 %v6075_v31, %v2443_v30  ;;  %v4475_v35 = vpop.f32.mrb[21].mxu1 }
0x1181   :  { %5191 = vtanh.f32 %v2444_v61  ;;  %v3815_v63 = vmul.f32 -1.442695, %v2444_v61 }
0x1187   :  { %v5190_v38 = vpop.eup %5189 }
0x1188   :  { %2351 = vrot.lane.b32.xlu1 %v5190_v38, %s5333_s13 }
0x118a   :  { %v2548_v39 = vpop.f32.mrb[28].mxu0 }
0x118b   :  { %v5192_v40 = vpop.eup %5191  ;;  %v2549_v43 = vadd.f32 %v5813_v56, %v2548_v39  ;;  %v4494_v45 = vpop.f32.mrb[29].mxu0 }
0x118c   :  { %2456 = vrot.lane.b32.xlu0 %v5192_v40, %s5333_s13 }
0x118d   :  { %5193 = vtanh.f32 %v2549_v43  ;;  %v3817_v5 = vmul.f32 -1.442695, %v2549_v43 }
0x118e   :  { %5195 = vpow2.f32 %v3811_v58 }
0x1197   :  { %v5194_v46 = vpop.eup %5193 }
0x1198   :  { %2561 = vrot.lane.b32.xlu1 %v5194_v46, %s5333_s13  ;;  %v5196_v50 = vpop.eup %5195 }
0x1199   :  { %v2242_v51 = vadd.f32 1.0, %v5196_v50 }
0x119b   :  { %5197 = vrcp.f32 %v2242_v51 }
0x119c   :  { %5199 = vpow2.f32 %v3813_v62 }
0x119d   :  { %5201 = vpow2.f32 %v3815_v63 }
0x119e   :  { %5203 = vpow2.f32 %v3817_v5 }
0x11a5   :  { %v5198_v8 = vpop.eup %5197 }
0x11a6   :  { %v5200_v12 = vpop.eup %5199  ;;  %v2246_v9 = vmul.f32 %v5198_v8, %v6000_v41 }
0x11a7   :  { %v2345_v15 = vadd.f32 1.0, %v5200_v12  ;;  %v5202_v59 = vpop.eup %5201 }
0x11a8   :  { %v2450_v10 = vadd.f32 1.0, %v5202_v59  ;;  %v5204_v21 = vpop.eup %5203 }
0x11a9   :  { %5205 = vrcp.f32 %v2345_v15  ;;  %v2555_v14 = vadd.f32 1.0, %v5204_v21 }
0x11aa   :  { %5207 = vrcp.f32 %v2450_v10 }
0x11ab   :  { %5209 = vrcp.f32 %v2555_v14 }
0x11b3   :  { %v5206_v36 = vpop.eup %5205 }
0x11b4   :  { %v5208_v4 = vpop.eup %5207  ;;  %v2349_v57 = vmul.f32 %v5206_v36, %v6005_v49 }
0x11b5   :  { %v5210_v18 = vpop.eup %5209  ;;  %v2454_v26 = vmul.f32 %v5208_v4, %v6009_v54 }
0x11b6   :  { %v2559_v61 = vmul.f32 %v5210_v18, %v6014_v7 }
0x11e8   :  { %v2249_v32 = vpop.permute.xlu0 %2248 }
0x11e9   :  { %v2251_v56 = vmul.f32 %v5198_v8, %v2249_v32 }
0x11eb   :  { %2253 = vrot.lane.b32.xlu0 %v2251_v56, %s5334_s19 }
0x11fa   :  { %v2352_v55 = vpop.permute.xlu1 %2351 }
0x11fb   :  { %v2354_v16 = vmul.f32 %v5206_v36, %v2352_v55 }
0x11fd   :  { %2356 = vrot.lane.b32.xlu1 %v2354_v16, %s5334_s19 }
0x11fe   :  { %v2457_v3 = vpop.permute.xlu0 %2456 }
0x11ff   :  { %v2459_v17 = vmul.f32 %v5208_v4, %v2457_v3  ;;  %v6168_v3 = vld [vmem:[%s6363_s11] ss:$0 sm:$0xff] }
0x1201   :  { %2461 = vrot.lane.b32.xlu0 %v2459_v17, %s5334_s19 }
0x120a   :  { %v2562_v19 = vpop.permute.xlu1 %2561 }
0x120b   :  { %v2564_v20 = vmul.f32 %v5210_v18, %v2562_v19 }
0x120d   :  { %2566 = vrot.lane.b32.xlu1 %v2564_v20, %s5334_s19 }
0x125d   :  { %v2254_v13 = vpop.permute.xlu0 %2253 }
0x125e   :  { %v6087_v11 = vadd.f32 %v2254_v13, %v2246_v9 }
0x1260   :  { %5211 = vtanh.f32 %v6087_v11 }
0x126a   :  { %v5212_v22 = vpop.eup %5211 }
0x126b   :  { %2259 = vrot.lane.b32.xlu0 %v5212_v22, %s5333_s13 }
0x126f   :  { %v2357_v23 = vpop.permute.xlu1 %2356 }
0x1270   :  { %v6092_v25 = vadd.f32 %v2357_v23, %v2349_v57 }
0x1272   :  { %5213 = vtanh.f32 %v6092_v25 }
0x1273   :  { %v2462_v28 = vpop.permute.xlu0 %2461 }
0x1274   :  { %v6096_v30 = vadd.f32 %v2462_v28, %v2454_v26 }
0x1276   :  { %5215 = vtanh.f32 %v6096_v30 }
0x127c   :  { %v5214_v41 = vpop.eup %5213 }
0x127d   :  { %2362 = vrot.lane.b32.xlu1 %v5214_v41, %s5333_s13 }
0x127f   :  { %v2567_v35 = vpop.permute.xlu1 %2566 }
0x1280   :  { %v5216_v38 = vpop.eup %5215  ;;  %v6101_v49 = vadd.f32 %v2567_v35, %v2559_v61 }
0x1281   :  { %2467 = vrot.lane.b32.xlu0 %v5216_v38, %s5333_s13 }
0x1282   :  { %5217 = vtanh.f32 %v6101_v49 }
0x128c   :  { %v5218_v39 = vpop.eup %5217 }
0x128d   :  { %2572 = vrot.lane.b32.xlu1 %v5218_v39, %s5333_s13 }
0x12dd   :  { %v2260_v54 = vpop.permute.xlu0 %2259 }
0x12de   :  { %v2262_v40 = vmul.f32 %v5198_v8, %v2260_v54 }
0x12e0   :  { %2579 = vrot.lane.b32.xlu0 %v2262_v40, %s5334_s19 }
0x12ef   :  { %v2363_v43 = vpop.permute.xlu1 %2362 }
0x12f0   :  { %v2365_v45 = vmul.f32 %v5206_v36, %v2363_v43 }
0x12f2   :  { %2781 = vrot.lane.b32.xlu0 %v2365_v45, %s5334_s19  ;;  %2680 = vrot.lane.b32.xlu1 %v2365_v45, %s5333_s13 }
0x12f3   :  { %v2468_v7 = vpop.permute.xlu0 %2467 }
0x12f4   :  { %v2470_v46 = vmul.f32 %v5208_v4, %v2468_v7 }
0x12f6   :  { %2886 = vrot.lane.b32.xlu0 %v2470_v46, %s5334_s19  ;;  %2785 = vrot.lane.b32.xlu1 %v2470_v46, %s5333_s13 }
0x12ff   :  { %v2573_v58 = vpop.permute.xlu1 %2572 }
0x1300   :  { %v2575_v50 = vmul.f32 %v5210_v18, %v2573_v58 }
0x1302   :  { %2890 = vrot.lane.b32.xlu1 %v2575_v50, %s5333_s13 }
0x1352   :  { %v2580_v51 = vpop.permute.xlu0 %2579 }
0x1353   :  { %4504 = vmatmul.mubr.msk.f32.vlgmr.msra.gmra.mrb[22].mxu1 %vm267_vm2, %v2580_v51 }
0x1354   :  { %4922 = vmatpush3.bf16.msra.mxu1 %v5498_v37  ;;  %4522 = vmatprep.mubr.msk.f32.mxu1 %vm5331_vm0, %v5332_v2 }
0x1355   :  { %4923 = vmatprep.subr.bf16.mxu1 %v5330_v1 }
0x1358   :  { %4925 = vmatpush3.bf16.msra.mxu1 %v5515_v42 }
0x1359   :  { %4926 = vmatprep.subr.bf16.mxu1 %v5330_v1 }
0x135c   :  { %4928 = vmatpush3.bf16.msra.mxu1 %v5533_v47 }
0x135d   :  { %4929 = vmatprep.subr.bf16.mxu1 %v5330_v1 }
0x1360   :  { %4931 = vmatpush3.bf16.msra.mxu1 %v5549_v52 }
0x1361   :  { %4944 = vmatprep.subr.bf16.mxu1 %v5330_v1 }
0x1364   :  { %v2681_v62 = vpop.permute.xlu1 %2680  ;;  %v2782_v8 = vpop.permute.xlu0 %2781 }
0x1365   :  { %v2683_v63 = vsel %vm267_vm2, %v2580_v51, %v2681_v62 }
0x1366   :  { %4523 = vmatmul.mubr.msk.f32.vlgmr.msra.gmra.mrb[24].mxu1 %vm484_vm3, %v2683_v63 }
0x1367   :  { %4946 = vmatpush3.bf16.msra.mxu1 %v5740_v24  ;;  %4560 = vmatprep.mubr.msk.f32.mxu1 %vm5331_vm0, %v5332_v2 }
0x1368   :  { %v2786_v32 = vpop.permute.xlu1 %2785  ;;  %4947 = vmatprep.subr.bf16.mxu1 %v5330_v1 }
0x1369   :  { %v2788_v12 = vsel %vm267_vm2, %v2782_v8, %v2786_v32 }
0x136a   :  { %4542 = vmatmul.mubr.msk.f32.vlgmr.msra.gmra.mrb[30].mxu0 %vm484_vm3, %v2788_v12 }
0x136b   :  { %4949 = vmatpush3.bf16.msra.mxu1 %v5753_v29  ;;  %4958 = vmatpush3.bf16.msra.mxu0 %v5498_v37  ;;  %v2887_v37 = vpop.permute.xlu0 %2886 }
0x136c   :  { %4950 = vmatprep.subr.bf16.mxu1 %v5330_v1  ;;  %4959 = vmatprep.subr.bf16.mxu0 %v5330_v1 }
0x136d   :  { %4579 = vmatprep.mubr.msk.f32.mxu0 %vm5331_vm0, %v5332_v2 }
0x136f   :  { %4952 = vmatpush3.bf16.msra.mxu1 %v5767_v34  ;;  %4961 = vmatpush3.bf16.msra.mxu0 %v5515_v42  ;;  %v210_v42 = vadd.f32 %v5979_v27, %v5569_v60 }
0x1370   :  { %4953 = vmatprep.subr.bf16.mxu1 %v5330_v1  ;;  %4962 = vmatprep.subr.bf16.mxu0 %v5330_v1 }
0x1373   :  { %4955 = vmatpush3.bf16.msra.mxu1 %v5779_v33  ;;  %4964 = vmatpush3.bf16.msra.mxu0 %v5533_v47 }
0x1374   :  { %v2891_v56 = vpop.permute.xlu1 %2890  ;;  %4968 = vmatprep.subr.bf16.mxu1 %v5330_v1  ;;  %4965 = vmatprep.subr.bf16.mxu0 %v5330_v1 }
0x1375   :  { %v2893_v5 = vsel %vm267_vm2, %v2887_v37, %v2891_v56 }
0x1376   :  { %4561 = vmatmul.mubr.msk.f32.vlgmr.msra.gmra.mrb[26].mxu1 %vm484_vm3, %v2893_v5 }
0x1377   :  { %4970 = vmatpush3.bf16.msra.mxu1 %v5630_v48  ;;  %4967 = vmatpush3.bf16.msra.mxu0 %v5549_v52 }
0x1378   :  { %4971 = vmatprep.subr.bf16.mxu1 %v5330_v1  ;;  %4980 = vmatprep.subr.bf16.mxu0 %v5330_v1 }
0x1379   :  { %4598 = vmatprep.mubr.msk.f32.mxu1 %vm5331_vm0, %v5332_v2 }
0x137b   :  { %4973 = vmatpush3.bf16.msra.mxu1 %v5640_v53 }
0x137c   :  { %4974 = vmatprep.subr.bf16.mxu1 %v5330_v1 }
0x137f   :  { %4976 = vmatpush3.bf16.msra.mxu1 %v5654_v0 }
0x1380   :  { %4977 = vmatprep.subr.bf16.mxu1 %v5330_v1 }
0x1383   :  { %4979 = vmatpush3.bf16.msra.mxu1 %v5668_v6 }
0x1384   :  { %4992 = vmatprep.subr.bf16.mxu1 %v5330_v1 }
0x1426   :  { %v2649_v47 = vpop.f32.mrb[22].mxu1 }
0x1427   :  { %v2653_v52 = vadd.f32 %v2649_v47, %v210_v42  ;;  %v4505_v15 = vpop.f32.mrb[23].mxu1 }
0x1429   :  { %5219 = vtanh.f32 %v2653_v52  ;;  %v3819_v20 = vmul.f32 -1.442695, %v2653_v52 }
0x1433   :  { %v5220_v59 = vpop.eup %5219 }
0x1434   :  { %2663 = vrot.lane.b32.xlu0 %v5220_v59, %s5333_s13 }
0x1439   :  { %v2753_v10 = vpop.f32.mrb[24].mxu1 }
0x143a   :  { %v2754_v21 = vadd.f32 %v5987_v44, %v2753_v10  ;;  %v4524_v36 = vpop.f32.mrb[25].mxu1 }
0x143c   :  { %5221 = vtanh.f32 %v2754_v21  ;;  %v3821_v22 = vmul.f32 -1.442695, %v2754_v21 }
0x143d   :  { %v2858_v55 = vpop.f32.mrb[30].mxu0 }
0x143e   :  { %v2859_v16 = vadd.f32 %v6075_v31, %v2858_v55  ;;  %v4543_v14 = vpop.f32.mrb[31].mxu0 }
0x1440   :  { %5223 = vtanh.f32 %v2859_v16  ;;  %v3823_v57 = vmul.f32 -1.442695, %v2859_v16 }
0x1446   :  { %v5222_v4 = vpop.eup %5221 }
0x1447   :  { %2766 = vrot.lane.b32.xlu1 %v5222_v4, %s5333_s13 }
0x1449   :  { %v2963_v60 = vpop.f32.mrb[26].mxu1 }
0x144a   :  { %v5224_v27 = vpop.eup %5223  ;;  %v2964_v17 = vadd.f32 %v6168_v3, %v2963_v60  ;;  %v4562_v18 = vpop.f32.mrb[27].mxu1 }
0x144b   :  { %2871 = vrot.lane.b32.xlu0 %v5224_v27, %s5333_s13 }
0x144c   :  { %5225 = vtanh.f32 %v2964_v17  ;;  %v3825_v61 = vmul.f32 -1.442695, %v2964_v17 }
0x144d   :  { %5227 = vpow2.f32 %v3819_v20 }
0x1456   :  { %v5226_v19 = vpop.eup %5225 }
0x1457   :  { %2976 = vrot.lane.b32.xlu1 %v5226_v19, %s5333_s13  ;;  %v5228_v9 = vpop.eup %5227 }
0x1458   :  { %v2657_v13 = vadd.f32 1.0, %v5228_v9 }
0x145a   :  { %5229 = vrcp.f32 %v2657_v13 }
0x145b   :  { %5231 = vpow2.f32 %v3821_v22 }
0x145c   :  { %5233 = vpow2.f32 %v3823_v57 }
0x145d   :  { %5235 = vpow2.f32 %v3825_v61 }
0x1464   :  { %v5230_v23 = vpop.eup %5229 }
0x1465   :  { %v5232_v41 = vpop.eup %5231  ;;  %v2661_v8 = vmul.f32 %v5230_v23, %v6087_v11 }
0x1466   :  { %v2760_v35 = vadd.f32 1.0, %v5232_v41  ;;  %v5234_v38 = vpop.eup %5233 }
0x1467   :  { %v2865_v39 = vadd.f32 1.0, %v5234_v38  ;;  %v5236_v54 = vpop.eup %5235 }
0x1468   :  { %5237 = vrcp.f32 %v2760_v35  ;;  %v2970_v7 = vadd.f32 1.0, %v5236_v54 }
0x1469   :  { %5239 = vrcp.f32 %v2865_v39 }
0x146a   :  { %5241 = vrcp.f32 %v2970_v7 }
0x1472   :  { %v5238_v40 = vpop.eup %5237 }
0x1473   :  { %v5240_v46 = vpop.eup %5239  ;;  %v2764_v56 = vmul.f32 %v5238_v40, %v6092_v25 }
0x1474   :  { %v5242_v51 = vpop.eup %5241  ;;  %v2869_v47 = vmul.f32 %v5240_v46, %v6096_v30 }
0x1475   :  { %v2974_v59 = vmul.f32 %v5242_v51, %v6101_v49 }
0x14a6   :  { %v2664_v26 = vpop.permute.xlu0 %2663 }
0x14a7   :  { %v2666_v28 = vmul.f32 %v5230_v23, %v2664_v26 }
0x14a9   :  { %2668 = vrot.lane.b32.xlu0 %v2666_v28, %s5334_s19 }
0x14b9   :  { %v2767_v43 = vpop.permute.xlu1 %2766 }
0x14ba   :  { %v2769_v45 = vmul.f32 %v5238_v40, %v2767_v43 }
0x14bc   :  { %2771 = vrot.lane.b32.xlu1 %v2769_v45, %s5334_s19 }
0x14bd   :  { %v2872_v58 = vpop.permute.xlu0 %2871 }
0x14be   :  { %v2874_v50 = vmul.f32 %v5240_v46, %v2872_v58 }
0x14c0   :  { %2876 = vrot.lane.b32.xlu0 %v2874_v50, %s5334_s19 }
0x14c9   :  { %v2977_v62 = vpop.permute.xlu1 %2976 }
0x14ca   :  { %v2979_v63 = vmul.f32 %v5242_v51, %v2977_v62 }
0x14cc   :  { %2981 = vrot.lane.b32.xlu1 %v2979_v63, %s5334_s19 }
0x151b   :  { %v2669_v32 = vpop.permute.xlu0 %2668 }
0x151c   :  { %v6178_v12 = vadd.f32 %v2669_v32, %v2661_v8 }
0x151e   :  { %5243 = vtanh.f32 %v6178_v12 }
0x1528   :  { %v5244_v37 = vpop.eup %5243 }
0x1529   :  { %2674 = vrot.lane.b32.xlu0 %v5244_v37, %s5333_s13 }
0x152e   :  { %v2772_v5 = vpop.permute.xlu1 %2771 }
0x152f   :  { %v6183_v42 = vadd.f32 %v2772_v5, %v2764_v56 }
0x1531   :  { %5245 = vtanh.f32 %v6183_v42 }
0x1532   :  { %v2877_v52 = vpop.permute.xlu0 %2876 }
0x1533   :  { %v6187_v15 = vadd.f32 %v2877_v52, %v2869_v47 }
0x1535   :  { %5247 = vtanh.f32 %v6187_v15 }
0x153b   :  { %v5246_v11 = vpop.eup %5245 }
0x153c   :  { %2777 = vrot.lane.b32.xlu1 %v5246_v11, %s5333_s13 }
0x153e   :  { %v2982_v10 = vpop.permute.xlu1 %2981 }
0x153f   :  { %v5248_v21 = vpop.eup %5247  ;;  %v6192_v25 = vadd.f32 %v2982_v10, %v2974_v59 }
0x1540   :  { %2882 = vrot.lane.b32.xlu0 %v5248_v21, %s5333_s13 }
0x1541   :  { %5249 = vtanh.f32 %v6192_v25 }
0x154b   :  { %v5250_v36 = vpop.eup %5249 }
0x154c   :  { %2987 = vrot.lane.b32.xlu1 %v5250_v36, %s5333_s13 }
0x159b   :  { %v2675_v30 = vpop.permute.xlu0 %2674 }
0x159c   :  { %v2677_v55 = vmul.f32 %v5230_v23, %v2675_v30 }
0x159e   :  { %2992 = vrot.lane.b32.xlu0 %v2677_v55, %s5334_s19 }
0x15ae   :  { %v2778_v16 = vpop.permute.xlu1 %2777 }
0x15af   :  { %v2780_v14 = vmul.f32 %v5238_v40, %v2778_v16 }
0x15b1   :  { %2996 = vrot.lane.b32.xlu1 %v2780_v14, %s5333_s13  ;;  %3097 = vrot.lane.b32.xlu0 %v2780_v14, %s5334_s19 }
0x15b2   :  { %v2883_v49 = vpop.permute.xlu0 %2882 }
0x15b3   :  { %v2885_v4 = vmul.f32 %v5240_v46, %v2883_v49 }
0x15b5   :  { %3202 = vrot.lane.b32.xlu0 %v2885_v4, %s5334_s19  ;;  %3101 = vrot.lane.b32.xlu1 %v2885_v4, %s5333_s13 }
0x15be   :  { %v2988_v60 = vpop.permute.xlu1 %2987 }
0x15bf   :  { %v2990_v27 = vmul.f32 %v5242_v51, %v2988_v60 }
0x15c1   :  { %3206 = vrot.lane.b32.xlu1 %v2990_v27, %s5333_s13 }
0x1610   :  { %v2993_v17 = vpop.permute.xlu0 %2992 }
0x1611   :  { %3624 = vst.msk [vmem:[%s6367_s15] sm:$0xff] %vm267_vm2, %v2993_v17 }
0x1623   :  { %v2997_v18 = vpop.permute.xlu1 %2996  ;;  %v3098_v20 = vpop.permute.xlu0 %3097 }
0x1624   :  { %v2999_v19 = vsel %vm267_vm2, %v2993_v17, %v2997_v18 }
0x1625   :  { %4580 = vmatmul.mubr.msk.f32.vlgmr.msra.gmra.mrb[32].mxu0 %vm484_vm3, %v2999_v19 }
0x1626   :  { %4982 = vmatpush3.bf16.msra.mxu0 %v5740_v24  ;;  %4617 = vmatprep.mubr.msk.f32.mxu0 %vm5331_vm0, %v5332_v2 }
0x1627   :  { %v3102_v9 = vpop.permute.xlu1 %3101  ;;  %4983 = vmatprep.subr.bf16.mxu0 %v5330_v1 }
0x1628   :  { %v3104_v13 = vsel %vm267_vm2, %v3098_v20, %v3102_v9 }
0x1629   :  { %4599 = vmatmul.mubr.msk.f32.vlgmr.msra.gmra.mrb[28].mxu1 %vm484_vm3, %v3104_v13 }
0x162a   :  { %4985 = vmatpush3.bf16.msra.mxu0 %v5753_v29  ;;  %4994 = vmatpush3.bf16.msra.mxu1 %v5630_v48  ;;  %v3203_v48 = vpop.permute.xlu0 %3202 }
0x162b   :  { %4986 = vmatprep.subr.bf16.mxu0 %v5330_v1  ;;  %4995 = vmatprep.subr.bf16.mxu1 %v5330_v1 }
0x162c   :  { %4636 = vmatprep.mubr.msk.f32.mxu1 %vm5331_vm0, %v5332_v2 }
0x162e   :  { %4988 = vmatpush3.bf16.msra.mxu0 %v5767_v34  ;;  %4997 = vmatpush3.bf16.msra.mxu1 %v5640_v53 }
0x162f   :  { %4989 = vmatprep.subr.bf16.mxu0 %v5330_v1  ;;  %4998 = vmatprep.subr.bf16.mxu1 %v5330_v1 }
0x1632   :  { %4991 = vmatpush3.bf16.msra.mxu0 %v5779_v33  ;;  %5000 = vmatpush3.bf16.msra.mxu1 %v5654_v0 }
0x1633   :  { %v3207_v22 = vpop.permute.xlu1 %3206  ;;  %5001 = vmatprep.subr.bf16.mxu1 %v5330_v1  ;;  %5004 = vmatprep.subr.bf16.mxu0 %v5330_v1 }
0x1634   :  { %v3209_v57 = vsel %vm267_vm2, %v3203_v48, %v3207_v22 }
0x1635   :  { %4618 = vmatmul.mubr.msk.f32.vlgmr.msra.gmra.mrb[34].mxu0 %vm484_vm3, %v3209_v57 }
0x1636   :  { %5003 = vmatpush3.bf16.msra.mxu1 %v5668_v6  ;;  %5006 = vmatpush3.bf16.msra.mxu0 %v5740_v24 }
0x1637   :  { %5007 = vmatprep.subr.bf16.mxu0 %v5330_v1  ;;  %4655 = vmatprep.mubr.msk.f32.mxu0 %vm5331_vm0, %v5332_v2 }
0x1638   :  { %5016 = vmatprep.subr.bf16.mxu1 %v5330_v1 }
0x163a   :  { %5009 = vmatpush3.bf16.msra.mxu0 %v5753_v29 }
0x163b   :  { %5010 = vmatprep.subr.bf16.mxu0 %v5330_v1 }
0x163e   :  { %5012 = vmatpush3.bf16.msra.mxu0 %v5767_v34 }
0x163f   :  { %5013 = vmatprep.subr.bf16.mxu0 %v5330_v1 }
0x1642   :  { %5015 = vmatpush3.bf16.msra.mxu0 %v5779_v33 }
0x1643   :  { %5028 = vmatprep.subr.bf16.mxu0 %v5330_v1 }
0x16f8   :  { %v3069_v53 = vpop.f32.mrb[32].mxu0 }
0x16f9   :  { %v3070_v0 = vadd.f32 %v5987_v44, %v3069_v53  ;;  %v4581_v6 = vpop.f32.mrb[33].mxu0 }
0x16fb   :  { %5251 = vtanh.f32 %v3070_v0  ;;  %v3827_v44 = vmul.f32 -1.442695, %v3070_v0 }
0x16fc   :  { %v3174_v23 = vpop.f32.mrb[28].mxu1 }
0x16fd   :  { %v3175_v26 = vadd.f32 %v6075_v31, %v3174_v23  ;;  %v4600_v28 = vpop.f32.mrb[29].mxu1 }
0x16ff   :  { %5253 = vtanh.f32 %v3175_v26  ;;  %v3829_v40 = vmul.f32 -1.442695, %v3175_v26 }
0x1705   :  { %v5252_v41 = vpop.eup %5251 }
0x1706   :  { %3082 = vrot.lane.b32.xlu0 %v5252_v41, %s5333_s13 }
0x1708   :  { %v3279_v61 = vpop.f32.mrb[34].mxu0 }
0x1709   :  { %v5254_v35 = vpop.eup %5253  ;;  %v3280_v38 = vadd.f32 %v6168_v3, %v3279_v61  ;;  %v4619_v39 = vpop.f32.mrb[35].mxu0 }
0x170a   :  { %3187 = vrot.lane.b32.xlu1 %v5254_v35, %s5333_s13 }
0x170b   :  { %5255 = vtanh.f32 %v3280_v38  ;;  %v3831_v45 = vmul.f32 -1.442695, %v3280_v38 }
0x170c   :  { %5257 = vpow2.f32 %v3827_v44 }
0x170d   :  { %5259 = vpow2.f32 %v3829_v40 }
0x170e   :  { %5261 = vpow2.f32 %v3831_v45 }
0x1715   :  { %v5256_v54 = vpop.eup %5255 }
0x1716   :  { %3292 = vrot.lane.b32.xlu0 %v5256_v54, %s5333_s13  ;;  %v5258_v43 = vpop.eup %5257 }
0x1717   :  { %v3076_v7 = vadd.f32 1.0, %v5258_v43  ;;  %v5260_v46 = vpop.eup %5259 }
0x1718   :  { %v3181_v58 = vadd.f32 1.0, %v5260_v46  ;;  %v5262_v50 = vpop.eup %5261 }
0x1719   :  { %5263 = vrcp.f32 %v3076_v7  ;;  %v3286_v8 = vadd.f32 1.0, %v5262_v50 }
0x171a   :  { %5265 = vrcp.f32 %v3181_v58 }
0x171b   :  { %5267 = vrcp.f32 %v3286_v8 }
0x1723   :  { %v5264_v51 = vpop.eup %5263 }
0x1724   :  { %v5266_v32 = vpop.eup %5265  ;;  %v3080_v11 = vmul.f32 %v5264_v51, %v6183_v42 }
0x1725   :  { %v5268_v5 = vpop.eup %5267  ;;  %v3185_v21 = vmul.f32 %v5266_v32, %v6187_v15 }
0x1726   :  { %v3290_v16 = vmul.f32 %v5268_v5, %v6192_v25 }
0x1778   :  { %v3083_v62 = vpop.permute.xlu0 %3082 }
0x1779   :  { %v3085_v63 = vmul.f32 %v5264_v51, %v3083_v62 }
0x177b   :  { %3087 = vrot.lane.b32.xlu1 %v3085_v63, %s5334_s19 }
0x177c   :  { %v3188_v37 = vpop.permute.xlu1 %3187 }
0x177d   :  { %v3190_v56 = vmul.f32 %v5266_v32, %v3188_v37 }
0x177f   :  { %3192 = vrot.lane.b32.xlu0 %v3190_v56, %s5334_s19 }
0x1788   :  { %v3293_v47 = vpop.permute.xlu0 %3292 }
0x1789   :  { %v3295_v52 = vmul.f32 %v5268_v5, %v3293_v47 }
0x178b   :  { %3297 = vrot.lane.b32.xlu1 %v3295_v52, %s5334_s19 }
0x17ed   :  { %v3088_v59 = vpop.permute.xlu1 %3087 }
0x17ee   :  { %v6253_v10 = vadd.f32 %v3088_v59, %v3080_v11 }
0x17f0   :  { %5269 = vtanh.f32 %v6253_v10 }
0x17f1   :  { %v3193_v36 = vpop.permute.xlu0 %3192 }
0x17f2   :  { %v6257_v30 = vadd.f32 %v3193_v36, %v3185_v21 }
0x17f4   :  { %5271 = vtanh.f32 %v6257_v30 }
0x17fa   :  { %v5270_v55 = vpop.eup %5269 }
0x17fb   :  { %3093 = vrot.lane.b32.xlu0 %v5270_v55, %s5333_s13 }
0x17fd   :  { %v3298_v14 = vpop.permute.xlu1 %3297 }
0x17fe   :  { %v5272_v49 = vpop.eup %5271  ;;  %v6262_v42 = vadd.f32 %v3298_v14, %v3290_v16 }
0x17ff   :  { %3198 = vrot.lane.b32.xlu1 %v5272_v49, %s5333_s13 }
0x1800   :  { %5273 = vtanh.f32 %v6262_v42 }
0x180a   :  { %v5274_v4 = vpop.eup %5273 }
0x180b   :  { %3303 = vrot.lane.b32.xlu0 %v5274_v4, %s5333_s13 }
0x186d   :  { %v3094_v15 = vpop.permute.xlu0 %3093 }
0x186e   :  { %v3096_v60 = vmul.f32 %v5264_v51, %v3094_v15  ;;  %v3659_v15 = vld [vmem:[%s6364_s12 + $0x8] sm:$0xff] }
0x1870   :  { %3308 = vrot.lane.b32.xlu1 %v3096_v60, %s5334_s19  ;;  %v3660_v60 = vld [vmem:[%s6364_s12 + $0x10] sm:$0xff] }
0x1871   :  { %v3199_v27 = vpop.permute.xlu1 %3198 }
0x1872   :  { %v3201_v17 = vmul.f32 %v5266_v32, %v3199_v27 }
0x1874   :  { %3413 = vrot.lane.b32.xlu1 %v3201_v17, %s5334_s19  ;;  %3312 = vrot.lane.b32.xlu0 %v3201_v17, %s5333_s13  ;;  %v3661_v17 = vld [vmem:[%s6364_s12 + $0x18] sm:$0xff] }
0x187d   :  { %v3304_v25 = vpop.permute.xlu0 %3303 }
0x187e   :  { %v3306_v18 = vmul.f32 %v5268_v5, %v3304_v25 }
0x1880   :  { %3417 = vrot.lane.b32.xlu0 %v3306_v18, %s5333_s13  ;;  %v5032_v18 = vpack.c.bf16 %v3661_v17, %v3660_v60 }
0x18e2   :  { %v3309_v19 = vpop.permute.xlu1 %3308 }
0x18e3   :  { %3838 = vst.msk [vmem:[%s6367_s15 + $0x8] sm:$0xff] %vm267_vm2, %v3309_v19 }
0x18e6   :  { %v3313_v20 = vpop.permute.xlu0 %3312  ;;  %v3414_v13 = vpop.permute.xlu1 %3413 }
0x18e7   :  { %v3315_v9 = vsel %vm267_vm2, %v3309_v19, %v3313_v20 }
0x18e8   :  { %4637 = vmatmul.mubr.msk.f32.vlgmr.msra.gmra.mrb[30].mxu1 %vm484_vm3, %v3315_v9 }
0x18e9   :  { %5018 = vmatpush3.bf16.msra.mxu1 %v5740_v24  ;;  %4674 = vmatprep.mubr.msk.f32.mxu1 %vm5331_vm0, %v5332_v2 }
0x18ea   :  { %5019 = vmatprep.subr.bf16.mxu1 %v5330_v1 }
0x18ed   :  { %5021 = vmatpush3.bf16.msra.mxu1 %v5753_v29 }
0x18ee   :  { %5022 = vmatprep.subr.bf16.mxu1 %v5330_v1 }
0x18f1   :  { %5024 = vmatpush3.bf16.msra.mxu1 %v5767_v34 }
0x18f2   :  { %v3418_v48 = vpop.permute.xlu0 %3417  ;;  %5025 = vmatprep.subr.bf16.mxu1 %v5330_v1 }
0x18f3   :  { %v3420_v22 = vsel %vm267_vm2, %v3414_v13, %v3418_v48  ;;  %v3844_v48 = vld [vmem:[#allocation3] ss:$0 sm:$0xff] }
0x18f4   :  { %4656 = vmatmul.mubr.msk.f32.vlgmr.msra.gmra.mrb[36].mxu0 %vm484_vm3, %v3420_v22 }
0x18f5   :  { %5027 = vmatpush3.bf16.msra.mxu1 %v5779_v33  ;;  %4685 = vmatprep.mubr.msk.f32.mxu0 %vm5331_vm0, %v5332_v2 }
0x19bb   :  { %v3385_v24 = vpop.f32.mrb[30].mxu1 }
0x19bc   :  { %v3386_v29 = vadd.f32 %v6075_v31, %v3385_v24  ;;  %v4638_v57 = vpop.f32.mrb[31].mxu1 }
0x19be   :  { %5275 = vtanh.f32 %v3386_v29  ;;  %v3833_v33 = vmul.f32 -1.442695, %v3386_v29 }
0x19c7   :  { %v3490_v53 = vpop.f32.mrb[36].mxu0 }
0x19c8   :  { %v5276_v34 = vpop.eup %5275  ;;  %v3491_v0 = vadd.f32 %v6168_v3, %v3490_v53  ;;  %v4657_v6 = vpop.f32.mrb[37].mxu0 }
0x19c9   :  { %3398 = vrot.lane.b32.xlu1 %v5276_v34, %s5333_s13 }
0x19ca   :  { %5277 = vtanh.f32 %v3491_v0  ;;  %v3835_v26 = vmul.f32 -1.442695, %v3491_v0 }
0x19cb   :  { %5279 = vpow2.f32 %v3833_v33 }
0x19cc   :  { %5281 = vpow2.f32 %v3835_v26 }
0x19d4   :  { %v5278_v23 = vpop.eup %5277 }
0x19d5   :  { %3503 = vrot.lane.b32.xlu0 %v5278_v23, %s5333_s13  ;;  %v5280_v2 = vpop.eup %5279 }
0x19d6   :  { %v3392_v28 = vadd.f32 1.0, %v5280_v2  ;;  %v5282_v31 = vpop.eup %5281 }
0x19d7   :  { %v3497_v41 = vadd.f32 1.0, %v5282_v31 }
0x19d8   :  { %5283 = vrcp.f32 %v3392_v28 }
0x19d9   :  { %5285 = vrcp.f32 %v3497_v41 }
0x19e2   :  { %v5284_v61 = vpop.eup %5283 }
0x19e3   :  { %v5286_v39 = vpop.eup %5285  ;;  %v3396_v40 = vmul.f32 %v5284_v61, %v6257_v30 }
0x19e4   :  { %v3501_v7 = vmul.f32 %v5286_v39, %v6262_v42 }
0x1a3b   :  { %v3399_v35 = vpop.permute.xlu1 %3398 }
0x1a3c   :  { %v3401_v38 = vmul.f32 %v5284_v61, %v3399_v35 }
0x1a3e   :  { %3403 = vrot.lane.b32.xlu1 %v3401_v38, %s5334_s19 }
0x1a47   :  { %v3504_v54 = vpop.permute.xlu0 %3503 }
0x1a48   :  { %v3506_v44 = vmul.f32 %v5286_v39, %v3504_v54 }
0x1a4a   :  { %3508 = vrot.lane.b32.xlu0 %v3506_v44, %s5334_s19 }
0x1ab0   :  { %v3404_v43 = vpop.permute.xlu1 %3403 }
0x1ab1   :  { %v3406_v45 = vadd.f32 %v3404_v43, %v3396_v40 }
0x1ab3   :  { %5287 = vtanh.f32 %v3406_v45 }
0x1abc   :  { %v3509_v46 = vpop.permute.xlu0 %3508 }
0x1abd   :  { %v5288_v58 = vpop.eup %5287  ;;  %v3511_v50 = vadd.f32 %v3509_v46, %v3501_v7 }
0x1abe   :  { %3409 = vrot.lane.b32.xlu1 %v5288_v58, %s5333_s13 }
0x1abf   :  { %5289 = vtanh.f32 %v3511_v50 }
0x1ac9   :  { %v5290_v51 = vpop.eup %5289 }
0x1aca   :  { %3514 = vrot.lane.b32.xlu0 %v5290_v51, %s5333_s13 }
0x1b30   :  { %v3410_v62 = vpop.permute.xlu1 %3409 }
0x1b31   :  { %v3412_v63 = vmul.f32 %v5284_v61, %v3410_v62 }
0x1b33   :  { %3519 = vrot.lane.b32.xlu1 %v3412_v63, %s5334_s19 }
0x1b3c   :  { %v3515_v8 = vpop.permute.xlu0 %3514 }
0x1b3d   :  { %v3517_v32 = vmul.f32 %v5286_v39, %v3515_v8 }
0x1b3f   :  { %3523 = vrot.lane.b32.xlu0 %v3517_v32, %s5333_s13 }
0x1ba5   :  { %v3520_v37 = vpop.permute.xlu1 %3519 }
0x1ba6   :  { %3840 = vst.msk [vmem:[%s6367_s15 + $0x10] sm:$0xff] %vm267_vm2, %v3520_v37 }
0x1bb1   :  { %v3524_v56 = vpop.permute.xlu0 %3523 }
0x1bb2   :  { %v3526_v5 = vsel %vm267_vm2, %v3520_v37, %v3524_v56 }
0x1bb3   :  { %4675 = vmatmul.mubr.msk.f32.vlgmr.msra.gmra.mrb[32].mxu1 %vm484_vm3, %v3526_v5 }
0x1c86   :  { %v3596_v47 = vpop.f32.mrb[32].mxu1 }
0x1c87   :  { %v3597_v52 = vadd.f32 %v6168_v3, %v3596_v47  ;;  %v4676_v11 = vpop.f32.mrb[33].mxu1  ;;  %v3658_v3 = vld [vmem:[%s6364_s12] sm:$0xff] }
0x1c88   :  { %v5029_v27 = vpack.c.bf16 %v3659_v15, %v3658_v3 }
0x1c89   :  { %5291 = vtanh.f32 %v3597_v52  ;;  %v3837_v21 = vmul.f32 -1.442695, %v3597_v52 }
0x1c8a   :  { %5030 = vmatpush3.bf16.msra.mxu0 %v5029_v27 }
0x1c8b   :  { %5293 = vpow2.f32 %v3837_v21  ;;  %5031 = vmatprep.subr.bf16.mxu0 %v5330_v1 }
0x1c8e   :  { %5033 = vmatpush3.bf16.msra.mxu0 %v5032_v18 }
0x1c93   :  { %v5292_v59 = vpop.eup %5291 }
0x1c94   :  { %3609 = vrot.lane.b32.xlu1 %v5292_v59, %s5333_s13 }
0x1c95   :  { %v5294_v36 = vpop.eup %5293 }
0x1c96   :  { %v3603_v30 = vadd.f32 1.0, %v5294_v36 }
0x1c98   :  { %5295 = vrcp.f32 %v3603_v30 }
0x1ca2   :  { %v5296_v55 = vpop.eup %5295 }
0x1ca3   :  { %v3607_v49 = vmul.f32 %v5296_v55, %v3511_v50 }
0x1d06   :  { %v3610_v16 = vpop.permute.xlu1 %3609 }
0x1d07   :  { %v3612_v14 = vmul.f32 %v5296_v55, %v3610_v16 }
0x1d09   :  { %3614 = vrot.lane.b32.xlu0 %v3612_v14, %s5334_s19 }
0x1d7b   :  { %v3615_v42 = vpop.permute.xlu0 %3614 }
0x1d7c   :  { %v3617_v4 = vadd.f32 %v3615_v42, %v3607_v49 }
0x1d7e   :  { %5297 = vtanh.f32 %v3617_v4 }
0x1d88   :  { %v5298_v25 = vpop.eup %5297 }
0x1d89   :  { %3620 = vrot.lane.b32.xlu1 %v5298_v25, %s5333_s13 }
0x1d8d   :  { %3626 = vrot.lane.b32.xlu1 %v6178_v12, %s5335_s4 }
0x1d91   :  { %3641 = vrot.lane.b32.xlu1 %v3406_v45, %s5335_s4 }
0x1dfb   :  { %v3621_v19 = vpop.permute.xlu1 %3620 }
0x1dfc   :  { %v3623_v20 = vmul.f32 %v5296_v55, %v3621_v19 }
0x1dfe   :  { %3647 = vrot.lane.b32.xlu0 %v3623_v20, %s5334_s19 }
0x1dff   :  { %v3627_v9 = vpop.permute.xlu1 %3626 }
0x1e00   :  { %3629 = vst.msk [vmem:[%s6368_s16] sm:$0xff] %vm267_vm2, %v3627_v9 }
0x1e02   :  { %3633 = vrot.lane.b32.xlu0 %v6253_v10, %s5335_s4 }
0x1e03   :  { %v3642_v13 = vpop.permute.xlu1 %3641 }
0x1e04   :  { %3841 = vst.msk [vmem:[%s6368_s16 + $0x10] sm:$0xff] %vm267_vm2, %v3642_v13 }
0x1e06   :  { %3653 = vrot.lane.b32.xlu0 %v3617_v4, %s5335_s4 }
0x1e70   :  { %v3648_v1 = vpop.permute.xlu0 %3647 }
0x1e71   :  { %3842 = vst.msk [vmem:[%s6367_s15 + $0x18] sm:$0xff] %vm267_vm2, %v3648_v1  ;;  %4686 = vmatmul.mubr.msk.f32.vlgmr.msra.gmra.mrb[38].mxu0 %vm267_vm2, %v3648_v1 }
0x1e74   :  { %v3634_v12 = vpop.permute.xlu0 %3633 }
0x1e75   :  { %3839 = vst.msk [vmem:[%s6368_s16 + $0x8] sm:$0xff] %vm267_vm2, %v3634_v12 }
0x1e78   :  { %v3654_v10 = vpop.permute.xlu0 %3653 }
0x1e79   :  { %3843 = vst.msk [vmem:[%s6368_s16 + $0x18] sm:$0xff] %vm267_vm2, %v3654_v10 }
0x1f44   :  { %v3737_v22 = vpop.f32.mrb[38].mxu0 }
0x1f45   :  { %v3738_v24 = vadd.f32 %v3844_v48, %v3737_v22  ;;  %v4687_v29 = vpop.f32.mrb[39].mxu0 }
0x1f47   :  { %3742 = vst.msk [vmem:[%s6366_s14] sm:$0xff] %vm3741_vm4, %v3738_v24 }
0x1f48   :  { %3755 = vsyncpa [#allocation5], 1 }

</bundles_post_ra>
